<compile_context>
chip_gen: v5e
topology: v5e:2x2
jax: 0.10.0
libtpu: 0.0.40
codegen_flags: <defaults>
</compile_context>

<pallas_src>
import functools

import jax
import jax.numpy as jnp
import numpy as np
from jax.experimental import pallas as pl
from jax.experimental.pallas import tpu as pltpu


# -----------------------------------------------------------------------------
# In-kernel conv layers (all VMEM-resident, one MXU matmul per conv).
# -----------------------------------------------------------------------------
def _conv1_shifted(sd_ref, w_ref, b_ref, *, bt, h1, w1):
    """conv1 (8x8 / stride 4) as a 2x2/stride-1 conv on the space-to-depth'd
    input: 4 shifted-slice matmuls, K = 16*C, accumulated in f32.
    sd_ref: (bt, hp, wp, 16C); w_ref: (4, 16C, 32) bf16; b_ref: (1, 32) f32.
    Returns (bt, h1, w1, 32) f32 (ReLU applied)."""
    cin = sd_ref.shape[-1]
    acc = None
    for idx, (ii, jj) in enumerate(((0, 0), (0, 1), (1, 0), (1, 1))):
        x = sd_ref[:, ii:ii + h1, jj:jj + w1, :]                 # (bt, h1, w1, 16C)
        x = x.reshape(bt * h1 * w1, cin).astype(jnp.bfloat16)    # leading-dim merge only
        t = jnp.dot(x, w_ref[idx], preferred_element_type=jnp.float32)
        acc = t if acc is None else acc + t
    y = jnp.maximum(acc + b_ref[...], 0.0)                       # (bt*h1*w1, 32)
    return y.reshape(bt, h1, w1, 32)                             # leading-dim split only


def _conv_one_matmul(act_ref, w_ref, b_ref, patch_ref, *, bt, k, s, ho, wo):
    """VALID conv (k x k, stride s) + bias + ReLU as ONE MXU matmul.
    act_ref:   (bt, hin, win, cin) NHWC VMEM ref.
    w_ref:     (k*k*cin, cout) bf16, row index (i*k + j)*cin + c <-> W_oihw[d,c,i,j].
    b_ref:     (1, cout) f32.
    patch_ref: (bt, ho*wo, k*k*cin) f32 im2col scratch (sample-major rows).
    Returns (bt, ho, wo, cout) f32 (ReLU applied)."""
    cin = act_ref.shape[-1]
    kkcin = k * k * cin
    # Sample-major im2col: one lane-dense (bt, k*k*cin) row per output position,
    # assembled by a minor-axis concatenate of contiguous 32/64-channel chunks.
    # NOTE: for large spatial extents this unrolled loop should become a
    # lax.fori_loop over positions; at these shapes static unrolling is fine.
    for oh in range(ho):
        for ow in range(wo):
            chunks = [act_ref[:, s * oh + i, s * ow + j, :]
                      for i in range(k) for j in range(k)]        # each (bt, cin)
            patch_ref[:, oh * wo + ow, :] = jnp.concatenate(chunks, axis=-1)
    patches = patch_ref[...].reshape(bt * ho * wo, kkcin)         # leading-dim merge only
    y = jnp.dot(patches.astype(jnp.bfloat16), w_ref[...],
                preferred_element_type=jnp.float32)               # single K=k*k*cin matmul
    y = jnp.maximum(y + b_ref[...], 0.0)                          # (bt*ho*wo, cout)
    return y.reshape(bt, ho, wo, y.shape[-1])                     # leading-dim split only


# -----------------------------------------------------------------------------
# Fused forward kernel (conv1..conv3 + fc1..fc3) -- one grid step per batch tile.
# -----------------------------------------------------------------------------
def _fused_forward_kernel(
        sd_ref, w1_ref, b1_ref, w2_ref, b2_ref, w3_ref, b3_ref,
        f1w_ref, f1b_ref, f2w_ref, f2b_ref, f3w_ref, f3b_ref,
        out_ref,
        a1_s, a2_s, p2_s, p3_s,
        *, dims):
    bt, h1, w1, h2, w2, h3, w3 = dims
    f32 = jnp.float32
    bf16 = jnp.bfloat16

    # conv1: 4 shifted-slice matmuls on the space-to-depth'd input.
    a1_s[...] = _conv1_shifted(sd_ref, w1_ref, b1_ref, bt=bt, h1=h1, w1=w1)

    # conv2 (4x4 / stride 2): one K=512 matmul (im2col rows sample-major).
    a2_s[...] = _conv_one_matmul(a1_s, w2_ref, b2_ref, p2_s,
                                 bt=bt, k=4, s=2, ho=h2, wo=w2)

    # conv3 (3x3 / stride 1): one K=576 matmul.
    a3 = _conv_one_matmul(a2_s, w3_ref, b3_ref, p3_s,
                          bt=bt, k=3, s=1, ho=h3, wo=w3)          # (bt, h3, w3, 64)

    # Flatten (n, oh, ow, c) -> (bt, h3*w3*64); fc1 weight rows were permuted in
    # pack_params to match this order, so no write-back scatter loop is needed.
    fcin = jnp.concatenate([a3[:, oh, ow, :]
                            for oh in range(h3) for ow in range(w3)], axis=-1)

    # classifier: Linear+ReLU, Dropout(0.5)=id (eval), Linear+ReLU,
    # Dropout(0.3)=id (eval), Linear. bf16 operands, f32 accumulate.
    h = jnp.maximum(jnp.dot(fcin.astype(bf16), f1w_ref[...],
                            preferred_element_type=f32) + f1b_ref[...], 0.0)
    h = jnp.maximum(jnp.dot(h.astype(bf16), f2w_ref[...],
                            preferred_element_type=f32) + f2b_ref[...], 0.0)
    # fc3 output columns are zero-padded to a lane-dense 128; sliced in wrapper.
    out_ref[...] = jnp.dot(h.astype(bf16), f3w_ref[...],
                           preferred_element_type=f32) + f3b_ref[...]


# -----------------------------------------------------------------------------
# Derived conv geometry + static validity checks (feedback: assert, don't leak).
# -----------------------------------------------------------------------------
def _conv_dims(c, h, w):
    assert h % 4 == 0 and w % 4 == 0, "spatial dims must be divisible by conv1 stride (4)"
    hp, wp = h // 4, w // 4
    h1, w1 = hp - 1, wp - 1                          # conv1 (k=8, s=4, VALID)
    assert h1 >= 4 and w1 >= 4, "input too small for conv2 (4x4)"
    h2, w2 = (h1 - 4) // 2 + 1, (w1 - 4) // 2 + 1    # conv2 (k=4, s=2)
    assert h2 >= 3 and w2 >= 3, "input too small for conv3 (3x3)"
    h3, w3 = h2 - 2, w2 - 2                          # conv3 (k=3, s=1)
    return hp, wp, h1, w1, h2, w2, h3, w3


# -----------------------------------------------------------------------------
# Forward wrapper (jitted): one layout transform of the raw input + one kernel.
# -----------------------------------------------------------------------------
def behavior_cloning_forward(packed, x_nchw, *, n_actions, batch_tile=128):
    n, c, h, w = x_nchw.shape
    hp, wp, h1, w1, h2, w2, h3, w3 = _conv_dims(c, h, w)
    na_pad = packed["fc3_w"].shape[1]
    cin1 = 16 * c

    # Batch tiling (grid axis, parallel -> megacore on v7x, pipelined DMA).
    if n <= batch_tile:
        bt = n
    else:
        assert batch_tile % 8 == 0, "batch tile must be a sublane multiple"
        bt = batch_tile
    grid = (pl.cdiv(n, bt),)

    # NCHW -> NHWC -> space-to-depth(4): pure permutation of the raw input
    # (no duplication); the duplicating im2col happens inside the kernel.
    x = jnp.transpose(x_nchw, (0, 2, 3, 1)).astype(jnp.float32)
    sd = x.reshape(n, hp, 4, wp, 4, c)
    sd = jnp.transpose(sd, (0, 1, 3, 2, 4, 5)).reshape(n, hp, wp, cin1)

    kernel = functools.partial(_fused_forward_kernel,
                               dims=(bt, h1, w1, h2, w2, h3, w3))

    def _resident(arr):  # weights/biases: constant block -> stay in VMEM across steps
        nd = arr.ndim
        return pl.BlockSpec(arr.shape, lambda b, _nd=nd: (0,) * _nd)

    weight_keys = ("conv1_w", "conv1_b", "conv2_w", "conv2_b",
                   "conv3_w", "conv3_b", "fc1_w", "fc1_b",
                   "fc2_w", "fc2_b", "fc3_w", "fc3_b")

    grid_spec = pltpu.PrefetchScalarGridSpec(
        num_scalar_prefetch=0,
        grid=grid,
        in_specs=[pl.BlockSpec((bt, hp, wp, cin1), lambda b: (b, 0, 0, 0))]
                 + [_resident(packed[k]) for k in weight_keys],
        out_specs=pl.BlockSpec((bt, na_pad), lambda b: (b, 0)),
        scratch_shapes=[
            pltpu.VMEM((bt, h1, w1, 32), jnp.float32),            # conv1 activation
            pltpu.VMEM((bt, h2, w2, 64), jnp.float32),            # conv2 activation
            pltpu.VMEM((bt, h2 * w2, 4 * 4 * 32), jnp.float32),   # conv2 im2col (lane-dense rows)
            pltpu.VMEM((bt, h3 * w3, 3 * 3 * 64), jnp.float32),   # conv3 im2col (lane-dense rows)
        ],
    )

    out_pad = pl.pallas_call(
        kernel,
        out_shape=jax.ShapeDtypeStruct((n, na_pad), jnp.float32),
        grid_spec=grid_spec,
        compiler_params=pltpu.CompilerParams(
            dimension_semantics=("parallel",),
            vmem_limit_bytes=48 * 1024 * 1024),
    )(sd, *[packed[k] for k in weight_keys])
    return out_pad[:, :n_actions]


# -----------------------------------------------------------------------------
# One-time weight packing (run OUTSIDE the jitted forward). Weights -> bf16.
# -----------------------------------------------------------------------------
def pack_params(params, input_shape, n_actions):
    c, h, w = input_shape
    _, _, _, _, _, _, h3, w3 = _conv_dims(c, h, w)
    wdt = jnp.bfloat16
    f32 = jnp.float32

    # conv1 OIHW (32,C,8,8) -> 4 slabs (16C, 32) indexed by (ii*2+jj) for the
    # space-to-depth formulation; slab row index = (a*4+b)*C + ch.
    w1p = jnp.transpose(params["conv1_w"], (2, 3, 1, 0))          # (8,8,C,32) [ki,kj,ch,o]
    w1p = w1p.reshape(2, 4, 2, 4, c, 32)                          # [ii,a,jj,b,ch,o]
    w1p = jnp.transpose(w1p, (0, 2, 1, 3, 4, 5)).reshape(4, 16 * c, 32)

    # conv2 OIHW (64,32,4,4) -> (4*4*32, 64), row index (i*4+j)*32 + ch.
    w2p = jnp.transpose(params["conv2_w"], (2, 3, 1, 0)).reshape(4 * 4 * 32, 64)
    # conv3 OIHW (64,64,3,3) -> (3*3*64, 64), row index (i*3+j)*64 + ch.
    w3p = jnp.transpose(params["conv3_w"], (2, 3, 1, 0)).reshape(3 * 3 * 64, 64)

    # fc1: reorder input rows from PyTorch's (c, h, w) flatten order to the
    # kernel's (h, w, c) flatten order (identity when conv output is 1x1).
    f1 = params["fc1_w"]                                          # (64*h3*w3, 512)
    d1 = f1.shape[1]
    f1 = jnp.transpose(f1.reshape(64, h3, w3, d1), (1, 2, 0, 3)).reshape(64 * h3 * w3, d1)

    # fc3: zero-pad output columns to a lane-dense multiple of 128.
    na_pad = ((n_actions + 127) // 128) * 128
    f3 = jnp.pad(params["fc3_w"], ((0, 0), (0, na_pad - n_actions)))
    f3b = jnp.pad(params["fc3_b"], (0, na_pad - n_actions)).reshape(1, na_pad)

    return {
        "conv1_w": w1p.astype(wdt),
        "conv1_b": params["conv1_b"].reshape(1, 32).astype(f32),
        "conv2_w": w2p.astype(wdt),
        "conv2_b": params["conv2_b"].reshape(1, 64).astype(f32),
        "conv3_w": w3p.astype(wdt),
        "conv3_b": params["conv3_b"].reshape(1, 64).astype(f32),
        "fc1_w": f1.astype(wdt),
        "fc1_b": params["fc1_b"].reshape(1, -1).astype(f32),
        "fc2_w": params["fc2_w"].astype(wdt),
        "fc2_b": params["fc2_b"].reshape(1, -1).astype(f32),
        "fc3_w": f3.astype(wdt),
        "fc3_b": f3b.astype(f32),
    }


# -----------------------------------------------------------------------------
# Deterministic parameter init (PyTorch-default-like U(-1/sqrt(fan_in), +...))
# -----------------------------------------------------------------------------
def _uniform(key, shape, fan_in):
    bound = 1.0 / np.sqrt(fan_in)
    return jax.random.uniform(key, shape, jnp.float32, -bound, bound)


def init_params(key, input_shape, n_actions):
    C, H, W = input_shape
    _, _, _, _, _, _, h3, w3 = _conv_dims(C, H, W)
    conv_out = 64 * h3 * w3

    ks = jax.random.split(key, 12)
    return {
        "conv1_w": _uniform(ks[0], (32, C, 8, 8), C * 8 * 8),
        "conv1_b": _uniform(ks[1], (32,), C * 8 * 8),
        "conv2_w": _uniform(ks[2], (64, 32, 4, 4), 32 * 4 * 4),
        "conv2_b": _uniform(ks[3], (64,), 32 * 4 * 4),
        "conv3_w": _uniform(ks[4], (64, 64, 3, 3), 64 * 3 * 3),
        "conv3_b": _uniform(ks[5], (64,), 64 * 3 * 3),
        "fc1_w": _uniform(ks[6], (conv_out, 512), conv_out),
        "fc1_b": _uniform(ks[7], (512,), conv_out),
        "fc2_w": _uniform(ks[8], (512, 256), 512),
        "fc2_b": _uniform(ks[9], (256,), 512),
        "fc3_w": _uniform(ks[10], (256, n_actions), 256),
        "fc3_b": _uniform(ks[11], (n_actions,), 256),
    }


# -----------------------------------------------------------------------------
# Pure-JAX reference (sanity check against the Pallas implementation)
# -----------------------------------------------------------------------------
def reference_forward(params, x_nchw):
    def conv(x, w, b, s):
        y = jax.lax.conv_general_dilated(
            x, w, (s, s), "VALID",
            dimension_numbers=("NCHW", "OIHW", "NCHW"))
        return jax.nn.relu(y + b[None, :, None, None])

    x = conv(x_nchw, params["conv1_w"], params["conv1_b"], 4)
    x = conv(x, params["conv2_w"], params["conv2_b"], 2)
    x = conv(x, params["conv3_w"], params["conv3_b"], 1)
    x = x.reshape(x.shape[0], -1)
    x = jax.nn.relu(jnp.dot(x, params["fc1_w"]) + params["fc1_b"])
    x = jax.nn.relu(jnp.dot(x, params["fc2_w"]) + params["fc2_b"])
    return jnp.dot(x, params["fc3_w"]) + params["fc3_b"]


if __name__ == "__main__":
    # input_shape=(4, 36, 36): convs reduce 36 -> 8 -> 3 -> 1 (conv_out = 64).
    batch, input_shape, n_actions = 2, (4, 36, 36), 7

    key = jax.random.PRNGKey(0)
    k_params, k_x = jax.random.split(key)
    params = init_params(k_params, input_shape, n_actions)
    x = jax.random.normal(k_x, (batch, *input_shape), jnp.float32)

    packed = pack_params(params, input_shape, n_actions)   # one-time prep, outside jit

    fwd = jax.jit(functools.partial(behavior_cloning_forward, n_actions=n_actions))
    out = jax.block_until_ready(fwd(packed, x))

    assert out.shape == (batch, n_actions), out.shape
    assert bool(jnp.all(jnp.isfinite(out)))

    ref = jax.block_until_ready(reference_forward(params, x))
    # Loose-ish tolerance: bf16 MXU operands (f32 accumulate) vs the f32 XLA path.
    np.testing.assert_allclose(np.asarray(out), np.asarray(ref), rtol=5e-2, atol=2e-2)

    print("KERNEL_OK")
</pallas_src>

<mosaic_0001>
module attributes {stable_mosaic.version = 11 : i64} {
  func.func @_fused_forward_kernel(%arg0: i32, %arg1: memref<2x9x9x64xf32, #tpu.memory_space<vmem>>, %arg2: memref<4x64x32xbf16, #tpu.memory_space<vmem>>, %arg3: memref<1x32xf32, #tpu.memory_space<vmem>>, %arg4: memref<512x64xbf16, #tpu.memory_space<vmem>>, %arg5: memref<1x64xf32, #tpu.memory_space<vmem>>, %arg6: memref<576x64xbf16, #tpu.memory_space<vmem>>, %arg7: memref<1x64xf32, #tpu.memory_space<vmem>>, %arg8: memref<64x512xbf16, #tpu.memory_space<vmem>>, %arg9: memref<1x512xf32, #tpu.memory_space<vmem>>, %arg10: memref<512x256xbf16, #tpu.memory_space<vmem>>, %arg11: memref<1x256xf32, #tpu.memory_space<vmem>>, %arg12: memref<256x128xbf16, #tpu.memory_space<vmem>>, %arg13: memref<1x128xf32, #tpu.memory_space<vmem>>, %arg14: memref<2x128xf32, #tpu.memory_space<vmem>>, %arg15: memref<2x8x8x32xf32, #tpu.memory_space<vmem>>, %arg16: memref<2x3x3x64xf32, #tpu.memory_space<vmem>>, %arg17: memref<2x9x512xf32, #tpu.memory_space<vmem>>, %arg18: memref<2x1x576xf32, #tpu.memory_space<vmem>>) attributes {dimension_semantics = [#tpu.dimension_semantics<parallel>], iteration_bounds = array<i64: 1>, scalar_prefetch = 0 : i64, scratch_operands = 4 : i64, tpu.core_type = #tpu.core_type<tc>, window_params = [{transform_indices = @transform_0, window_bounds = array<i64: 2, 9, 9, 64>}, {pipeline_mode = #tpu.pipeline_mode<synchronous>, transform_indices = @transform_1, window_bounds = array<i64: 4, 64, 32>}, {pipeline_mode = #tpu.pipeline_mode<synchronous>, transform_indices = @transform_2, window_bounds = array<i64: 1, 32>}, {pipeline_mode = #tpu.pipeline_mode<synchronous>, transform_indices = @transform_3, window_bounds = array<i64: 512, 64>}, {pipeline_mode = #tpu.pipeline_mode<synchronous>, transform_indices = @transform_4, window_bounds = array<i64: 1, 64>}, {pipeline_mode = #tpu.pipeline_mode<synchronous>, transform_indices = @transform_5, window_bounds = array<i64: 576, 64>}, {pipeline_mode = #tpu.pipeline_mode<synchronous>, transform_indices = @transform_6, window_bounds = array<i64: 1, 64>}, {pipeline_mode = #tpu.pipeline_mode<synchronous>, transform_indices = @transform_7, window_bounds = array<i64: 64, 512>}, {pipeline_mode = #tpu.pipeline_mode<synchronous>, transform_indices = @transform_8, window_bounds = array<i64: 1, 512>}, {pipeline_mode = #tpu.pipeline_mode<synchronous>, transform_indices = @transform_9, window_bounds = array<i64: 512, 256>}, {pipeline_mode = #tpu.pipeline_mode<synchronous>, transform_indices = @transform_10, window_bounds = array<i64: 1, 256>}, {pipeline_mode = #tpu.pipeline_mode<synchronous>, transform_indices = @transform_11, window_bounds = array<i64: 256, 128>}, {pipeline_mode = #tpu.pipeline_mode<synchronous>, transform_indices = @transform_12, window_bounds = array<i64: 1, 128>}, {transform_indices = @transform_13, window_bounds = array<i64: 2, 128>}]} {
    %c0 = arith.constant 0 : index
    %c0_0 = arith.constant 0 : index
    %c0_1 = arith.constant 0 : index
    %c0_2 = arith.constant 0 : index
    %0 = vector.load %arg1[%c0, %c0_0, %c0_1, %c0_2] : memref<2x9x9x64xf32, #tpu.memory_space<vmem>>, vector<2x8x8x64xf32>
    %1 = vector.shape_cast %0 : vector<2x8x8x64xf32> to vector<128x64xf32>
    %2 = arith.truncf %1 : vector<128x64xf32> to vector<128x64xbf16>
    %c0_3 = arith.constant 0 : index
    %c0_4 = arith.constant 0 : index
    %c0_5 = arith.constant 0 : index
    %3 = vector.load %arg2[%c0_3, %c0_4, %c0_5] : memref<4x64x32xbf16, #tpu.memory_space<vmem>>, vector<1x64x32xbf16>
    %4 = vector.shape_cast %3 : vector<1x64x32xbf16> to vector<64x32xbf16>
    %cst = arith.constant dense<0.000000e+00> : vector<128x32xf32>
    %5 = tpu.matmul %2, %4, %cst {dimension_numbers = #tpu.dot_dimension_numbers<[1], [0], [0], [1], [0, 0, 1, 1], [], []>} : vector<128x64xbf16>, vector<64x32xbf16>, vector<128x32xf32> -> vector<128x32xf32>
    %c0_6 = arith.constant 0 : index
    %c0_7 = arith.constant 0 : index
    %c1 = arith.constant 1 : index
    %c0_8 = arith.constant 0 : index
    %6 = vector.load %arg1[%c0_6, %c0_7, %c1, %c0_8] : memref<2x9x9x64xf32, #tpu.memory_space<vmem>>, vector<2x8x8x64xf32>
    %7 = vector.shape_cast %6 : vector<2x8x8x64xf32> to vector<128x64xf32>
    %8 = arith.truncf %7 : vector<128x64xf32> to vector<128x64xbf16>
    %c1_9 = arith.constant 1 : index
    %c0_10 = arith.constant 0 : index
    %c0_11 = arith.constant 0 : index
    %9 = vector.load %arg2[%c1_9, %c0_10, %c0_11] : memref<4x64x32xbf16, #tpu.memory_space<vmem>>, vector<1x64x32xbf16>
    %10 = vector.shape_cast %9 : vector<1x64x32xbf16> to vector<64x32xbf16>
    %cst_12 = arith.constant dense<0.000000e+00> : vector<128x32xf32>
    %11 = tpu.matmul %8, %10, %cst_12 {dimension_numbers = #tpu.dot_dimension_numbers<[1], [0], [0], [1], [0, 0, 1, 1], [], []>} : vector<128x64xbf16>, vector<64x32xbf16>, vector<128x32xf32> -> vector<128x32xf32>
    %12 = arith.addf %5, %11 : vector<128x32xf32>
    %c0_13 = arith.constant 0 : index
    %c1_14 = arith.constant 1 : index
    %c0_15 = arith.constant 0 : index
    %c0_16 = arith.constant 0 : index
    %13 = vector.load %arg1[%c0_13, %c1_14, %c0_15, %c0_16] : memref<2x9x9x64xf32, #tpu.memory_space<vmem>>, vector<2x8x8x64xf32>
    %14 = vector.shape_cast %13 : vector<2x8x8x64xf32> to vector<128x64xf32>
    %15 = arith.truncf %14 : vector<128x64xf32> to vector<128x64xbf16>
    %c2 = arith.constant 2 : index
    %c0_17 = arith.constant 0 : index
    %c0_18 = arith.constant 0 : index
    %16 = vector.load %arg2[%c2, %c0_17, %c0_18] : memref<4x64x32xbf16, #tpu.memory_space<vmem>>, vector<1x64x32xbf16>
    %17 = vector.shape_cast %16 : vector<1x64x32xbf16> to vector<64x32xbf16>
    %cst_19 = arith.constant dense<0.000000e+00> : vector<128x32xf32>
    %18 = tpu.matmul %15, %17, %cst_19 {dimension_numbers = #tpu.dot_dimension_numbers<[1], [0], [0], [1], [0, 0, 1, 1], [], []>} : vector<128x64xbf16>, vector<64x32xbf16>, vector<128x32xf32> -> vector<128x32xf32>
    %19 = arith.addf %12, %18 : vector<128x32xf32>
    %c0_20 = arith.constant 0 : index
    %c1_21 = arith.constant 1 : index
    %c1_22 = arith.constant 1 : index
    %c0_23 = arith.constant 0 : index
    %20 = vector.load %arg1[%c0_20, %c1_21, %c1_22, %c0_23] : memref<2x9x9x64xf32, #tpu.memory_space<vmem>>, vector<2x8x8x64xf32>
    %21 = vector.shape_cast %20 : vector<2x8x8x64xf32> to vector<128x64xf32>
    %22 = arith.truncf %21 : vector<128x64xf32> to vector<128x64xbf16>
    %c3 = arith.constant 3 : index
    %c0_24 = arith.constant 0 : index
    %c0_25 = arith.constant 0 : index
    %23 = vector.load %arg2[%c3, %c0_24, %c0_25] : memref<4x64x32xbf16, #tpu.memory_space<vmem>>, vector<1x64x32xbf16>
    %24 = vector.shape_cast %23 : vector<1x64x32xbf16> to vector<64x32xbf16>
    %cst_26 = arith.constant dense<0.000000e+00> : vector<128x32xf32>
    %25 = tpu.matmul %22, %24, %cst_26 {dimension_numbers = #tpu.dot_dimension_numbers<[1], [0], [0], [1], [0, 0, 1, 1], [], []>} : vector<128x64xbf16>, vector<64x32xbf16>, vector<128x32xf32> -> vector<128x32xf32>
    %26 = arith.addf %19, %25 : vector<128x32xf32>
    %c0_27 = arith.constant 0 : index
    %c0_28 = arith.constant 0 : index
    %27 = vector.load %arg3[%c0_27, %c0_28] : memref<1x32xf32, #tpu.memory_space<vmem>>, vector<1x32xf32>
    %28 = vector.broadcast %27 : vector<1x32xf32> to vector<128x32xf32>
    %29 = arith.addf %26, %28 : vector<128x32xf32>
    %cst_29 = arith.constant 0.000000e+00 : f32
    %30 = vector.broadcast %cst_29 : f32 to vector<128x32xf32>
    %31 = arith.maximumf %29, %30 : vector<128x32xf32>
    %32 = vector.shape_cast %31 : vector<128x32xf32> to vector<2x8x8x32xf32>
    %c0_30 = arith.constant 0 : index
    %c0_31 = arith.constant 0 : index
    %c0_32 = arith.constant 0 : index
    %c0_33 = arith.constant 0 : index
    %33 = vector.load %arg15[%c0_30, %c0_31, %c0_32, %c0_33] : memref<2x8x8x32xf32, #tpu.memory_space<vmem>>, vector<2x8x8x32xf32>
    tpu.vector_store %arg15[%c0_30, %c0_31, %c0_32, %c0_33], %32 {strides = array<i32>} : memref<2x8x8x32xf32, #tpu.memory_space<vmem>>, vector<2x8x8x32xf32>,
    %c0_34 = arith.constant 0 : index
    %c0_35 = arith.constant 0 : index
    %c0_36 = arith.constant 0 : index
    %c0_37 = arith.constant 0 : index
    %34 = vector.load %arg15[%c0_34, %c0_35, %c0_36, %c0_37] : memref<2x8x8x32xf32, #tpu.memory_space<vmem>>, vector<2x1x1x32xf32>
    %35 = vector.shape_cast %34 : vector<2x1x1x32xf32> to vector<2x32xf32>
    %c0_38 = arith.constant 0 : index
    %c0_39 = arith.constant 0 : index
    %c1_40 = arith.constant 1 : index
    %c0_41 = arith.constant 0 : index
    %36 = vector.load %arg15[%c0_38, %c0_39, %c1_40, %c0_41] : memref<2x8x8x32xf32, #tpu.memory_space<vmem>>, vector<2x1x1x32xf32>
    %37 = vector.shape_cast %36 : vector<2x1x1x32xf32> to vector<2x32xf32>
    %c0_42 = arith.constant 0 : index
    %c0_43 = arith.constant 0 : index
    %c2_44 = arith.constant 2 : index
    %c0_45 = arith.constant 0 : index
    %38 = vector.load %arg15[%c0_42, %c0_43, %c2_44, %c0_45] : memref<2x8x8x32xf32, #tpu.memory_space<vmem>>, vector<2x1x1x32xf32>
    %39 = vector.shape_cast %38 : vector<2x1x1x32xf32> to vector<2x32xf32>
    %c0_46 = arith.constant 0 : index
    %c0_47 = arith.constant 0 : index
    %c3_48 = arith.constant 3 : index
    %c0_49 = arith.constant 0 : index
    %40 = vector.load %arg15[%c0_46, %c0_47, %c3_48, %c0_49] : memref<2x8x8x32xf32, #tpu.memory_space<vmem>>, vector<2x1x1x32xf32>
    %41 = vector.shape_cast %40 : vector<2x1x1x32xf32> to vector<2x32xf32>
    %c0_50 = arith.constant 0 : index
    %c1_51 = arith.constant 1 : index
    %c0_52 = arith.constant 0 : index
    %c0_53 = arith.constant 0 : index
    %42 = vector.load %arg15[%c0_50, %c1_51, %c0_52, %c0_53] : memref<2x8x8x32xf32, #tpu.memory_space<vmem>>, vector<2x1x1x32xf32>
    %43 = vector.shape_cast %42 : vector<2x1x1x32xf32> to vector<2x32xf32>
    %c0_54 = arith.constant 0 : index
    %c1_55 = arith.constant 1 : index
    %c1_56 = arith.constant 1 : index
    %c0_57 = arith.constant 0 : index
    %44 = vector.load %arg15[%c0_54, %c1_55, %c1_56, %c0_57] : memref<2x8x8x32xf32, #tpu.memory_space<vmem>>, vector<2x1x1x32xf32>
    %45 = vector.shape_cast %44 : vector<2x1x1x32xf32> to vector<2x32xf32>
    %c0_58 = arith.constant 0 : index
    %c1_59 = arith.constant 1 : index
    %c2_60 = arith.constant 2 : index
    %c0_61 = arith.constant 0 : index
    %46 = vector.load %arg15[%c0_58, %c1_59, %c2_60, %c0_61] : memref<2x8x8x32xf32, #tpu.memory_space<vmem>>, vector<2x1x1x32xf32>
    %47 = vector.shape_cast %46 : vector<2x1x1x32xf32> to vector<2x32xf32>
    %c0_62 = arith.constant 0 : index
    %c1_63 = arith.constant 1 : index
    %c3_64 = arith.constant 3 : index
    %c0_65 = arith.constant 0 : index
    %48 = vector.load %arg15[%c0_62, %c1_63, %c3_64, %c0_65] : memref<2x8x8x32xf32, #tpu.memory_space<vmem>>, vector<2x1x1x32xf32>
    %49 = vector.shape_cast %48 : vector<2x1x1x32xf32> to vector<2x32xf32>
    %c0_66 = arith.constant 0 : index
    %c2_67 = arith.constant 2 : index
    %c0_68 = arith.constant 0 : index
    %c0_69 = arith.constant 0 : index
    %50 = vector.load %arg15[%c0_66, %c2_67, %c0_68, %c0_69] : memref<2x8x8x32xf32, #tpu.memory_space<vmem>>, vector<2x1x1x32xf32>
    %51 = vector.shape_cast %50 : vector<2x1x1x32xf32> to vector<2x32xf32>
    %c0_70 = arith.constant 0 : index
    %c2_71 = arith.constant 2 : index
    %c1_72 = arith.constant 1 : index
    %c0_73 = arith.constant 0 : index
    %52 = vector.load %arg15[%c0_70, %c2_71, %c1_72, %c0_73] : memref<2x8x8x32xf32, #tpu.memory_space<vmem>>, vector<2x1x1x32xf32>
    %53 = vector.shape_cast %52 : vector<2x1x1x32xf32> to vector<2x32xf32>
    %c0_74 = arith.constant 0 : index
    %c2_75 = arith.constant 2 : index
    %c2_76 = arith.constant 2 : index
    %c0_77 = arith.constant 0 : index
    %54 = vector.load %arg15[%c0_74, %c2_75, %c2_76, %c0_77] : memref<2x8x8x32xf32, #tpu.memory_space<vmem>>, vector<2x1x1x32xf32>
    %55 = vector.shape_cast %54 : vector<2x1x1x32xf32> to vector<2x32xf32>
    %c0_78 = arith.constant 0 : index
    %c2_79 = arith.constant 2 : index
    %c3_80 = arith.constant 3 : index
    %c0_81 = arith.constant 0 : index
    %56 = vector.load %arg15[%c0_78, %c2_79, %c3_80, %c0_81] : memref<2x8x8x32xf32, #tpu.memory_space<vmem>>, vector<2x1x1x32xf32>
    %57 = vector.shape_cast %56 : vector<2x1x1x32xf32> to vector<2x32xf32>
    %c0_82 = arith.constant 0 : index
    %c3_83 = arith.constant 3 : index
    %c0_84 = arith.constant 0 : index
    %c0_85 = arith.constant 0 : index
    %58 = vector.load %arg15[%c0_82, %c3_83, %c0_84, %c0_85] : memref<2x8x8x32xf32, #tpu.memory_space<vmem>>, vector<2x1x1x32xf32>
    %59 = vector.shape_cast %58 : vector<2x1x1x32xf32> to vector<2x32xf32>
    %c0_86 = arith.constant 0 : index
    %c3_87 = arith.constant 3 : index
    %c1_88 = arith.constant 1 : index
    %c0_89 = arith.constant 0 : index
    %60 = vector.load %arg15[%c0_86, %c3_87, %c1_88, %c0_89] : memref<2x8x8x32xf32, #tpu.memory_space<vmem>>, vector<2x1x1x32xf32>
    %61 = vector.shape_cast %60 : vector<2x1x1x32xf32> to vector<2x32xf32>
    %c0_90 = arith.constant 0 : index
    %c3_91 = arith.constant 3 : index
    %c2_92 = arith.constant 2 : index
    %c0_93 = arith.constant 0 : index
    %62 = vector.load %arg15[%c0_90, %c3_91, %c2_92, %c0_93] : memref<2x8x8x32xf32, #tpu.memory_space<vmem>>, vector<2x1x1x32xf32>
    %63 = vector.shape_cast %62 : vector<2x1x1x32xf32> to vector<2x32xf32>
    %c0_94 = arith.constant 0 : index
    %c3_95 = arith.constant 3 : index
    %c3_96 = arith.constant 3 : index
    %c0_97 = arith.constant 0 : index
    %64 = vector.load %arg15[%c0_94, %c3_95, %c3_96, %c0_97] : memref<2x8x8x32xf32, #tpu.memory_space<vmem>>, vector<2x1x1x32xf32>
    %65 = vector.shape_cast %64 : vector<2x1x1x32xf32> to vector<2x32xf32>
    %66 = tpu.concatenate %35, %37, %39, %41, %43, %45, %47, %49, %51, %53, %55, %57, %59, %61, %63, %65 in 1 : vector<2x32xf32>, vector<2x32xf32>, vector<2x32xf32>, vector<2x32xf32>, vector<2x32xf32>, vector<2x32xf32>, vector<2x32xf32>, vector<2x32xf32>, vector<2x32xf32>, vector<2x32xf32>, vector<2x32xf32>, vector<2x32xf32>, vector<2x32xf32>, vector<2x32xf32>, vector<2x32xf32>, vector<2x32xf32> -> vector<2x512xf32>
    %c0_98 = arith.constant 0 : index
    %c0_99 = arith.constant 0 : index
    %c0_100 = arith.constant 0 : index
    %67 = vector.load %arg17[%c0_98, %c0_99, %c0_100] : memref<2x9x512xf32, #tpu.memory_space<vmem>>, vector<2x1x512xf32>
    %68 = vector.shape_cast %67 : vector<2x1x512xf32> to vector<2x512xf32>
    %69 = vector.shape_cast %66 : vector<2x512xf32> to vector<2x1x512xf32>
    tpu.vector_store %arg17[%c0_98, %c0_99, %c0_100], %69 {strides = array<i32>} : memref<2x9x512xf32, #tpu.memory_space<vmem>>, vector<2x1x512xf32>,
    %c0_101 = arith.constant 0 : index
    %c0_102 = arith.constant 0 : index
    %c2_103 = arith.constant 2 : index
    %c0_104 = arith.constant 0 : index
    %70 = vector.load %arg15[%c0_101, %c0_102, %c2_103, %c0_104] : memref<2x8x8x32xf32, #tpu.memory_space<vmem>>, vector<2x1x1x32xf32>
    %71 = vector.shape_cast %70 : vector<2x1x1x32xf32> to vector<2x32xf32>
    %c0_105 = arith.constant 0 : index
    %c0_106 = arith.constant 0 : index
    %c3_107 = arith.constant 3 : index
    %c0_108 = arith.constant 0 : index
    %72 = vector.load %arg15[%c0_105, %c0_106, %c3_107, %c0_108] : memref<2x8x8x32xf32, #tpu.memory_space<vmem>>, vector<2x1x1x32xf32>
    %73 = vector.shape_cast %72 : vector<2x1x1x32xf32> to vector<2x32xf32>
    %c0_109 = arith.constant 0 : index
    %c0_110 = arith.constant 0 : index
    %c4 = arith.constant 4 : index
    %c0_111 = arith.constant 0 : index
    %74 = vector.load %arg15[%c0_109, %c0_110, %c4, %c0_111] : memref<2x8x8x32xf32, #tpu.memory_space<vmem>>, vector<2x1x1x32xf32>
    %75 = vector.shape_cast %74 : vector<2x1x1x32xf32> to vector<2x32xf32>
    %c0_112 = arith.constant 0 : index
    %c0_113 = arith.constant 0 : index
    %c5 = arith.constant 5 : index
    %c0_114 = arith.constant 0 : index
    %76 = vector.load %arg15[%c0_112, %c0_113, %c5, %c0_114] : memref<2x8x8x32xf32, #tpu.memory_space<vmem>>, vector<2x1x1x32xf32>
    %77 = vector.shape_cast %76 : vector<2x1x1x32xf32> to vector<2x32xf32>
    %c0_115 = arith.constant 0 : index
    %c1_116 = arith.constant 1 : index
    %c2_117 = arith.constant 2 : index
    %c0_118 = arith.constant 0 : index
    %78 = vector.load %arg15[%c0_115, %c1_116, %c2_117, %c0_118] : memref<2x8x8x32xf32, #tpu.memory_space<vmem>>, vector<2x1x1x32xf32>
    %79 = vector.shape_cast %78 : vector<2x1x1x32xf32> to vector<2x32xf32>
    %c0_119 = arith.constant 0 : index
    %c1_120 = arith.constant 1 : index
    %c3_121 = arith.constant 3 : index
    %c0_122 = arith.constant 0 : index
    %80 = vector.load %arg15[%c0_119, %c1_120, %c3_121, %c0_122] : memref<2x8x8x32xf32, #tpu.memory_space<vmem>>, vector<2x1x1x32xf32>
    %81 = vector.shape_cast %80 : vector<2x1x1x32xf32> to vector<2x32xf32>
    %c0_123 = arith.constant 0 : index
    %c1_124 = arith.constant 1 : index
    %c4_125 = arith.constant 4 : index
    %c0_126 = arith.constant 0 : index
    %82 = vector.load %arg15[%c0_123, %c1_124, %c4_125, %c0_126] : memref<2x8x8x32xf32, #tpu.memory_space<vmem>>, vector<2x1x1x32xf32>
    %83 = vector.shape_cast %82 : vector<2x1x1x32xf32> to vector<2x32xf32>
    %c0_127 = arith.constant 0 : index
    %c1_128 = arith.constant 1 : index
    %c5_129 = arith.constant 5 : index
    %c0_130 = arith.constant 0 : index
    %84 = vector.load %arg15[%c0_127, %c1_128, %c5_129, %c0_130] : memref<2x8x8x32xf32, #tpu.memory_space<vmem>>, vector<2x1x1x32xf32>
    %85 = vector.shape_cast %84 : vector<2x1x1x32xf32> to vector<2x32xf32>
    %c0_131 = arith.constant 0 : index
    %c2_132 = arith.constant 2 : index
    %c2_133 = arith.constant 2 : index
    %c0_134 = arith.constant 0 : index
    %86 = vector.load %arg15[%c0_131, %c2_132, %c2_133, %c0_134] : memref<2x8x8x32xf32, #tpu.memory_space<vmem>>, vector<2x1x1x32xf32>
    %87 = vector.shape_cast %86 : vector<2x1x1x32xf32> to vector<2x32xf32>
    %c0_135 = arith.constant 0 : index
    %c2_136 = arith.constant 2 : index
    %c3_137 = arith.constant 3 : index
    %c0_138 = arith.constant 0 : index
    %88 = vector.load %arg15[%c0_135, %c2_136, %c3_137, %c0_138] : memref<2x8x8x32xf32, #tpu.memory_space<vmem>>, vector<2x1x1x32xf32>
    %89 = vector.shape_cast %88 : vector<2x1x1x32xf32> to vector<2x32xf32>
    %c0_139 = arith.constant 0 : index
    %c2_140 = arith.constant 2 : index
    %c4_141 = arith.constant 4 : index
    %c0_142 = arith.constant 0 : index
    %90 = vector.load %arg15[%c0_139, %c2_140, %c4_141, %c0_142] : memref<2x8x8x32xf32, #tpu.memory_space<vmem>>, vector<2x1x1x32xf32>
    %91 = vector.shape_cast %90 : vector<2x1x1x32xf32> to vector<2x32xf32>
    %c0_143 = arith.constant 0 : index
    %c2_144 = arith.constant 2 : index
    %c5_145 = arith.constant 5 : index
    %c0_146 = arith.constant 0 : index
    %92 = vector.load %arg15[%c0_143, %c2_144, %c5_145, %c0_146] : memref<2x8x8x32xf32, #tpu.memory_space<vmem>>, vector<2x1x1x32xf32>
    %93 = vector.shape_cast %92 : vector<2x1x1x32xf32> to vector<2x32xf32>
    %c0_147 = arith.constant 0 : index
    %c3_148 = arith.constant 3 : index
    %c2_149 = arith.constant 2 : index
    %c0_150 = arith.constant 0 : index
    %94 = vector.load %arg15[%c0_147, %c3_148, %c2_149, %c0_150] : memref<2x8x8x32xf32, #tpu.memory_space<vmem>>, vector<2x1x1x32xf32>
    %95 = vector.shape_cast %94 : vector<2x1x1x32xf32> to vector<2x32xf32>
    %c0_151 = arith.constant 0 : index
    %c3_152 = arith.constant 3 : index
    %c3_153 = arith.constant 3 : index
    %c0_154 = arith.constant 0 : index
    %96 = vector.load %arg15[%c0_151, %c3_152, %c3_153, %c0_154] : memref<2x8x8x32xf32, #tpu.memory_space<vmem>>, vector<2x1x1x32xf32>
    %97 = vector.shape_cast %96 : vector<2x1x1x32xf32> to vector<2x32xf32>
    %c0_155 = arith.constant 0 : index
    %c3_156 = arith.constant 3 : index
    %c4_157 = arith.constant 4 : index
    %c0_158 = arith.constant 0 : index
    %98 = vector.load %arg15[%c0_155, %c3_156, %c4_157, %c0_158] : memref<2x8x8x32xf32, #tpu.memory_space<vmem>>, vector<2x1x1x32xf32>
    %99 = vector.shape_cast %98 : vector<2x1x1x32xf32> to vector<2x32xf32>
    %c0_159 = arith.constant 0 : index
    %c3_160 = arith.constant 3 : index
    %c5_161 = arith.constant 5 : index
    %c0_162 = arith.constant 0 : index
    %100 = vector.load %arg15[%c0_159, %c3_160, %c5_161, %c0_162] : memref<2x8x8x32xf32, #tpu.memory_space<vmem>>, vector<2x1x1x32xf32>
    %101 = vector.shape_cast %100 : vector<2x1x1x32xf32> to vector<2x32xf32>
    %102 = tpu.concatenate %71, %73, %75, %77, %79, %81, %83, %85, %87, %89, %91, %93, %95, %97, %99, %101 in 1 : vector<2x32xf32>, vector<2x32xf32>, vector<2x32xf32>, vector<2x32xf32>, vector<2x32xf32>, vector<2x32xf32>, vector<2x32xf32>, vector<2x32xf32>, vector<2x32xf32>, vector<2x32xf32>, vector<2x32xf32>, vector<2x32xf32>, vector<2x32xf32>, vector<2x32xf32>, vector<2x32xf32>, vector<2x32xf32> -> vector<2x512xf32>
    %c0_163 = arith.constant 0 : index
    %c1_164 = arith.constant 1 : index
    %c0_165 = arith.constant 0 : index
    %103 = vector.load %arg17[%c0_163, %c1_164, %c0_165] : memref<2x9x512xf32, #tpu.memory_space<vmem>>, vector<2x1x512xf32>
    %104 = vector.shape_cast %103 : vector<2x1x512xf32> to vector<2x512xf32>
    %105 = vector.shape_cast %102 : vector<2x512xf32> to vector<2x1x512xf32>
    tpu.vector_store %arg17[%c0_163, %c1_164, %c0_165], %105 {strides = array<i32>} : memref<2x9x512xf32, #tpu.memory_space<vmem>>, vector<2x1x512xf32>,
    %c0_166 = arith.constant 0 : index
    %c0_167 = arith.constant 0 : index
    %c4_168 = arith.constant 4 : index
    %c0_169 = arith.constant 0 : index
    %106 = vector.load %arg15[%c0_166, %c0_167, %c4_168, %c0_169] : memref<2x8x8x32xf32, #tpu.memory_space<vmem>>, vector<2x1x1x32xf32>
    %107 = vector.shape_cast %106 : vector<2x1x1x32xf32> to vector<2x32xf32>
    %c0_170 = arith.constant 0 : index
    %c0_171 = arith.constant 0 : index
    %c5_172 = arith.constant 5 : index
    %c0_173 = arith.constant 0 : index
    %108 = vector.load %arg15[%c0_170, %c0_171, %c5_172, %c0_173] : memref<2x8x8x32xf32, #tpu.memory_space<vmem>>, vector<2x1x1x32xf32>
    %109 = vector.shape_cast %108 : vector<2x1x1x32xf32> to vector<2x32xf32>
    %c0_174 = arith.constant 0 : index
    %c0_175 = arith.constant 0 : index
    %c6 = arith.constant 6 : index
    %c0_176 = arith.constant 0 : index
    %110 = vector.load %arg15[%c0_174, %c0_175, %c6, %c0_176] : memref<2x8x8x32xf32, #tpu.memory_space<vmem>>, vector<2x1x1x32xf32>
    %111 = vector.shape_cast %110 : vector<2x1x1x32xf32> to vector<2x32xf32>
    %c0_177 = arith.constant 0 : index
    %c0_178 = arith.constant 0 : index
    %c7 = arith.constant 7 : index
    %c0_179 = arith.constant 0 : index
    %112 = vector.load %arg15[%c0_177, %c0_178, %c7, %c0_179] : memref<2x8x8x32xf32, #tpu.memory_space<vmem>>, vector<2x1x1x32xf32>
    %113 = vector.shape_cast %112 : vector<2x1x1x32xf32> to vector<2x32xf32>
    %c0_180 = arith.constant 0 : index
    %c1_181 = arith.constant 1 : index
    %c4_182 = arith.constant 4 : index
    %c0_183 = arith.constant 0 : index
    %114 = vector.load %arg15[%c0_180, %c1_181, %c4_182, %c0_183] : memref<2x8x8x32xf32, #tpu.memory_space<vmem>>, vector<2x1x1x32xf32>
    %115 = vector.shape_cast %114 : vector<2x1x1x32xf32> to vector<2x32xf32>
    %c0_184 = arith.constant 0 : index
    %c1_185 = arith.constant 1 : index
    %c5_186 = arith.constant 5 : index
    %c0_187 = arith.constant 0 : index
    %116 = vector.load %arg15[%c0_184, %c1_185, %c5_186, %c0_187] : memref<2x8x8x32xf32, #tpu.memory_space<vmem>>, vector<2x1x1x32xf32>
    %117 = vector.shape_cast %116 : vector<2x1x1x32xf32> to vector<2x32xf32>
    %c0_188 = arith.constant 0 : index
    %c1_189 = arith.constant 1 : index
    %c6_190 = arith.constant 6 : index
    %c0_191 = arith.constant 0 : index
    %118 = vector.load %arg15[%c0_188, %c1_189, %c6_190, %c0_191] : memref<2x8x8x32xf32, #tpu.memory_space<vmem>>, vector<2x1x1x32xf32>
    %119 = vector.shape_cast %118 : vector<2x1x1x32xf32> to vector<2x32xf32>
    %c0_192 = arith.constant 0 : index
    %c1_193 = arith.constant 1 : index
    %c7_194 = arith.constant 7 : index
    %c0_195 = arith.constant 0 : index
    %120 = vector.load %arg15[%c0_192, %c1_193, %c7_194, %c0_195] : memref<2x8x8x32xf32, #tpu.memory_space<vmem>>, vector<2x1x1x32xf32>
    %121 = vector.shape_cast %120 : vector<2x1x1x32xf32> to vector<2x32xf32>
    %c0_196 = arith.constant 0 : index
    %c2_197 = arith.constant 2 : index
    %c4_198 = arith.constant 4 : index
    %c0_199 = arith.constant 0 : index
    %122 = vector.load %arg15[%c0_196, %c2_197, %c4_198, %c0_199] : memref<2x8x8x32xf32, #tpu.memory_space<vmem>>, vector<2x1x1x32xf32>
    %123 = vector.shape_cast %122 : vector<2x1x1x32xf32> to vector<2x32xf32>
    %c0_200 = arith.constant 0 : index
    %c2_201 = arith.constant 2 : index
    %c5_202 = arith.constant 5 : index
    %c0_203 = arith.constant 0 : index
    %124 = vector.load %arg15[%c0_200, %c2_201, %c5_202, %c0_203] : memref<2x8x8x32xf32, #tpu.memory_space<vmem>>, vector<2x1x1x32xf32>
    %125 = vector.shape_cast %124 : vector<2x1x1x32xf32> to vector<2x32xf32>
    %c0_204 = arith.constant 0 : index
    %c2_205 = arith.constant 2 : index
    %c6_206 = arith.constant 6 : index
    %c0_207 = arith.constant 0 : index
    %126 = vector.load %arg15[%c0_204, %c2_205, %c6_206, %c0_207] : memref<2x8x8x32xf32, #tpu.memory_space<vmem>>, vector<2x1x1x32xf32>
    %127 = vector.shape_cast %126 : vector<2x1x1x32xf32> to vector<2x32xf32>
    %c0_208 = arith.constant 0 : index
    %c2_209 = arith.constant 2 : index
    %c7_210 = arith.constant 7 : index
    %c0_211 = arith.constant 0 : index
    %128 = vector.load %arg15[%c0_208, %c2_209, %c7_210, %c0_211] : memref<2x8x8x32xf32, #tpu.memory_space<vmem>>, vector<2x1x1x32xf32>
    %129 = vector.shape_cast %128 : vector<2x1x1x32xf32> to vector<2x32xf32>
    %c0_212 = arith.constant 0 : index
    %c3_213 = arith.constant 3 : index
    %c4_214 = arith.constant 4 : index
    %c0_215 = arith.constant 0 : index
    %130 = vector.load %arg15[%c0_212, %c3_213, %c4_214, %c0_215] : memref<2x8x8x32xf32, #tpu.memory_space<vmem>>, vector<2x1x1x32xf32>
    %131 = vector.shape_cast %130 : vector<2x1x1x32xf32> to vector<2x32xf32>
    %c0_216 = arith.constant 0 : index
    %c3_217 = arith.constant 3 : index
    %c5_218 = arith.constant 5 : index
    %c0_219 = arith.constant 0 : index
    %132 = vector.load %arg15[%c0_216, %c3_217, %c5_218, %c0_219] : memref<2x8x8x32xf32, #tpu.memory_space<vmem>>, vector<2x1x1x32xf32>
    %133 = vector.shape_cast %132 : vector<2x1x1x32xf32> to vector<2x32xf32>
    %c0_220 = arith.constant 0 : index
    %c3_221 = arith.constant 3 : index
    %c6_222 = arith.constant 6 : index
    %c0_223 = arith.constant 0 : index
    %134 = vector.load %arg15[%c0_220, %c3_221, %c6_222, %c0_223] : memref<2x8x8x32xf32, #tpu.memory_space<vmem>>, vector<2x1x1x32xf32>
    %135 = vector.shape_cast %134 : vector<2x1x1x32xf32> to vector<2x32xf32>
    %c0_224 = arith.constant 0 : index
    %c3_225 = arith.constant 3 : index
    %c7_226 = arith.constant 7 : index
    %c0_227 = arith.constant 0 : index
    %136 = vector.load %arg15[%c0_224, %c3_225, %c7_226, %c0_227] : memref<2x8x8x32xf32, #tpu.memory_space<vmem>>, vector<2x1x1x32xf32>
    %137 = vector.shape_cast %136 : vector<2x1x1x32xf32> to vector<2x32xf32>
    %138 = tpu.concatenate %107, %109, %111, %113, %115, %117, %119, %121, %123, %125, %127, %129, %131, %133, %135, %137 in 1 : vector<2x32xf32>, vector<2x32xf32>, vector<2x32xf32>, vector<2x32xf32>, vector<2x32xf32>, vector<2x32xf32>, vector<2x32xf32>, vector<2x32xf32>, vector<2x32xf32>, vector<2x32xf32>, vector<2x32xf32>, vector<2x32xf32>, vector<2x32xf32>, vector<2x32xf32>, vector<2x32xf32>, vector<2x32xf32> -> vector<2x512xf32>
    %c0_228 = arith.constant 0 : index
    %c2_229 = arith.constant 2 : index
    %c0_230 = arith.constant 0 : index
    %139 = vector.load %arg17[%c0_228, %c2_229, %c0_230] : memref<2x9x512xf32, #tpu.memory_space<vmem>>, vector<2x1x512xf32>
    %140 = vector.shape_cast %139 : vector<2x1x512xf32> to vector<2x512xf32>
    %141 = vector.shape_cast %138 : vector<2x512xf32> to vector<2x1x512xf32>
    tpu.vector_store %arg17[%c0_228, %c2_229, %c0_230], %141 {strides = array<i32>} : memref<2x9x512xf32, #tpu.memory_space<vmem>>, vector<2x1x512xf32>,
    %c0_231 = arith.constant 0 : index
    %c2_232 = arith.constant 2 : index
    %c0_233 = arith.constant 0 : index
    %c0_234 = arith.constant 0 : index
    %142 = vector.load %arg15[%c0_231, %c2_232, %c0_233, %c0_234] : memref<2x8x8x32xf32, #tpu.memory_space<vmem>>, vector<2x1x1x32xf32>
    %143 = vector.shape_cast %142 : vector<2x1x1x32xf32> to vector<2x32xf32>
    %c0_235 = arith.constant 0 : index
    %c2_236 = arith.constant 2 : index
    %c1_237 = arith.constant 1 : index
    %c0_238 = arith.constant 0 : index
    %144 = vector.load %arg15[%c0_235, %c2_236, %c1_237, %c0_238] : memref<2x8x8x32xf32, #tpu.memory_space<vmem>>, vector<2x1x1x32xf32>
    %145 = vector.shape_cast %144 : vector<2x1x1x32xf32> to vector<2x32xf32>
    %c0_239 = arith.constant 0 : index
    %c2_240 = arith.constant 2 : index
    %c2_241 = arith.constant 2 : index
    %c0_242 = arith.constant 0 : index
    %146 = vector.load %arg15[%c0_239, %c2_240, %c2_241, %c0_242] : memref<2x8x8x32xf32, #tpu.memory_space<vmem>>, vector<2x1x1x32xf32>
    %147 = vector.shape_cast %146 : vector<2x1x1x32xf32> to vector<2x32xf32>
    %c0_243 = arith.constant 0 : index
    %c2_244 = arith.constant 2 : index
    %c3_245 = arith.constant 3 : index
    %c0_246 = arith.constant 0 : index
    %148 = vector.load %arg15[%c0_243, %c2_244, %c3_245, %c0_246] : memref<2x8x8x32xf32, #tpu.memory_space<vmem>>, vector<2x1x1x32xf32>
    %149 = vector.shape_cast %148 : vector<2x1x1x32xf32> to vector<2x32xf32>
    %c0_247 = arith.constant 0 : index
    %c3_248 = arith.constant 3 : index
    %c0_249 = arith.constant 0 : index
    %c0_250 = arith.constant 0 : index
    %150 = vector.load %arg15[%c0_247, %c3_248, %c0_249, %c0_250] : memref<2x8x8x32xf32, #tpu.memory_space<vmem>>, vector<2x1x1x32xf32>
    %151 = vector.shape_cast %150 : vector<2x1x1x32xf32> to vector<2x32xf32>
    %c0_251 = arith.constant 0 : index
    %c3_252 = arith.constant 3 : index
    %c1_253 = arith.constant 1 : index
    %c0_254 = arith.constant 0 : index
    %152 = vector.load %arg15[%c0_251, %c3_252, %c1_253, %c0_254] : memref<2x8x8x32xf32, #tpu.memory_space<vmem>>, vector<2x1x1x32xf32>
    %153 = vector.shape_cast %152 : vector<2x1x1x32xf32> to vector<2x32xf32>
    %c0_255 = arith.constant 0 : index
    %c3_256 = arith.constant 3 : index
    %c2_257 = arith.constant 2 : index
    %c0_258 = arith.constant 0 : index
    %154 = vector.load %arg15[%c0_255, %c3_256, %c2_257, %c0_258] : memref<2x8x8x32xf32, #tpu.memory_space<vmem>>, vector<2x1x1x32xf32>
    %155 = vector.shape_cast %154 : vector<2x1x1x32xf32> to vector<2x32xf32>
    %c0_259 = arith.constant 0 : index
    %c3_260 = arith.constant 3 : index
    %c3_261 = arith.constant 3 : index
    %c0_262 = arith.constant 0 : index
    %156 = vector.load %arg15[%c0_259, %c3_260, %c3_261, %c0_262] : memref<2x8x8x32xf32, #tpu.memory_space<vmem>>, vector<2x1x1x32xf32>
    %157 = vector.shape_cast %156 : vector<2x1x1x32xf32> to vector<2x32xf32>
    %c0_263 = arith.constant 0 : index
    %c4_264 = arith.constant 4 : index
    %c0_265 = arith.constant 0 : index
    %c0_266 = arith.constant 0 : index
    %158 = vector.load %arg15[%c0_263, %c4_264, %c0_265, %c0_266] : memref<2x8x8x32xf32, #tpu.memory_space<vmem>>, vector<2x1x1x32xf32>
    %159 = vector.shape_cast %158 : vector<2x1x1x32xf32> to vector<2x32xf32>
    %c0_267 = arith.constant 0 : index
    %c4_268 = arith.constant 4 : index
    %c1_269 = arith.constant 1 : index
    %c0_270 = arith.constant 0 : index
    %160 = vector.load %arg15[%c0_267, %c4_268, %c1_269, %c0_270] : memref<2x8x8x32xf32, #tpu.memory_space<vmem>>, vector<2x1x1x32xf32>
    %161 = vector.shape_cast %160 : vector<2x1x1x32xf32> to vector<2x32xf32>
    %c0_271 = arith.constant 0 : index
    %c4_272 = arith.constant 4 : index
    %c2_273 = arith.constant 2 : index
    %c0_274 = arith.constant 0 : index
    %162 = vector.load %arg15[%c0_271, %c4_272, %c2_273, %c0_274] : memref<2x8x8x32xf32, #tpu.memory_space<vmem>>, vector<2x1x1x32xf32>
    %163 = vector.shape_cast %162 : vector<2x1x1x32xf32> to vector<2x32xf32>
    %c0_275 = arith.constant 0 : index
    %c4_276 = arith.constant 4 : index
    %c3_277 = arith.constant 3 : index
    %c0_278 = arith.constant 0 : index
    %164 = vector.load %arg15[%c0_275, %c4_276, %c3_277, %c0_278] : memref<2x8x8x32xf32, #tpu.memory_space<vmem>>, vector<2x1x1x32xf32>
    %165 = vector.shape_cast %164 : vector<2x1x1x32xf32> to vector<2x32xf32>
    %c0_279 = arith.constant 0 : index
    %c5_280 = arith.constant 5 : index
    %c0_281 = arith.constant 0 : index
    %c0_282 = arith.constant 0 : index
    %166 = vector.load %arg15[%c0_279, %c5_280, %c0_281, %c0_282] : memref<2x8x8x32xf32, #tpu.memory_space<vmem>>, vector<2x1x1x32xf32>
    %167 = vector.shape_cast %166 : vector<2x1x1x32xf32> to vector<2x32xf32>
    %c0_283 = arith.constant 0 : index
    %c5_284 = arith.constant 5 : index
    %c1_285 = arith.constant 1 : index
    %c0_286 = arith.constant 0 : index
    %168 = vector.load %arg15[%c0_283, %c5_284, %c1_285, %c0_286] : memref<2x8x8x32xf32, #tpu.memory_space<vmem>>, vector<2x1x1x32xf32>
    %169 = vector.shape_cast %168 : vector<2x1x1x32xf32> to vector<2x32xf32>
    %c0_287 = arith.constant 0 : index
    %c5_288 = arith.constant 5 : index
    %c2_289 = arith.constant 2 : index
    %c0_290 = arith.constant 0 : index
    %170 = vector.load %arg15[%c0_287, %c5_288, %c2_289, %c0_290] : memref<2x8x8x32xf32, #tpu.memory_space<vmem>>, vector<2x1x1x32xf32>
    %171 = vector.shape_cast %170 : vector<2x1x1x32xf32> to vector<2x32xf32>
    %c0_291 = arith.constant 0 : index
    %c5_292 = arith.constant 5 : index
    %c3_293 = arith.constant 3 : index
    %c0_294 = arith.constant 0 : index
    %172 = vector.load %arg15[%c0_291, %c5_292, %c3_293, %c0_294] : memref<2x8x8x32xf32, #tpu.memory_space<vmem>>, vector<2x1x1x32xf32>
    %173 = vector.shape_cast %172 : vector<2x1x1x32xf32> to vector<2x32xf32>
    %174 = tpu.concatenate %143, %145, %147, %149, %151, %153, %155, %157, %159, %161, %163, %165, %167, %169, %171, %173 in 1 : vector<2x32xf32>, vector<2x32xf32>, vector<2x32xf32>, vector<2x32xf32>, vector<2x32xf32>, vector<2x32xf32>, vector<2x32xf32>, vector<2x32xf32>, vector<2x32xf32>, vector<2x32xf32>, vector<2x32xf32>, vector<2x32xf32>, vector<2x32xf32>, vector<2x32xf32>, vector<2x32xf32>, vector<2x32xf32> -> vector<2x512xf32>
    %c0_295 = arith.constant 0 : index
    %c3_296 = arith.constant 3 : index
    %c0_297 = arith.constant 0 : index
    %175 = vector.load %arg17[%c0_295, %c3_296, %c0_297] : memref<2x9x512xf32, #tpu.memory_space<vmem>>, vector<2x1x512xf32>
    %176 = vector.shape_cast %175 : vector<2x1x512xf32> to vector<2x512xf32>
    %177 = vector.shape_cast %174 : vector<2x512xf32> to vector<2x1x512xf32>
    tpu.vector_store %arg17[%c0_295, %c3_296, %c0_297], %177 {strides = array<i32>} : memref<2x9x512xf32, #tpu.memory_space<vmem>>, vector<2x1x512xf32>,
    %c0_298 = arith.constant 0 : index
    %c2_299 = arith.constant 2 : index
    %c2_300 = arith.constant 2 : index
    %c0_301 = arith.constant 0 : index
    %178 = vector.load %arg15[%c0_298, %c2_299, %c2_300, %c0_301] : memref<2x8x8x32xf32, #tpu.memory_space<vmem>>, vector<2x1x1x32xf32>
    %179 = vector.shape_cast %178 : vector<2x1x1x32xf32> to vector<2x32xf32>
    %c0_302 = arith.constant 0 : index
    %c2_303 = arith.constant 2 : index
    %c3_304 = arith.constant 3 : index
    %c0_305 = arith.constant 0 : index
    %180 = vector.load %arg15[%c0_302, %c2_303, %c3_304, %c0_305] : memref<2x8x8x32xf32, #tpu.memory_space<vmem>>, vector<2x1x1x32xf32>
    %181 = vector.shape_cast %180 : vector<2x1x1x32xf32> to vector<2x32xf32>
    %c0_306 = arith.constant 0 : index
    %c2_307 = arith.constant 2 : index
    %c4_308 = arith.constant 4 : index
    %c0_309 = arith.constant 0 : index
    %182 = vector.load %arg15[%c0_306, %c2_307, %c4_308, %c0_309] : memref<2x8x8x32xf32, #tpu.memory_space<vmem>>, vector<2x1x1x32xf32>
    %183 = vector.shape_cast %182 : vector<2x1x1x32xf32> to vector<2x32xf32>
    %c0_310 = arith.constant 0 : index
    %c2_311 = arith.constant 2 : index
    %c5_312 = arith.constant 5 : index
    %c0_313 = arith.constant 0 : index
    %184 = vector.load %arg15[%c0_310, %c2_311, %c5_312, %c0_313] : memref<2x8x8x32xf32, #tpu.memory_space<vmem>>, vector<2x1x1x32xf32>
    %185 = vector.shape_cast %184 : vector<2x1x1x32xf32> to vector<2x32xf32>
    %c0_314 = arith.constant 0 : index
    %c3_315 = arith.constant 3 : index
    %c2_316 = arith.constant 2 : index
    %c0_317 = arith.constant 0 : index
    %186 = vector.load %arg15[%c0_314, %c3_315, %c2_316, %c0_317] : memref<2x8x8x32xf32, #tpu.memory_space<vmem>>, vector<2x1x1x32xf32>
    %187 = vector.shape_cast %186 : vector<2x1x1x32xf32> to vector<2x32xf32>
    %c0_318 = arith.constant 0 : index
    %c3_319 = arith.constant 3 : index
    %c3_320 = arith.constant 3 : index
    %c0_321 = arith.constant 0 : index
    %188 = vector.load %arg15[%c0_318, %c3_319, %c3_320, %c0_321] : memref<2x8x8x32xf32, #tpu.memory_space<vmem>>, vector<2x1x1x32xf32>
    %189 = vector.shape_cast %188 : vector<2x1x1x32xf32> to vector<2x32xf32>
    %c0_322 = arith.constant 0 : index
    %c3_323 = arith.constant 3 : index
    %c4_324 = arith.constant 4 : index
    %c0_325 = arith.constant 0 : index
    %190 = vector.load %arg15[%c0_322, %c3_323, %c4_324, %c0_325] : memref<2x8x8x32xf32, #tpu.memory_space<vmem>>, vector<2x1x1x32xf32>
    %191 = vector.shape_cast %190 : vector<2x1x1x32xf32> to vector<2x32xf32>
    %c0_326 = arith.constant 0 : index
    %c3_327 = arith.constant 3 : index
    %c5_328 = arith.constant 5 : index
    %c0_329 = arith.constant 0 : index
    %192 = vector.load %arg15[%c0_326, %c3_327, %c5_328, %c0_329] : memref<2x8x8x32xf32, #tpu.memory_space<vmem>>, vector<2x1x1x32xf32>
    %193 = vector.shape_cast %192 : vector<2x1x1x32xf32> to vector<2x32xf32>
    %c0_330 = arith.constant 0 : index
    %c4_331 = arith.constant 4 : index
    %c2_332 = arith.constant 2 : index
    %c0_333 = arith.constant 0 : index
    %194 = vector.load %arg15[%c0_330, %c4_331, %c2_332, %c0_333] : memref<2x8x8x32xf32, #tpu.memory_space<vmem>>, vector<2x1x1x32xf32>
    %195 = vector.shape_cast %194 : vector<2x1x1x32xf32> to vector<2x32xf32>
    %c0_334 = arith.constant 0 : index
    %c4_335 = arith.constant 4 : index
    %c3_336 = arith.constant 3 : index
    %c0_337 = arith.constant 0 : index
    %196 = vector.load %arg15[%c0_334, %c4_335, %c3_336, %c0_337] : memref<2x8x8x32xf32, #tpu.memory_space<vmem>>, vector<2x1x1x32xf32>
    %197 = vector.shape_cast %196 : vector<2x1x1x32xf32> to vector<2x32xf32>
    %c0_338 = arith.constant 0 : index
    %c4_339 = arith.constant 4 : index
    %c4_340 = arith.constant 4 : index
    %c0_341 = arith.constant 0 : index
    %198 = vector.load %arg15[%c0_338, %c4_339, %c4_340, %c0_341] : memref<2x8x8x32xf32, #tpu.memory_space<vmem>>, vector<2x1x1x32xf32>
    %199 = vector.shape_cast %198 : vector<2x1x1x32xf32> to vector<2x32xf32>
    %c0_342 = arith.constant 0 : index
    %c4_343 = arith.constant 4 : index
    %c5_344 = arith.constant 5 : index
    %c0_345 = arith.constant 0 : index
    %200 = vector.load %arg15[%c0_342, %c4_343, %c5_344, %c0_345] : memref<2x8x8x32xf32, #tpu.memory_space<vmem>>, vector<2x1x1x32xf32>
    %201 = vector.shape_cast %200 : vector<2x1x1x32xf32> to vector<2x32xf32>
    %c0_346 = arith.constant 0 : index
    %c5_347 = arith.constant 5 : index
    %c2_348 = arith.constant 2 : index
    %c0_349 = arith.constant 0 : index
    %202 = vector.load %arg15[%c0_346, %c5_347, %c2_348, %c0_349] : memref<2x8x8x32xf32, #tpu.memory_space<vmem>>, vector<2x1x1x32xf32>
    %203 = vector.shape_cast %202 : vector<2x1x1x32xf32> to vector<2x32xf32>
    %c0_350 = arith.constant 0 : index
    %c5_351 = arith.constant 5 : index
    %c3_352 = arith.constant 3 : index
    %c0_353 = arith.constant 0 : index
    %204 = vector.load %arg15[%c0_350, %c5_351, %c3_352, %c0_353] : memref<2x8x8x32xf32, #tpu.memory_space<vmem>>, vector<2x1x1x32xf32>
    %205 = vector.shape_cast %204 : vector<2x1x1x32xf32> to vector<2x32xf32>
    %c0_354 = arith.constant 0 : index
    %c5_355 = arith.constant 5 : index
    %c4_356 = arith.constant 4 : index
    %c0_357 = arith.constant 0 : index
    %206 = vector.load %arg15[%c0_354, %c5_355, %c4_356, %c0_357] : memref<2x8x8x32xf32, #tpu.memory_space<vmem>>, vector<2x1x1x32xf32>
    %207 = vector.shape_cast %206 : vector<2x1x1x32xf32> to vector<2x32xf32>
    %c0_358 = arith.constant 0 : index
    %c5_359 = arith.constant 5 : index
    %c5_360 = arith.constant 5 : index
    %c0_361 = arith.constant 0 : index
    %208 = vector.load %arg15[%c0_358, %c5_359, %c5_360, %c0_361] : memref<2x8x8x32xf32, #tpu.memory_space<vmem>>, vector<2x1x1x32xf32>
    %209 = vector.shape_cast %208 : vector<2x1x1x32xf32> to vector<2x32xf32>
    %210 = tpu.concatenate %179, %181, %183, %185, %187, %189, %191, %193, %195, %197, %199, %201, %203, %205, %207, %209 in 1 : vector<2x32xf32>, vector<2x32xf32>, vector<2x32xf32>, vector<2x32xf32>, vector<2x32xf32>, vector<2x32xf32>, vector<2x32xf32>, vector<2x32xf32>, vector<2x32xf32>, vector<2x32xf32>, vector<2x32xf32>, vector<2x32xf32>, vector<2x32xf32>, vector<2x32xf32>, vector<2x32xf32>, vector<2x32xf32> -> vector<2x512xf32>
    %c0_362 = arith.constant 0 : index
    %c4_363 = arith.constant 4 : index
    %c0_364 = arith.constant 0 : index
    %211 = vector.load %arg17[%c0_362, %c4_363, %c0_364] : memref<2x9x512xf32, #tpu.memory_space<vmem>>, vector<2x1x512xf32>
    %212 = vector.shape_cast %211 : vector<2x1x512xf32> to vector<2x512xf32>
    %213 = vector.shape_cast %210 : vector<2x512xf32> to vector<2x1x512xf32>
    tpu.vector_store %arg17[%c0_362, %c4_363, %c0_364], %213 {strides = array<i32>} : memref<2x9x512xf32, #tpu.memory_space<vmem>>, vector<2x1x512xf32>,
    %c0_365 = arith.constant 0 : index
    %c2_366 = arith.constant 2 : index
    %c4_367 = arith.constant 4 : index
    %c0_368 = arith.constant 0 : index
    %214 = vector.load %arg15[%c0_365, %c2_366, %c4_367, %c0_368] : memref<2x8x8x32xf32, #tpu.memory_space<vmem>>, vector<2x1x1x32xf32>
    %215 = vector.shape_cast %214 : vector<2x1x1x32xf32> to vector<2x32xf32>
    %c0_369 = arith.constant 0 : index
    %c2_370 = arith.constant 2 : index
    %c5_371 = arith.constant 5 : index
    %c0_372 = arith.constant 0 : index
    %216 = vector.load %arg15[%c0_369, %c2_370, %c5_371, %c0_372] : memref<2x8x8x32xf32, #tpu.memory_space<vmem>>, vector<2x1x1x32xf32>
    %217 = vector.shape_cast %216 : vector<2x1x1x32xf32> to vector<2x32xf32>
    %c0_373 = arith.constant 0 : index
    %c2_374 = arith.constant 2 : index
    %c6_375 = arith.constant 6 : index
    %c0_376 = arith.constant 0 : index
    %218 = vector.load %arg15[%c0_373, %c2_374, %c6_375, %c0_376] : memref<2x8x8x32xf32, #tpu.memory_space<vmem>>, vector<2x1x1x32xf32>
    %219 = vector.shape_cast %218 : vector<2x1x1x32xf32> to vector<2x32xf32>
    %c0_377 = arith.constant 0 : index
    %c2_378 = arith.constant 2 : index
    %c7_379 = arith.constant 7 : index
    %c0_380 = arith.constant 0 : index
    %220 = vector.load %arg15[%c0_377, %c2_378, %c7_379, %c0_380] : memref<2x8x8x32xf32, #tpu.memory_space<vmem>>, vector<2x1x1x32xf32>
    %221 = vector.shape_cast %220 : vector<2x1x1x32xf32> to vector<2x32xf32>
    %c0_381 = arith.constant 0 : index
    %c3_382 = arith.constant 3 : index
    %c4_383 = arith.constant 4 : index
    %c0_384 = arith.constant 0 : index
    %222 = vector.load %arg15[%c0_381, %c3_382, %c4_383, %c0_384] : memref<2x8x8x32xf32, #tpu.memory_space<vmem>>, vector<2x1x1x32xf32>
    %223 = vector.shape_cast %222 : vector<2x1x1x32xf32> to vector<2x32xf32>
    %c0_385 = arith.constant 0 : index
    %c3_386 = arith.constant 3 : index
    %c5_387 = arith.constant 5 : index
    %c0_388 = arith.constant 0 : index
    %224 = vector.load %arg15[%c0_385, %c3_386, %c5_387, %c0_388] : memref<2x8x8x32xf32, #tpu.memory_space<vmem>>, vector<2x1x1x32xf32>
    %225 = vector.shape_cast %224 : vector<2x1x1x32xf32> to vector<2x32xf32>
    %c0_389 = arith.constant 0 : index
    %c3_390 = arith.constant 3 : index
    %c6_391 = arith.constant 6 : index
    %c0_392 = arith.constant 0 : index
    %226 = vector.load %arg15[%c0_389, %c3_390, %c6_391, %c0_392] : memref<2x8x8x32xf32, #tpu.memory_space<vmem>>, vector<2x1x1x32xf32>
    %227 = vector.shape_cast %226 : vector<2x1x1x32xf32> to vector<2x32xf32>
    %c0_393 = arith.constant 0 : index
    %c3_394 = arith.constant 3 : index
    %c7_395 = arith.constant 7 : index
    %c0_396 = arith.constant 0 : index
    %228 = vector.load %arg15[%c0_393, %c3_394, %c7_395, %c0_396] : memref<2x8x8x32xf32, #tpu.memory_space<vmem>>, vector<2x1x1x32xf32>
    %229 = vector.shape_cast %228 : vector<2x1x1x32xf32> to vector<2x32xf32>
    %c0_397 = arith.constant 0 : index
    %c4_398 = arith.constant 4 : index
    %c4_399 = arith.constant 4 : index
    %c0_400 = arith.constant 0 : index
    %230 = vector.load %arg15[%c0_397, %c4_398, %c4_399, %c0_400] : memref<2x8x8x32xf32, #tpu.memory_space<vmem>>, vector<2x1x1x32xf32>
    %231 = vector.shape_cast %230 : vector<2x1x1x32xf32> to vector<2x32xf32>
    %c0_401 = arith.constant 0 : index
    %c4_402 = arith.constant 4 : index
    %c5_403 = arith.constant 5 : index
    %c0_404 = arith.constant 0 : index
    %232 = vector.load %arg15[%c0_401, %c4_402, %c5_403, %c0_404] : memref<2x8x8x32xf32, #tpu.memory_space<vmem>>, vector<2x1x1x32xf32>
    %233 = vector.shape_cast %232 : vector<2x1x1x32xf32> to vector<2x32xf32>
    %c0_405 = arith.constant 0 : index
    %c4_406 = arith.constant 4 : index
    %c6_407 = arith.constant 6 : index
    %c0_408 = arith.constant 0 : index
    %234 = vector.load %arg15[%c0_405, %c4_406, %c6_407, %c0_408] : memref<2x8x8x32xf32, #tpu.memory_space<vmem>>, vector<2x1x1x32xf32>
    %235 = vector.shape_cast %234 : vector<2x1x1x32xf32> to vector<2x32xf32>
    %c0_409 = arith.constant 0 : index
    %c4_410 = arith.constant 4 : index
    %c7_411 = arith.constant 7 : index
    %c0_412 = arith.constant 0 : index
    %236 = vector.load %arg15[%c0_409, %c4_410, %c7_411, %c0_412] : memref<2x8x8x32xf32, #tpu.memory_space<vmem>>, vector<2x1x1x32xf32>
    %237 = vector.shape_cast %236 : vector<2x1x1x32xf32> to vector<2x32xf32>
    %c0_413 = arith.constant 0 : index
    %c5_414 = arith.constant 5 : index
    %c4_415 = arith.constant 4 : index
    %c0_416 = arith.constant 0 : index
    %238 = vector.load %arg15[%c0_413, %c5_414, %c4_415, %c0_416] : memref<2x8x8x32xf32, #tpu.memory_space<vmem>>, vector<2x1x1x32xf32>
    %239 = vector.shape_cast %238 : vector<2x1x1x32xf32> to vector<2x32xf32>
    %c0_417 = arith.constant 0 : index
    %c5_418 = arith.constant 5 : index
    %c5_419 = arith.constant 5 : index
    %c0_420 = arith.constant 0 : index
    %240 = vector.load %arg15[%c0_417, %c5_418, %c5_419, %c0_420] : memref<2x8x8x32xf32, #tpu.memory_space<vmem>>, vector<2x1x1x32xf32>
    %241 = vector.shape_cast %240 : vector<2x1x1x32xf32> to vector<2x32xf32>
    %c0_421 = arith.constant 0 : index
    %c5_422 = arith.constant 5 : index
    %c6_423 = arith.constant 6 : index
    %c0_424 = arith.constant 0 : index
    %242 = vector.load %arg15[%c0_421, %c5_422, %c6_423, %c0_424] : memref<2x8x8x32xf32, #tpu.memory_space<vmem>>, vector<2x1x1x32xf32>
    %243 = vector.shape_cast %242 : vector<2x1x1x32xf32> to vector<2x32xf32>
    %c0_425 = arith.constant 0 : index
    %c5_426 = arith.constant 5 : index
    %c7_427 = arith.constant 7 : index
    %c0_428 = arith.constant 0 : index
    %244 = vector.load %arg15[%c0_425, %c5_426, %c7_427, %c0_428] : memref<2x8x8x32xf32, #tpu.memory_space<vmem>>, vector<2x1x1x32xf32>
    %245 = vector.shape_cast %244 : vector<2x1x1x32xf32> to vector<2x32xf32>
    %246 = tpu.concatenate %215, %217, %219, %221, %223, %225, %227, %229, %231, %233, %235, %237, %239, %241, %243, %245 in 1 : vector<2x32xf32>, vector<2x32xf32>, vector<2x32xf32>, vector<2x32xf32>, vector<2x32xf32>, vector<2x32xf32>, vector<2x32xf32>, vector<2x32xf32>, vector<2x32xf32>, vector<2x32xf32>, vector<2x32xf32>, vector<2x32xf32>, vector<2x32xf32>, vector<2x32xf32>, vector<2x32xf32>, vector<2x32xf32> -> vector<2x512xf32>
    %c0_429 = arith.constant 0 : index
    %c5_430 = arith.constant 5 : index
    %c0_431 = arith.constant 0 : index
    %247 = vector.load %arg17[%c0_429, %c5_430, %c0_431] : memref<2x9x512xf32, #tpu.memory_space<vmem>>, vector<2x1x512xf32>
    %248 = vector.shape_cast %247 : vector<2x1x512xf32> to vector<2x512xf32>
    %249 = vector.shape_cast %246 : vector<2x512xf32> to vector<2x1x512xf32>
    tpu.vector_store %arg17[%c0_429, %c5_430, %c0_431], %249 {strides = array<i32>} : memref<2x9x512xf32, #tpu.memory_space<vmem>>, vector<2x1x512xf32>,
    %c0_432 = arith.constant 0 : index
    %c4_433 = arith.constant 4 : index
    %c0_434 = arith.constant 0 : index
    %c0_435 = arith.constant 0 : index
    %250 = vector.load %arg15[%c0_432, %c4_433, %c0_434, %c0_435] : memref<2x8x8x32xf32, #tpu.memory_space<vmem>>, vector<2x1x1x32xf32>
    %251 = vector.shape_cast %250 : vector<2x1x1x32xf32> to vector<2x32xf32>
    %c0_436 = arith.constant 0 : index
    %c4_437 = arith.constant 4 : index
    %c1_438 = arith.constant 1 : index
    %c0_439 = arith.constant 0 : index
    %252 = vector.load %arg15[%c0_436, %c4_437, %c1_438, %c0_439] : memref<2x8x8x32xf32, #tpu.memory_space<vmem>>, vector<2x1x1x32xf32>
    %253 = vector.shape_cast %252 : vector<2x1x1x32xf32> to vector<2x32xf32>
    %c0_440 = arith.constant 0 : index
    %c4_441 = arith.constant 4 : index
    %c2_442 = arith.constant 2 : index
    %c0_443 = arith.constant 0 : index
    %254 = vector.load %arg15[%c0_440, %c4_441, %c2_442, %c0_443] : memref<2x8x8x32xf32, #tpu.memory_space<vmem>>, vector<2x1x1x32xf32>
    %255 = vector.shape_cast %254 : vector<2x1x1x32xf32> to vector<2x32xf32>
    %c0_444 = arith.constant 0 : index
    %c4_445 = arith.constant 4 : index
    %c3_446 = arith.constant 3 : index
    %c0_447 = arith.constant 0 : index
    %256 = vector.load %arg15[%c0_444, %c4_445, %c3_446, %c0_447] : memref<2x8x8x32xf32, #tpu.memory_space<vmem>>, vector<2x1x1x32xf32>
    %257 = vector.shape_cast %256 : vector<2x1x1x32xf32> to vector<2x32xf32>
    %c0_448 = arith.constant 0 : index
    %c5_449 = arith.constant 5 : index
    %c0_450 = arith.constant 0 : index
    %c0_451 = arith.constant 0 : index
    %258 = vector.load %arg15[%c0_448, %c5_449, %c0_450, %c0_451] : memref<2x8x8x32xf32, #tpu.memory_space<vmem>>, vector<2x1x1x32xf32>
    %259 = vector.shape_cast %258 : vector<2x1x1x32xf32> to vector<2x32xf32>
    %c0_452 = arith.constant 0 : index
    %c5_453 = arith.constant 5 : index
    %c1_454 = arith.constant 1 : index
    %c0_455 = arith.constant 0 : index
    %260 = vector.load %arg15[%c0_452, %c5_453, %c1_454, %c0_455] : memref<2x8x8x32xf32, #tpu.memory_space<vmem>>, vector<2x1x1x32xf32>
    %261 = vector.shape_cast %260 : vector<2x1x1x32xf32> to vector<2x32xf32>
    %c0_456 = arith.constant 0 : index
    %c5_457 = arith.constant 5 : index
    %c2_458 = arith.constant 2 : index
    %c0_459 = arith.constant 0 : index
    %262 = vector.load %arg15[%c0_456, %c5_457, %c2_458, %c0_459] : memref<2x8x8x32xf32, #tpu.memory_space<vmem>>, vector<2x1x1x32xf32>
    %263 = vector.shape_cast %262 : vector<2x1x1x32xf32> to vector<2x32xf32>
    %c0_460 = arith.constant 0 : index
    %c5_461 = arith.constant 5 : index
    %c3_462 = arith.constant 3 : index
    %c0_463 = arith.constant 0 : index
    %264 = vector.load %arg15[%c0_460, %c5_461, %c3_462, %c0_463] : memref<2x8x8x32xf32, #tpu.memory_space<vmem>>, vector<2x1x1x32xf32>
    %265 = vector.shape_cast %264 : vector<2x1x1x32xf32> to vector<2x32xf32>
    %c0_464 = arith.constant 0 : index
    %c6_465 = arith.constant 6 : index
    %c0_466 = arith.constant 0 : index
    %c0_467 = arith.constant 0 : index
    %266 = vector.load %arg15[%c0_464, %c6_465, %c0_466, %c0_467] : memref<2x8x8x32xf32, #tpu.memory_space<vmem>>, vector<2x1x1x32xf32>
    %267 = vector.shape_cast %266 : vector<2x1x1x32xf32> to vector<2x32xf32>
    %c0_468 = arith.constant 0 : index
    %c6_469 = arith.constant 6 : index
    %c1_470 = arith.constant 1 : index
    %c0_471 = arith.constant 0 : index
    %268 = vector.load %arg15[%c0_468, %c6_469, %c1_470, %c0_471] : memref<2x8x8x32xf32, #tpu.memory_space<vmem>>, vector<2x1x1x32xf32>
    %269 = vector.shape_cast %268 : vector<2x1x1x32xf32> to vector<2x32xf32>
    %c0_472 = arith.constant 0 : index
    %c6_473 = arith.constant 6 : index
    %c2_474 = arith.constant 2 : index
    %c0_475 = arith.constant 0 : index
    %270 = vector.load %arg15[%c0_472, %c6_473, %c2_474, %c0_475] : memref<2x8x8x32xf32, #tpu.memory_space<vmem>>, vector<2x1x1x32xf32>
    %271 = vector.shape_cast %270 : vector<2x1x1x32xf32> to vector<2x32xf32>
    %c0_476 = arith.constant 0 : index
    %c6_477 = arith.constant 6 : index
    %c3_478 = arith.constant 3 : index
    %c0_479 = arith.constant 0 : index
    %272 = vector.load %arg15[%c0_476, %c6_477, %c3_478, %c0_479] : memref<2x8x8x32xf32, #tpu.memory_space<vmem>>, vector<2x1x1x32xf32>
    %273 = vector.shape_cast %272 : vector<2x1x1x32xf32> to vector<2x32xf32>
    %c0_480 = arith.constant 0 : index
    %c7_481 = arith.constant 7 : index
    %c0_482 = arith.constant 0 : index
    %c0_483 = arith.constant 0 : index
    %274 = vector.load %arg15[%c0_480, %c7_481, %c0_482, %c0_483] : memref<2x8x8x32xf32, #tpu.memory_space<vmem>>, vector<2x1x1x32xf32>
    %275 = vector.shape_cast %274 : vector<2x1x1x32xf32> to vector<2x32xf32>
    %c0_484 = arith.constant 0 : index
    %c7_485 = arith.constant 7 : index
    %c1_486 = arith.constant 1 : index
    %c0_487 = arith.constant 0 : index
    %276 = vector.load %arg15[%c0_484, %c7_485, %c1_486, %c0_487] : memref<2x8x8x32xf32, #tpu.memory_space<vmem>>, vector<2x1x1x32xf32>
    %277 = vector.shape_cast %276 : vector<2x1x1x32xf32> to vector<2x32xf32>
    %c0_488 = arith.constant 0 : index
    %c7_489 = arith.constant 7 : index
    %c2_490 = arith.constant 2 : index
    %c0_491 = arith.constant 0 : index
    %278 = vector.load %arg15[%c0_488, %c7_489, %c2_490, %c0_491] : memref<2x8x8x32xf32, #tpu.memory_space<vmem>>, vector<2x1x1x32xf32>
    %279 = vector.shape_cast %278 : vector<2x1x1x32xf32> to vector<2x32xf32>
    %c0_492 = arith.constant 0 : index
    %c7_493 = arith.constant 7 : index
    %c3_494 = arith.constant 3 : index
    %c0_495 = arith.constant 0 : index
    %280 = vector.load %arg15[%c0_492, %c7_493, %c3_494, %c0_495] : memref<2x8x8x32xf32, #tpu.memory_space<vmem>>, vector<2x1x1x32xf32>
    %281 = vector.shape_cast %280 : vector<2x1x1x32xf32> to vector<2x32xf32>
    %282 = tpu.concatenate %251, %253, %255, %257, %259, %261, %263, %265, %267, %269, %271, %273, %275, %277, %279, %281 in 1 : vector<2x32xf32>, vector<2x32xf32>, vector<2x32xf32>, vector<2x32xf32>, vector<2x32xf32>, vector<2x32xf32>, vector<2x32xf32>, vector<2x32xf32>, vector<2x32xf32>, vector<2x32xf32>, vector<2x32xf32>, vector<2x32xf32>, vector<2x32xf32>, vector<2x32xf32>, vector<2x32xf32>, vector<2x32xf32> -> vector<2x512xf32>
    %c0_496 = arith.constant 0 : index
    %c6_497 = arith.constant 6 : index
    %c0_498 = arith.constant 0 : index
    %283 = vector.load %arg17[%c0_496, %c6_497, %c0_498] : memref<2x9x512xf32, #tpu.memory_space<vmem>>, vector<2x1x512xf32>
    %284 = vector.shape_cast %283 : vector<2x1x512xf32> to vector<2x512xf32>
    %285 = vector.shape_cast %282 : vector<2x512xf32> to vector<2x1x512xf32>
    tpu.vector_store %arg17[%c0_496, %c6_497, %c0_498], %285 {strides = array<i32>} : memref<2x9x512xf32, #tpu.memory_space<vmem>>, vector<2x1x512xf32>,
    %c0_499 = arith.constant 0 : index
    %c4_500 = arith.constant 4 : index
    %c2_501 = arith.constant 2 : index
    %c0_502 = arith.constant 0 : index
    %286 = vector.load %arg15[%c0_499, %c4_500, %c2_501, %c0_502] : memref<2x8x8x32xf32, #tpu.memory_space<vmem>>, vector<2x1x1x32xf32>
    %287 = vector.shape_cast %286 : vector<2x1x1x32xf32> to vector<2x32xf32>
    %c0_503 = arith.constant 0 : index
    %c4_504 = arith.constant 4 : index
    %c3_505 = arith.constant 3 : index
    %c0_506 = arith.constant 0 : index
    %288 = vector.load %arg15[%c0_503, %c4_504, %c3_505, %c0_506] : memref<2x8x8x32xf32, #tpu.memory_space<vmem>>, vector<2x1x1x32xf32>
    %289 = vector.shape_cast %288 : vector<2x1x1x32xf32> to vector<2x32xf32>
    %c0_507 = arith.constant 0 : index
    %c4_508 = arith.constant 4 : index
    %c4_509 = arith.constant 4 : index
    %c0_510 = arith.constant 0 : index
    %290 = vector.load %arg15[%c0_507, %c4_508, %c4_509, %c0_510] : memref<2x8x8x32xf32, #tpu.memory_space<vmem>>, vector<2x1x1x32xf32>
    %291 = vector.shape_cast %290 : vector<2x1x1x32xf32> to vector<2x32xf32>
    %c0_511 = arith.constant 0 : index
    %c4_512 = arith.constant 4 : index
    %c5_513 = arith.constant 5 : index
    %c0_514 = arith.constant 0 : index
    %292 = vector.load %arg15[%c0_511, %c4_512, %c5_513, %c0_514] : memref<2x8x8x32xf32, #tpu.memory_space<vmem>>, vector<2x1x1x32xf32>
    %293 = vector.shape_cast %292 : vector<2x1x1x32xf32> to vector<2x32xf32>
    %c0_515 = arith.constant 0 : index
    %c5_516 = arith.constant 5 : index
    %c2_517 = arith.constant 2 : index
    %c0_518 = arith.constant 0 : index
    %294 = vector.load %arg15[%c0_515, %c5_516, %c2_517, %c0_518] : memref<2x8x8x32xf32, #tpu.memory_space<vmem>>, vector<2x1x1x32xf32>
    %295 = vector.shape_cast %294 : vector<2x1x1x32xf32> to vector<2x32xf32>
    %c0_519 = arith.constant 0 : index
    %c5_520 = arith.constant 5 : index
    %c3_521 = arith.constant 3 : index
    %c0_522 = arith.constant 0 : index
    %296 = vector.load %arg15[%c0_519, %c5_520, %c3_521, %c0_522] : memref<2x8x8x32xf32, #tpu.memory_space<vmem>>, vector<2x1x1x32xf32>
    %297 = vector.shape_cast %296 : vector<2x1x1x32xf32> to vector<2x32xf32>
    %c0_523 = arith.constant 0 : index
    %c5_524 = arith.constant 5 : index
    %c4_525 = arith.constant 4 : index
    %c0_526 = arith.constant 0 : index
    %298 = vector.load %arg15[%c0_523, %c5_524, %c4_525, %c0_526] : memref<2x8x8x32xf32, #tpu.memory_space<vmem>>, vector<2x1x1x32xf32>
    %299 = vector.shape_cast %298 : vector<2x1x1x32xf32> to vector<2x32xf32>
    %c0_527 = arith.constant 0 : index
    %c5_528 = arith.constant 5 : index
    %c5_529 = arith.constant 5 : index
    %c0_530 = arith.constant 0 : index
    %300 = vector.load %arg15[%c0_527, %c5_528, %c5_529, %c0_530] : memref<2x8x8x32xf32, #tpu.memory_space<vmem>>, vector<2x1x1x32xf32>
    %301 = vector.shape_cast %300 : vector<2x1x1x32xf32> to vector<2x32xf32>
    %c0_531 = arith.constant 0 : index
    %c6_532 = arith.constant 6 : index
    %c2_533 = arith.constant 2 : index
    %c0_534 = arith.constant 0 : index
    %302 = vector.load %arg15[%c0_531, %c6_532, %c2_533, %c0_534] : memref<2x8x8x32xf32, #tpu.memory_space<vmem>>, vector<2x1x1x32xf32>
    %303 = vector.shape_cast %302 : vector<2x1x1x32xf32> to vector<2x32xf32>
    %c0_535 = arith.constant 0 : index
    %c6_536 = arith.constant 6 : index
    %c3_537 = arith.constant 3 : index
    %c0_538 = arith.constant 0 : index
    %304 = vector.load %arg15[%c0_535, %c6_536, %c3_537, %c0_538] : memref<2x8x8x32xf32, #tpu.memory_space<vmem>>, vector<2x1x1x32xf32>
    %305 = vector.shape_cast %304 : vector<2x1x1x32xf32> to vector<2x32xf32>
    %c0_539 = arith.constant 0 : index
    %c6_540 = arith.constant 6 : index
    %c4_541 = arith.constant 4 : index
    %c0_542 = arith.constant 0 : index
    %306 = vector.load %arg15[%c0_539, %c6_540, %c4_541, %c0_542] : memref<2x8x8x32xf32, #tpu.memory_space<vmem>>, vector<2x1x1x32xf32>
    %307 = vector.shape_cast %306 : vector<2x1x1x32xf32> to vector<2x32xf32>
    %c0_543 = arith.constant 0 : index
    %c6_544 = arith.constant 6 : index
    %c5_545 = arith.constant 5 : index
    %c0_546 = arith.constant 0 : index
    %308 = vector.load %arg15[%c0_543, %c6_544, %c5_545, %c0_546] : memref<2x8x8x32xf32, #tpu.memory_space<vmem>>, vector<2x1x1x32xf32>
    %309 = vector.shape_cast %308 : vector<2x1x1x32xf32> to vector<2x32xf32>
    %c0_547 = arith.constant 0 : index
    %c7_548 = arith.constant 7 : index
    %c2_549 = arith.constant 2 : index
    %c0_550 = arith.constant 0 : index
    %310 = vector.load %arg15[%c0_547, %c7_548, %c2_549, %c0_550] : memref<2x8x8x32xf32, #tpu.memory_space<vmem>>, vector<2x1x1x32xf32>
    %311 = vector.shape_cast %310 : vector<2x1x1x32xf32> to vector<2x32xf32>
    %c0_551 = arith.constant 0 : index
    %c7_552 = arith.constant 7 : index
    %c3_553 = arith.constant 3 : index
    %c0_554 = arith.constant 0 : index
    %312 = vector.load %arg15[%c0_551, %c7_552, %c3_553, %c0_554] : memref<2x8x8x32xf32, #tpu.memory_space<vmem>>, vector<2x1x1x32xf32>
    %313 = vector.shape_cast %312 : vector<2x1x1x32xf32> to vector<2x32xf32>
    %c0_555 = arith.constant 0 : index
    %c7_556 = arith.constant 7 : index
    %c4_557 = arith.constant 4 : index
    %c0_558 = arith.constant 0 : index
    %314 = vector.load %arg15[%c0_555, %c7_556, %c4_557, %c0_558] : memref<2x8x8x32xf32, #tpu.memory_space<vmem>>, vector<2x1x1x32xf32>
    %315 = vector.shape_cast %314 : vector<2x1x1x32xf32> to vector<2x32xf32>
    %c0_559 = arith.constant 0 : index
    %c7_560 = arith.constant 7 : index
    %c5_561 = arith.constant 5 : index
    %c0_562 = arith.constant 0 : index
    %316 = vector.load %arg15[%c0_559, %c7_560, %c5_561, %c0_562] : memref<2x8x8x32xf32, #tpu.memory_space<vmem>>, vector<2x1x1x32xf32>
    %317 = vector.shape_cast %316 : vector<2x1x1x32xf32> to vector<2x32xf32>
    %318 = tpu.concatenate %287, %289, %291, %293, %295, %297, %299, %301, %303, %305, %307, %309, %311, %313, %315, %317 in 1 : vector<2x32xf32>, vector<2x32xf32>, vector<2x32xf32>, vector<2x32xf32>, vector<2x32xf32>, vector<2x32xf32>, vector<2x32xf32>, vector<2x32xf32>, vector<2x32xf32>, vector<2x32xf32>, vector<2x32xf32>, vector<2x32xf32>, vector<2x32xf32>, vector<2x32xf32>, vector<2x32xf32>, vector<2x32xf32> -> vector<2x512xf32>
    %c0_563 = arith.constant 0 : index
    %c7_564 = arith.constant 7 : index
    %c0_565 = arith.constant 0 : index
    %319 = vector.load %arg17[%c0_563, %c7_564, %c0_565] : memref<2x9x512xf32, #tpu.memory_space<vmem>>, vector<2x1x512xf32>
    %320 = vector.shape_cast %319 : vector<2x1x512xf32> to vector<2x512xf32>
    %321 = vector.shape_cast %318 : vector<2x512xf32> to vector<2x1x512xf32>
    tpu.vector_store %arg17[%c0_563, %c7_564, %c0_565], %321 {strides = array<i32>} : memref<2x9x512xf32, #tpu.memory_space<vmem>>, vector<2x1x512xf32>,
    %c0_566 = arith.constant 0 : index
    %c4_567 = arith.constant 4 : index
    %c4_568 = arith.constant 4 : index
    %c0_569 = arith.constant 0 : index
    %322 = vector.load %arg15[%c0_566, %c4_567, %c4_568, %c0_569] : memref<2x8x8x32xf32, #tpu.memory_space<vmem>>, vector<2x1x1x32xf32>
    %323 = vector.shape_cast %322 : vector<2x1x1x32xf32> to vector<2x32xf32>
    %c0_570 = arith.constant 0 : index
    %c4_571 = arith.constant 4 : index
    %c5_572 = arith.constant 5 : index
    %c0_573 = arith.constant 0 : index
    %324 = vector.load %arg15[%c0_570, %c4_571, %c5_572, %c0_573] : memref<2x8x8x32xf32, #tpu.memory_space<vmem>>, vector<2x1x1x32xf32>
    %325 = vector.shape_cast %324 : vector<2x1x1x32xf32> to vector<2x32xf32>
    %c0_574 = arith.constant 0 : index
    %c4_575 = arith.constant 4 : index
    %c6_576 = arith.constant 6 : index
    %c0_577 = arith.constant 0 : index
    %326 = vector.load %arg15[%c0_574, %c4_575, %c6_576, %c0_577] : memref<2x8x8x32xf32, #tpu.memory_space<vmem>>, vector<2x1x1x32xf32>
    %327 = vector.shape_cast %326 : vector<2x1x1x32xf32> to vector<2x32xf32>
    %c0_578 = arith.constant 0 : index
    %c4_579 = arith.constant 4 : index
    %c7_580 = arith.constant 7 : index
    %c0_581 = arith.constant 0 : index
    %328 = vector.load %arg15[%c0_578, %c4_579, %c7_580, %c0_581] : memref<2x8x8x32xf32, #tpu.memory_space<vmem>>, vector<2x1x1x32xf32>
    %329 = vector.shape_cast %328 : vector<2x1x1x32xf32> to vector<2x32xf32>
    %c0_582 = arith.constant 0 : index
    %c5_583 = arith.constant 5 : index
    %c4_584 = arith.constant 4 : index
    %c0_585 = arith.constant 0 : index
    %330 = vector.load %arg15[%c0_582, %c5_583, %c4_584, %c0_585] : memref<2x8x8x32xf32, #tpu.memory_space<vmem>>, vector<2x1x1x32xf32>
    %331 = vector.shape_cast %330 : vector<2x1x1x32xf32> to vector<2x32xf32>
    %c0_586 = arith.constant 0 : index
    %c5_587 = arith.constant 5 : index
    %c5_588 = arith.constant 5 : index
    %c0_589 = arith.constant 0 : index
    %332 = vector.load %arg15[%c0_586, %c5_587, %c5_588, %c0_589] : memref<2x8x8x32xf32, #tpu.memory_space<vmem>>, vector<2x1x1x32xf32>
    %333 = vector.shape_cast %332 : vector<2x1x1x32xf32> to vector<2x32xf32>
    %c0_590 = arith.constant 0 : index
    %c5_591 = arith.constant 5 : index
    %c6_592 = arith.constant 6 : index
    %c0_593 = arith.constant 0 : index
    %334 = vector.load %arg15[%c0_590, %c5_591, %c6_592, %c0_593] : memref<2x8x8x32xf32, #tpu.memory_space<vmem>>, vector<2x1x1x32xf32>
    %335 = vector.shape_cast %334 : vector<2x1x1x32xf32> to vector<2x32xf32>
    %c0_594 = arith.constant 0 : index
    %c5_595 = arith.constant 5 : index
    %c7_596 = arith.constant 7 : index
    %c0_597 = arith.constant 0 : index
    %336 = vector.load %arg15[%c0_594, %c5_595, %c7_596, %c0_597] : memref<2x8x8x32xf32, #tpu.memory_space<vmem>>, vector<2x1x1x32xf32>
    %337 = vector.shape_cast %336 : vector<2x1x1x32xf32> to vector<2x32xf32>
    %c0_598 = arith.constant 0 : index
    %c6_599 = arith.constant 6 : index
    %c4_600 = arith.constant 4 : index
    %c0_601 = arith.constant 0 : index
    %338 = vector.load %arg15[%c0_598, %c6_599, %c4_600, %c0_601] : memref<2x8x8x32xf32, #tpu.memory_space<vmem>>, vector<2x1x1x32xf32>
    %339 = vector.shape_cast %338 : vector<2x1x1x32xf32> to vector<2x32xf32>
    %c0_602 = arith.constant 0 : index
    %c6_603 = arith.constant 6 : index
    %c5_604 = arith.constant 5 : index
    %c0_605 = arith.constant 0 : index
    %340 = vector.load %arg15[%c0_602, %c6_603, %c5_604, %c0_605] : memref<2x8x8x32xf32, #tpu.memory_space<vmem>>, vector<2x1x1x32xf32>
    %341 = vector.shape_cast %340 : vector<2x1x1x32xf32> to vector<2x32xf32>
    %c0_606 = arith.constant 0 : index
    %c6_607 = arith.constant 6 : index
    %c6_608 = arith.constant 6 : index
    %c0_609 = arith.constant 0 : index
    %342 = vector.load %arg15[%c0_606, %c6_607, %c6_608, %c0_609] : memref<2x8x8x32xf32, #tpu.memory_space<vmem>>, vector<2x1x1x32xf32>
    %343 = vector.shape_cast %342 : vector<2x1x1x32xf32> to vector<2x32xf32>
    %c0_610 = arith.constant 0 : index
    %c6_611 = arith.constant 6 : index
    %c7_612 = arith.constant 7 : index
    %c0_613 = arith.constant 0 : index
    %344 = vector.load %arg15[%c0_610, %c6_611, %c7_612, %c0_613] : memref<2x8x8x32xf32, #tpu.memory_space<vmem>>, vector<2x1x1x32xf32>
    %345 = vector.shape_cast %344 : vector<2x1x1x32xf32> to vector<2x32xf32>
    %c0_614 = arith.constant 0 : index
    %c7_615 = arith.constant 7 : index
    %c4_616 = arith.constant 4 : index
    %c0_617 = arith.constant 0 : index
    %346 = vector.load %arg15[%c0_614, %c7_615, %c4_616, %c0_617] : memref<2x8x8x32xf32, #tpu.memory_space<vmem>>, vector<2x1x1x32xf32>
    %347 = vector.shape_cast %346 : vector<2x1x1x32xf32> to vector<2x32xf32>
    %c0_618 = arith.constant 0 : index
    %c7_619 = arith.constant 7 : index
    %c5_620 = arith.constant 5 : index
    %c0_621 = arith.constant 0 : index
    %348 = vector.load %arg15[%c0_618, %c7_619, %c5_620, %c0_621] : memref<2x8x8x32xf32, #tpu.memory_space<vmem>>, vector<2x1x1x32xf32>
    %349 = vector.shape_cast %348 : vector<2x1x1x32xf32> to vector<2x32xf32>
    %c0_622 = arith.constant 0 : index
    %c7_623 = arith.constant 7 : index
    %c6_624 = arith.constant 6 : index
    %c0_625 = arith.constant 0 : index
    %350 = vector.load %arg15[%c0_622, %c7_623, %c6_624, %c0_625] : memref<2x8x8x32xf32, #tpu.memory_space<vmem>>, vector<2x1x1x32xf32>
    %351 = vector.shape_cast %350 : vector<2x1x1x32xf32> to vector<2x32xf32>
    %c0_626 = arith.constant 0 : index
    %c7_627 = arith.constant 7 : index
    %c7_628 = arith.constant 7 : index
    %c0_629 = arith.constant 0 : index
    %352 = vector.load %arg15[%c0_626, %c7_627, %c7_628, %c0_629] : memref<2x8x8x32xf32, #tpu.memory_space<vmem>>, vector<2x1x1x32xf32>
    %353 = vector.shape_cast %352 : vector<2x1x1x32xf32> to vector<2x32xf32>
    %354 = tpu.concatenate %323, %325, %327, %329, %331, %333, %335, %337, %339, %341, %343, %345, %347, %349, %351, %353 in 1 : vector<2x32xf32>, vector<2x32xf32>, vector<2x32xf32>, vector<2x32xf32>, vector<2x32xf32>, vector<2x32xf32>, vector<2x32xf32>, vector<2x32xf32>, vector<2x32xf32>, vector<2x32xf32>, vector<2x32xf32>, vector<2x32xf32>, vector<2x32xf32>, vector<2x32xf32>, vector<2x32xf32>, vector<2x32xf32> -> vector<2x512xf32>
    %c0_630 = arith.constant 0 : index
    %c8 = arith.constant 8 : index
    %c0_631 = arith.constant 0 : index
    %355 = vector.load %arg17[%c0_630, %c8, %c0_631] : memref<2x9x512xf32, #tpu.memory_space<vmem>>, vector<2x1x512xf32>
    %356 = vector.shape_cast %355 : vector<2x1x512xf32> to vector<2x512xf32>
    %357 = vector.shape_cast %354 : vector<2x512xf32> to vector<2x1x512xf32>
    tpu.vector_store %arg17[%c0_630, %c8, %c0_631], %357 {strides = array<i32>} : memref<2x9x512xf32, #tpu.memory_space<vmem>>, vector<2x1x512xf32>,
    %c0_632 = arith.constant 0 : index
    %c0_633 = arith.constant 0 : index
    %c0_634 = arith.constant 0 : index
    %358 = vector.load %arg17[%c0_632, %c0_633, %c0_634] : memref<2x9x512xf32, #tpu.memory_space<vmem>>, vector<2x9x512xf32>
    %359 = vector.shape_cast %358 : vector<2x9x512xf32> to vector<18x512xf32>
    %360 = arith.truncf %359 : vector<18x512xf32> to vector<18x512xbf16>
    %c0_635 = arith.constant 0 : index
    %c0_636 = arith.constant 0 : index
    %361 = vector.load %arg4[%c0_635, %c0_636] : memref<512x64xbf16, #tpu.memory_space<vmem>>, vector<512x64xbf16>
    %cst_637 = arith.constant dense<0.000000e+00> : vector<18x64xf32>
    %362 = tpu.matmul %360, %361, %cst_637 {dimension_numbers = #tpu.dot_dimension_numbers<[1], [0], [0], [1], [0, 0, 1, 1], [], []>} : vector<18x512xbf16>, vector<512x64xbf16>, vector<18x64xf32> -> vector<18x64xf32>
    %c0_638 = arith.constant 0 : index
    %c0_639 = arith.constant 0 : index
    %363 = vector.load %arg5[%c0_638, %c0_639] : memref<1x64xf32, #tpu.memory_space<vmem>>, vector<1x64xf32>
    %364 = vector.broadcast %363 : vector<1x64xf32> to vector<18x64xf32>
    %365 = arith.addf %362, %364 : vector<18x64xf32>
    %cst_640 = arith.constant 0.000000e+00 : f32
    %366 = vector.broadcast %cst_640 : f32 to vector<18x64xf32>
    %367 = arith.maximumf %365, %366 : vector<18x64xf32>
    %368 = vector.shape_cast %367 : vector<18x64xf32> to vector<2x3x3x64xf32>
    %c0_641 = arith.constant 0 : index
    %c0_642 = arith.constant 0 : index
    %c0_643 = arith.constant 0 : index
    %c0_644 = arith.constant 0 : index
    %369 = vector.load %arg16[%c0_641, %c0_642, %c0_643, %c0_644] : memref<2x3x3x64xf32, #tpu.memory_space<vmem>>, vector<2x3x3x64xf32>
    tpu.vector_store %arg16[%c0_641, %c0_642, %c0_643, %c0_644], %368 {strides = array<i32>} : memref<2x3x3x64xf32, #tpu.memory_space<vmem>>, vector<2x3x3x64xf32>,
    %c0_645 = arith.constant 0 : index
    %c0_646 = arith.constant 0 : index
    %c0_647 = arith.constant 0 : index
    %c0_648 = arith.constant 0 : index
    %370 = vector.load %arg16[%c0_645, %c0_646, %c0_647, %c0_648] : memref<2x3x3x64xf32, #tpu.memory_space<vmem>>, vector<2x1x1x64xf32>
    %371 = vector.shape_cast %370 : vector<2x1x1x64xf32> to vector<2x64xf32>
    %c0_649 = arith.constant 0 : index
    %c0_650 = arith.constant 0 : index
    %c1_651 = arith.constant 1 : index
    %c0_652 = arith.constant 0 : index
    %372 = vector.load %arg16[%c0_649, %c0_650, %c1_651, %c0_652] : memref<2x3x3x64xf32, #tpu.memory_space<vmem>>, vector<2x1x1x64xf32>
    %373 = vector.shape_cast %372 : vector<2x1x1x64xf32> to vector<2x64xf32>
    %c0_653 = arith.constant 0 : index
    %c0_654 = arith.constant 0 : index
    %c2_655 = arith.constant 2 : index
    %c0_656 = arith.constant 0 : index
    %374 = vector.load %arg16[%c0_653, %c0_654, %c2_655, %c0_656] : memref<2x3x3x64xf32, #tpu.memory_space<vmem>>, vector<2x1x1x64xf32>
    %375 = vector.shape_cast %374 : vector<2x1x1x64xf32> to vector<2x64xf32>
    %c0_657 = arith.constant 0 : index
    %c1_658 = arith.constant 1 : index
    %c0_659 = arith.constant 0 : index
    %c0_660 = arith.constant 0 : index
    %376 = vector.load %arg16[%c0_657, %c1_658, %c0_659, %c0_660] : memref<2x3x3x64xf32, #tpu.memory_space<vmem>>, vector<2x1x1x64xf32>
    %377 = vector.shape_cast %376 : vector<2x1x1x64xf32> to vector<2x64xf32>
    %c0_661 = arith.constant 0 : index
    %c1_662 = arith.constant 1 : index
    %c1_663 = arith.constant 1 : index
    %c0_664 = arith.constant 0 : index
    %378 = vector.load %arg16[%c0_661, %c1_662, %c1_663, %c0_664] : memref<2x3x3x64xf32, #tpu.memory_space<vmem>>, vector<2x1x1x64xf32>
    %379 = vector.shape_cast %378 : vector<2x1x1x64xf32> to vector<2x64xf32>
    %c0_665 = arith.constant 0 : index
    %c1_666 = arith.constant 1 : index
    %c2_667 = arith.constant 2 : index
    %c0_668 = arith.constant 0 : index
    %380 = vector.load %arg16[%c0_665, %c1_666, %c2_667, %c0_668] : memref<2x3x3x64xf32, #tpu.memory_space<vmem>>, vector<2x1x1x64xf32>
    %381 = vector.shape_cast %380 : vector<2x1x1x64xf32> to vector<2x64xf32>
    %c0_669 = arith.constant 0 : index
    %c2_670 = arith.constant 2 : index
    %c0_671 = arith.constant 0 : index
    %c0_672 = arith.constant 0 : index
    %382 = vector.load %arg16[%c0_669, %c2_670, %c0_671, %c0_672] : memref<2x3x3x64xf32, #tpu.memory_space<vmem>>, vector<2x1x1x64xf32>
    %383 = vector.shape_cast %382 : vector<2x1x1x64xf32> to vector<2x64xf32>
    %c0_673 = arith.constant 0 : index
    %c2_674 = arith.constant 2 : index
    %c1_675 = arith.constant 1 : index
    %c0_676 = arith.constant 0 : index
    %384 = vector.load %arg16[%c0_673, %c2_674, %c1_675, %c0_676] : memref<2x3x3x64xf32, #tpu.memory_space<vmem>>, vector<2x1x1x64xf32>
    %385 = vector.shape_cast %384 : vector<2x1x1x64xf32> to vector<2x64xf32>
    %c0_677 = arith.constant 0 : index
    %c2_678 = arith.constant 2 : index
    %c2_679 = arith.constant 2 : index
    %c0_680 = arith.constant 0 : index
    %386 = vector.load %arg16[%c0_677, %c2_678, %c2_679, %c0_680] : memref<2x3x3x64xf32, #tpu.memory_space<vmem>>, vector<2x1x1x64xf32>
    %387 = vector.shape_cast %386 : vector<2x1x1x64xf32> to vector<2x64xf32>
    %388 = tpu.concatenate %371, %373, %375, %377, %379, %381, %383, %385, %387 in 1 : vector<2x64xf32>, vector<2x64xf32>, vector<2x64xf32>, vector<2x64xf32>, vector<2x64xf32>, vector<2x64xf32>, vector<2x64xf32>, vector<2x64xf32>, vector<2x64xf32> -> vector<2x576xf32>
    %c0_681 = arith.constant 0 : index
    %c0_682 = arith.constant 0 : index
    %c0_683 = arith.constant 0 : index
    %389 = vector.load %arg18[%c0_681, %c0_682, %c0_683] : memref<2x1x576xf32, #tpu.memory_space<vmem>>, vector<2x1x576xf32>
    %390 = vector.shape_cast %389 : vector<2x1x576xf32> to vector<2x576xf32>
    %391 = vector.shape_cast %388 : vector<2x576xf32> to vector<2x1x576xf32>
    tpu.vector_store %arg18[%c0_681, %c0_682, %c0_683], %391 {strides = array<i32>} : memref<2x1x576xf32, #tpu.memory_space<vmem>>, vector<2x1x576xf32>,
    %c0_684 = arith.constant 0 : index
    %c0_685 = arith.constant 0 : index
    %c0_686 = arith.constant 0 : index
    %392 = vector.load %arg18[%c0_684, %c0_685, %c0_686] : memref<2x1x576xf32, #tpu.memory_space<vmem>>, vector<2x1x576xf32>
    %393 = vector.shape_cast %392 : vector<2x1x576xf32> to vector<2x576xf32>
    %394 = arith.truncf %393 : vector<2x576xf32> to vector<2x576xbf16>
    %c0_687 = arith.constant 0 : index
    %c0_688 = arith.constant 0 : index
    %395 = vector.load %arg6[%c0_687, %c0_688] : memref<576x64xbf16, #tpu.memory_space<vmem>>, vector<576x64xbf16>
    %cst_689 = arith.constant dense<0.000000e+00> : vector<2x64xf32>
    %396 = tpu.matmul %394, %395, %cst_689 {dimension_numbers = #tpu.dot_dimension_numbers<[1], [0], [0], [1], [0, 0, 1, 1], [], []>} : vector<2x576xbf16>, vector<576x64xbf16>, vector<2x64xf32> -> vector<2x64xf32>
    %c0_690 = arith.constant 0 : index
    %c0_691 = arith.constant 0 : index
    %397 = vector.load %arg7[%c0_690, %c0_691] : memref<1x64xf32, #tpu.memory_space<vmem>>, vector<1x64xf32>
    %398 = vector.broadcast %397 : vector<1x64xf32> to vector<2x64xf32>
    %399 = arith.addf %396, %398 : vector<2x64xf32>
    %cst_692 = arith.constant 0.000000e+00 : f32
    %400 = vector.broadcast %cst_692 : f32 to vector<2x64xf32>
    %401 = arith.maximumf %399, %400 : vector<2x64xf32>
    %402 = vector.shape_cast %401 : vector<2x64xf32> to vector<2x1x1x64xf32>
    %403 = vector.shape_cast %402 : vector<2x1x1x64xf32> to vector<2x64xf32>
    %404 = arith.truncf %403 : vector<2x64xf32> to vector<2x64xbf16>
    %c0_693 = arith.constant 0 : index
    %c0_694 = arith.constant 0 : index
    %405 = vector.load %arg8[%c0_693, %c0_694] : memref<64x512xbf16, #tpu.memory_space<vmem>>, vector<64x512xbf16>
    %cst_695 = arith.constant dense<0.000000e+00> : vector<2x512xf32>
    %406 = tpu.matmul %404, %405, %cst_695 {dimension_numbers = #tpu.dot_dimension_numbers<[1], [0], [0], [1], [0, 0, 1, 1], [], []>} : vector<2x64xbf16>, vector<64x512xbf16>, vector<2x512xf32> -> vector<2x512xf32>
    %c0_696 = arith.constant 0 : index
    %c0_697 = arith.constant 0 : index
    %407 = vector.load %arg9[%c0_696, %c0_697] : memref<1x512xf32, #tpu.memory_space<vmem>>, vector<1x512xf32>
    %408 = vector.broadcast %407 : vector<1x512xf32> to vector<2x512xf32>
    %409 = arith.addf %406, %408 : vector<2x512xf32>
    %cst_698 = arith.constant 0.000000e+00 : f32
    %410 = vector.broadcast %cst_698 : f32 to vector<2x512xf32>
    %411 = arith.maximumf %409, %410 : vector<2x512xf32>
    %412 = arith.truncf %411 : vector<2x512xf32> to vector<2x512xbf16>
    %c0_699 = arith.constant 0 : index
    %c0_700 = arith.constant 0 : index
    %413 = vector.load %arg10[%c0_699, %c0_700] : memref<512x256xbf16, #tpu.memory_space<vmem>>, vector<512x256xbf16>
    %cst_701 = arith.constant dense<0.000000e+00> : vector<2x256xf32>
    %414 = tpu.matmul %412, %413, %cst_701 {dimension_numbers = #tpu.dot_dimension_numbers<[1], [0], [0], [1], [0, 0, 1, 1], [], []>} : vector<2x512xbf16>, vector<512x256xbf16>, vector<2x256xf32> -> vector<2x256xf32>
    %c0_702 = arith.constant 0 : index
    %c0_703 = arith.constant 0 : index
    %415 = vector.load %arg11[%c0_702, %c0_703] : memref<1x256xf32, #tpu.memory_space<vmem>>, vector<1x256xf32>
    %416 = vector.broadcast %415 : vector<1x256xf32> to vector<2x256xf32>
    %417 = arith.addf %414, %416 : vector<2x256xf32>
    %cst_704 = arith.constant 0.000000e+00 : f32
    %418 = vector.broadcast %cst_704 : f32 to vector<2x256xf32>
    %419 = arith.maximumf %417, %418 : vector<2x256xf32>
    %420 = arith.truncf %419 : vector<2x256xf32> to vector<2x256xbf16>
    %c0_705 = arith.constant 0 : index
    %c0_706 = arith.constant 0 : index
    %421 = vector.load %arg12[%c0_705, %c0_706] : memref<256x128xbf16, #tpu.memory_space<vmem>>, vector<256x128xbf16>
    %cst_707 = arith.constant dense<0.000000e+00> : vector<2x128xf32>
    %422 = tpu.matmul %420, %421, %cst_707 {dimension_numbers = #tpu.dot_dimension_numbers<[1], [0], [0], [1], [0, 0, 1, 1], [], []>} : vector<2x256xbf16>, vector<256x128xbf16>, vector<2x128xf32> -> vector<2x128xf32>
    %c0_708 = arith.constant 0 : index
    %c0_709 = arith.constant 0 : index
    %423 = vector.load %arg13[%c0_708, %c0_709] : memref<1x128xf32, #tpu.memory_space<vmem>>, vector<1x128xf32>
    %424 = vector.broadcast %423 : vector<1x128xf32> to vector<2x128xf32>
    %425 = arith.addf %422, %424 : vector<2x128xf32>
    %c0_710 = arith.constant 0 : index
    %c0_711 = arith.constant 0 : index
    %426 = vector.load %arg14[%c0_710, %c0_711] : memref<2x128xf32, #tpu.memory_space<vmem>>, vector<2x128xf32>
    tpu.vector_store %arg14[%c0_710, %c0_711], %425 {strides = array<i32>} : memref<2x128xf32, #tpu.memory_space<vmem>>, vector<2x128xf32>,
    return
  }
  func.func @transform_0(%arg0: i32) -> (i32, i32, i32, i32) {
    %c0_i32 = arith.constant 0 : i32
    %c0_i32_0 = arith.constant 0 : i32
    %c0_i32_1 = arith.constant 0 : i32
    %c0_i32_2 = arith.constant 0 : i32
    return %arg0, %c0_i32, %c0_i32_0, %c0_i32_1 : i32, i32, i32, i32
  }
  func.func @transform_1(%arg0: i32) -> (i32, i32, i32) {
    %c0_i32 = arith.constant 0 : i32
    %c0_i32_0 = arith.constant 0 : i32
    %c0_i32_1 = arith.constant 0 : i32
    %c0_i32_2 = arith.constant 0 : i32
    return %c0_i32, %c0_i32_0, %c0_i32_1 : i32, i32, i32
  }
  func.func @transform_2(%arg0: i32) -> (i32, i32) {
    %c0_i32 = arith.constant 0 : i32
    %c0_i32_0 = arith.constant 0 : i32
    %c0_i32_1 = arith.constant 0 : i32
    return %c0_i32, %c0_i32_0 : i32, i32
  }
  func.func @transform_3(%arg0: i32) -> (i32, i32) {
    %c0_i32 = arith.constant 0 : i32
    %c0_i32_0 = arith.constant 0 : i32
    %c0_i32_1 = arith.constant 0 : i32
    return %c0_i32, %c0_i32_0 : i32, i32
  }
  func.func @transform_4(%arg0: i32) -> (i32, i32) {
    %c0_i32 = arith.constant 0 : i32
    %c0_i32_0 = arith.constant 0 : i32
    %c0_i32_1 = arith.constant 0 : i32
    return %c0_i32, %c0_i32_0 : i32, i32
  }
  func.func @transform_5(%arg0: i32) -> (i32, i32) {
    %c0_i32 = arith.constant 0 : i32
    %c0_i32_0 = arith.constant 0 : i32
    %c0_i32_1 = arith.constant 0 : i32
    return %c0_i32, %c0_i32_0 : i32, i32
  }
  func.func @transform_6(%arg0: i32) -> (i32, i32) {
    %c0_i32 = arith.constant 0 : i32
    %c0_i32_0 = arith.constant 0 : i32
    %c0_i32_1 = arith.constant 0 : i32
    return %c0_i32, %c0_i32_0 : i32, i32
  }
  func.func @transform_7(%arg0: i32) -> (i32, i32) {
    %c0_i32 = arith.constant 0 : i32
    %c0_i32_0 = arith.constant 0 : i32
    %c0_i32_1 = arith.constant 0 : i32
    return %c0_i32, %c0_i32_0 : i32, i32
  }
  func.func @transform_8(%arg0: i32) -> (i32, i32) {
    %c0_i32 = arith.constant 0 : i32
    %c0_i32_0 = arith.constant 0 : i32
    %c0_i32_1 = arith.constant 0 : i32
    return %c0_i32, %c0_i32_0 : i32, i32
  }
  func.func @transform_9(%arg0: i32) -> (i32, i32) {
    %c0_i32 = arith.constant 0 : i32
    %c0_i32_0 = arith.constant 0 : i32
    %c0_i32_1 = arith.constant 0 : i32
    return %c0_i32, %c0_i32_0 : i32, i32
  }
  func.func @transform_10(%arg0: i32) -> (i32, i32) {
    %c0_i32 = arith.constant 0 : i32
    %c0_i32_0 = arith.constant 0 : i32
    %c0_i32_1 = arith.constant 0 : i32
    return %c0_i32, %c0_i32_0 : i32, i32
  }
  func.func @transform_11(%arg0: i32) -> (i32, i32) {
    %c0_i32 = arith.constant 0 : i32
    %c0_i32_0 = arith.constant 0 : i32
    %c0_i32_1 = arith.constant 0 : i32
    return %c0_i32, %c0_i32_0 : i32, i32
  }
  func.func @transform_12(%arg0: i32) -> (i32, i32) {
    %c0_i32 = arith.constant 0 : i32
    %c0_i32_0 = arith.constant 0 : i32
    %c0_i32_1 = arith.constant 0 : i32
    return %c0_i32, %c0_i32_0 : i32, i32
  }
  func.func @transform_13(%arg0: i32) -> (i32, i32) {
    %c0_i32 = arith.constant 0 : i32
    %c0_i32_0 = arith.constant 0 : i32
    return %arg0, %c0_i32 : i32, i32
  }
}

</mosaic_0001>

<bundles_post_ra>
// kernel: behavior_cloning_forward.1
= control target key start
LH: loop header
LB: loop body
LE: loop exit
PB: predicated region body
PF: predicated region fallthrough
CT: control target
= control target key end

     0   :  { %s7069_s0 = inlined_call_operand.vmem [shape: f32[2,9,9,64], index: 0, kind: input, shape index: {}]   ;;  %s7070_s1 = inlined_call_operand.vmem [shape: bf16[4,64,32], index: 1, kind: input, shape index: {}]   ;;  %s7071_s2 = inlined_call_operand.vmem [shape: f32[1,32], index: 2, kind: input, shape index: {}]   ;;  %s7072_s3 = inlined_call_operand.vmem [shape: bf16[512,64], index: 3, kind: input, shape index: {}]   ;;  %s7073_s4 = inlined_call_operand.vmem [shape: f32[1,64], index: 4, kind: input, shape index: {}]   ;;  %s7074_s5 = inlined_call_operand.vmem [shape: bf16[576,64], index: 5, kind: input, shape index: {}]   ;;  %s7075_s6 = inlined_call_operand.vmem [shape: f32[1,64], index: 6, kind: input, shape index: {}]   ;;  %s7076_s7 = inlined_call_operand.vmem [shape: bf16[64,512], index: 7, kind: input, shape index: {}]   ;;  %s7077_s8 = inlined_call_operand.vmem [shape: f32[1,512], index: 8, kind: input, shape index: {}]   ;;  %s7078_s9 = inlined_call_operand.vmem [shape: bf16[512,256], index: 9, kind: input, shape index: {}]   ;;  %s7079_s10 = inlined_call_operand.vmem [shape: f32[1,256], index: 10, kind: input, shape index: {}]   ;;  %s7080_s11 = inlined_call_operand.vmem [shape: bf16[256,128], index: 11, kind: input, shape index: {}]   ;;  %s7081_s12 = inlined_call_operand.vmem [shape: f32[1,128], index: 12, kind: input, shape index: {}]   ;;  %s7082_s13 = inlined_call_operand.hbm [shape: f32[2,128], index: 13, kind: output, shape index: {}]  }
   0x1   :  { %v4968_v0 = vld [vmem:[%s7070_s1 + $0x38] sm:$0xff]  ;;  %v4967_v4 = vld [vmem:[%s7070_s1 + $0x30] sm:$0xff]  ;;  %v4966_v8 = vld [vmem:[%s7070_s1 + $0x28] sm:$0xff] }
   0x2   :  { %v4964_v1 = vld [vmem:[%s7070_s1 + $0x18] sm:$0xff]  ;;  %164 = vmatpush.bf16.msra.mxu0 %v4968_v0  ;;  %v4963_v5 = vld [vmem:[%s7070_s1 + $0x10] sm:$0xff]  ;;  %v4962_v9 = vld [vmem:[%s7070_s1 + $0x8] sm:$0xff] }
   0x3   :  { %v4972_v2 = vld [vmem:[%s7070_s1 + $0x58] sm:$0xff]  ;;  %261 = vmatpush.bf16.msra.mxu1 %v4964_v1  ;;  %v4971_v6 = vld [vmem:[%s7070_s1 + $0x50] sm:$0xff]  ;;  %v4970_v10 = vld [vmem:[%s7070_s1 + $0x48] sm:$0xff] }
   0x4   :  { %v4976_v3 = vld [vmem:[%s7070_s1 + $0x78] sm:$0xff]  ;;  %392 = vmatpush.bf16.msra.mxu2 %v4972_v2  ;;  %v4975_v7 = vld [vmem:[%s7070_s1 + $0x70] sm:$0xff]  ;;  %v4974_v11 = vld [vmem:[%s7070_s1 + $0x68] sm:$0xff] }
   0x5   :  { %538 = vmatpush.bf16.msra.mxu3 %v4976_v3  ;;  %v4965_v12 = vld [vmem:[%s7070_s1 + $0x20] sm:$0xff]  ;;  %v79_v15 = vld [vmem:[%s7069_s0 + $0x11] sm:$0xff] }
   0x6   :  { %165 = vmatpush.bf16.msra.mxu0 %v4967_v4  ;;  %v4961_v13 = vld [vmem:[%s7070_s1] sm:$0xff]  ;;  %v47_v18 = vld [vmem:[%s7069_s0 + $0x10] sm:$0xff] }
   0x7   :  { %262 = vmatpush.bf16.msra.mxu1 %v4963_v5  ;;  %v78_v14 = vld [vmem:[%s7069_s0 + $0x1] sm:$0xff] }
   0x8   :  { %393 = vmatpush.bf16.msra.mxu2 %v4971_v6  ;;  %v46_v16 = vld [vmem:[%s7069_s0] sm:$0xff] }
   0x9   :  { %539 = vmatpush.bf16.msra.mxu3 %v4975_v7  ;;  %v4969_v17 = vld [vmem:[%s7070_s1 + $0x40] sm:$0xff] }
   0xa   :  { %166 = vmatpush.bf16.msra.mxu0 %v4966_v8 }
   0xb   :  { %263 = vmatpush.bf16.msra.mxu1 %v4962_v9 }
   0xc   :  { %18 = vsyncpa [#allocation7], 0  ;;  %394 = vmatpush.bf16.msra.mxu2 %v4970_v10  ;;  %v4973_v19 = vld [vmem:[%s7070_s1 + $0x60] sm:$0xff]  ;;  %v94_v22 = vpack.c.bf16 %v79_v15, %v78_v14  ;;  %v62_v23 = vpack.c.bf16 %v47_v18, %v46_v16  ;;  %vm7086_vm0 = vcmask 523264   ;;  %v81_v26 = vld [vmem:[%s7069_s0 + $0x31] sm:$0xff]  ;;  %vm7085_vm1 = vcmask 261120  }
   0xd   :  { %540 = vmatpush.bf16.msra.mxu3 %v4974_v11  ;;  %v4205_v20 = vld [vmem:[%s7069_s0 + $0x20] sm:$0xff]  ;;  %v49_v27 = vld [vmem:[%s7069_s0 + $0x30] sm:$0xff]  ;;  %vm7087_vm2 = vcmask 1041409   ;;  %s5176_s24 = smov 64   ;;  %s5177_s25 = smov 96   ;;  %vm7083_vm3 = vcmask 785408  }
   0xe   :  { %v4253_v21 = vld [vmem:[%s7069_s0 + $0x21] sm:$0xff]  ;;  %167 = vmatpush.bf16.msra.mxu0 %v4965_v12  ;;  %v323_v24 = vpack.c.bf16 %v4205_v20, %v47_v18  ;;  %v63_v31 = vpack.c.bf16 %v49_v27, %v4205_v20  ;;  %v83_v34 = vld [vmem:[%s7069_s0 + $0x51] sm:$0xff]  ;;  %vm812_vm4 = vcmask 1040384   ;;  %vm814_vm5 = vcmask 1042434   ;;  %s4139_s29 = sshll.u32 %s7082_s13, 4  ;;  %s4140_s29 = int_to_ptr.hbm [resolvable:$true] %s4139_s29 }
   0xf   :  { %264 = vmatpush.bf16.msra.mxu1 %v4961_v13  ;;  %v469_v25 = vpack.c.bf16 %v4253_v21, %v79_v15  ;;  %v4207_v28 = vld [vmem:[%s7069_s0 + $0x40] sm:$0xff]  ;;  %v95_v30 = vpack.c.bf16 %v81_v26, %v4253_v21  ;;  %v51_v35 = vld [vmem:[%s7069_s0 + $0x50] sm:$0xff]  ;;  %vm816_vm6 = vcmask 1041408   ;;  %vm819_vm7 = vcmask 1043459  }
  0x10   :  { %395 = vmatpush.bf16.msra.mxu2 %v4969_v17  ;;  %v4255_v29 = vld [vmem:[%s7069_s0 + $0x41] sm:$0xff]  ;;  %v324_v32 = vpack.c.bf16 %v4207_v28, %v49_v27  ;;  %v64_v39 = vpack.c.bf16 %v51_v35, %v4207_v28  ;;  %v85_v42 = vld [vmem:[%s7069_s0 + $0x71] sm:$0xff]  ;;  %vm7084_vm8 = vcmask 1042433   ;;  %vm2257_vm12 = vcmask 1045509  }
  0x11   :  { %541 = vmatpush.bf16.msra.mxu3 %v4973_v19  ;;  %4172 = vmatmul.msk.bf16.vlgmr.msra.gmra.mxu0 %vm7086_vm0, %v94_v22  ;;  %v470_v33 = vpack.c.bf16 %v4255_v29, %v81_v26  ;;  %v4209_v36 = vld [vmem:[%s7069_s0 + $0x60] sm:$0xff]  ;;  %v96_v38 = vpack.c.bf16 %v83_v34, %v4255_v29  ;;  %v53_v43 = vld [vmem:[%s7069_s0 + $0x70] sm:$0xff]  ;;  %vm2259_vm13 = vcmask 1044483   ;;  %vm2263_vm14 = vcmask 1046534  }
  0x12   :  { %4196 = vmatmul.msk.bf16.vlgmr.msra.gmra.mxu1 %vm7086_vm0, %v62_v23  ;;  %v4257_v37 = vld [vmem:[%s7069_s0 + $0x61] sm:$0xff]  ;;  %v325_v40 = vpack.c.bf16 %v4209_v36, %v51_v35  ;;  %v65_v47 = vpack.c.bf16 %v53_v43, %v4209_v36  ;;  %v86_v50 = vld [vmem:[%s7069_s0 + $0x91] sm:$0xff]  ;;  %v5440_v26 = vld [vmem:[%s7071_s2] ss:$0 sm:$0xff]  ;;  %s5175_s2 = smov 32   ;;  %vm2265_vm15 = vcmask 1045508  }
  0x13   :  { %4244 = vmatmul.msk.bf16.vlgmr.msra.gmra.mxu2 %vm7086_vm0, %v323_v24  ;;  %v471_v41 = vpack.c.bf16 %v4257_v37, %v83_v34  ;;  %v4211_v44 = vld [vmem:[%s7069_s0 + $0x80] sm:$0xff]  ;;  %v97_v46 = vpack.c.bf16 %v85_v42, %v4257_v37  ;;  %v54_v52 = vld [vmem:[%s7069_s0 + $0x90] sm:$0xff]  ;;  %vm7088_vm10 = vcmask 1045504   ;;  %vm7093_vm11 = vcmask 1044484  }
  0x14   :  { %4292 = vmatmul.msk.bf16.vlgmr.msra.gmra.mxu3 %vm7086_vm0, %v469_v25  ;;  %v4259_v45 = vld [vmem:[%s7069_s0 + $0x81] sm:$0xff]  ;;  %v326_v48 = vpack.c.bf16 %v4211_v44, %v53_v43  ;;  %v4213_v54 = vld [vmem:[%s7069_s0 + $0xb0] sm:$0xff] }
  0x15   :  { %v472_v49 = vpack.c.bf16 %v4259_v45, %v85_v42  ;;  %v87_v51 = vld [vmem:[%s7069_s0 + $0xa1] sm:$0xff]  ;;  %v4261_v55 = vld [vmem:[%s7069_s0 + $0xb1] sm:$0xff] }
  0x16   :  { %v55_v53 = vld [vmem:[%s7069_s0 + $0xa0] sm:$0xff]  ;;  %v98_v56 = vpack.c.bf16 %v87_v51, %v86_v50  ;;  %v473_v59 = vpack.c.bf16 %v4261_v55, %v87_v51  ;;  %v4215_v61 = vld [vmem:[%s7069_s0 + $0xd0] sm:$0xff] }
  0x17   :  { %v66_v57 = vpack.c.bf16 %v55_v53, %v54_v52  ;;  %v327_v58 = vpack.c.bf16 %v4213_v54, %v55_v53  ;;  %v4214_v60 = vld [vmem:[%s7069_s0 + $0xc0] sm:$0xff]  ;;  %v4263_v63 = vld [vmem:[%s7069_s0 + $0xd1] sm:$0xff] }
  0x18   :  { %v4262_v62 = vld [vmem:[%s7069_s0 + $0xc1] sm:$0xff]  ;;  %v67_v1 = vpack.c.bf16 %v4214_v60, %v4213_v54  ;;  %v328_v2 = vpack.c.bf16 %v4215_v61, %v4214_v60  ;;  %v4217_v5 = vld [vmem:[%s7069_s0 + $0xf0] sm:$0xff] }
  0x19   :  { %v99_v0 = vpack.c.bf16 %v4262_v62, %v4261_v55  ;;  %v474_v3 = vpack.c.bf16 %v4263_v63, %v4262_v62  ;;  %v4216_v4 = vld [vmem:[%s7069_s0 + $0xe0] sm:$0xff]  ;;  %v4265_v7 = vld [vmem:[%s7069_s0 + $0xf1] sm:$0xff] }
  0x1a   :  { %v4264_v6 = vld [vmem:[%s7069_s0 + $0xe1] sm:$0xff]  ;;  %v68_v9 = vpack.c.bf16 %v4216_v4, %v4215_v61  ;;  %v329_v10 = vpack.c.bf16 %v4217_v5, %v4216_v4  ;;  %v4219_v13 = vld [vmem:[%s7069_s0 + $0x110] sm:$0xff] }
  0x1b   :  { %v100_v8 = vpack.c.bf16 %v4264_v6, %v4263_v63  ;;  %v475_v11 = vpack.c.bf16 %v4265_v7, %v4264_v6  ;;  %v4218_v12 = vld [vmem:[%s7069_s0 + $0x100] sm:$0xff]  ;;  %v4267_v15 = vld [vmem:[%s7069_s0 + $0x111] sm:$0xff] }
  0x1c   :  { %v4266_v14 = vld [vmem:[%s7069_s0 + $0x101] sm:$0xff]  ;;  %v69_v17 = vpack.c.bf16 %v4218_v12, %v4217_v5  ;;  %v330_v18 = vpack.c.bf16 %v4219_v13, %v4218_v12 }
  0x1d   :  { %v101_v16 = vpack.c.bf16 %v4266_v14, %v4265_v7  ;;  %v476_v19 = vpack.c.bf16 %v4267_v15, %v4266_v14 }
  0x21   :  { %4173 = vmatmul.msk.bf16.gmra.mxu0 %vm7086_vm0, %v95_v30 }
  0x22   :  { %4197 = vmatmul.msk.bf16.gmra.mxu1 %vm7086_vm0, %v63_v31 }
  0x23   :  { %4245 = vmatmul.msk.bf16.gmra.mxu2 %vm7086_vm0, %v324_v32 }
  0x24   :  { %4293 = vmatmul.msk.bf16.gmra.mxu3 %vm7086_vm0, %v470_v33 }
  0x31   :  { %4174 = vmatmul.msk.bf16.gmra.mxu0 %vm7086_vm0, %v96_v38 }
  0x32   :  { %4198 = vmatmul.msk.bf16.gmra.mxu1 %vm7086_vm0, %v64_v39 }
  0x33   :  { %4246 = vmatmul.msk.bf16.gmra.mxu2 %vm7086_vm0, %v325_v40 }
  0x34   :  { %4294 = vmatmul.msk.bf16.gmra.mxu3 %vm7086_vm0, %v471_v41 }
  0x41   :  { %4175 = vmatmul.msk.bf16.gmra.mxu0 %vm7086_vm0, %v97_v46 }
  0x42   :  { %4199 = vmatmul.msk.bf16.gmra.mxu1 %vm7086_vm0, %v65_v47 }
  0x43   :  { %4247 = vmatmul.msk.bf16.gmra.mxu2 %vm7086_vm0, %v326_v48 }
  0x44   :  { %4295 = vmatmul.msk.bf16.gmra.mxu3 %vm7086_vm0, %v472_v49 }
  0x51   :  { %4176 = vmatmul.msk.bf16.gmra.mxu0 %vm7086_vm0, %v98_v56 }
  0x52   :  { %4200 = vmatmul.msk.bf16.gmra.mxu1 %vm7086_vm0, %v66_v57 }
  0x53   :  { %4248 = vmatmul.msk.bf16.gmra.mxu2 %vm7086_vm0, %v327_v58 }
  0x54   :  { %4296 = vmatmul.msk.bf16.gmra.mxu3 %vm7086_vm0, %v473_v59 }
  0x61   :  { %4177 = vmatmul.msk.bf16.gmra.mxu0 %vm7086_vm0, %v99_v0 }
  0x62   :  { %4201 = vmatmul.msk.bf16.gmra.mxu1 %vm7086_vm0, %v67_v1 }
  0x63   :  { %4249 = vmatmul.msk.bf16.gmra.mxu2 %vm7086_vm0, %v328_v2 }
  0x64   :  { %4297 = vmatmul.msk.bf16.gmra.mxu3 %vm7086_vm0, %v474_v3 }
  0x71   :  { %4178 = vmatmul.msk.bf16.gmra.mxu0 %vm7086_vm0, %v100_v8 }
  0x72   :  { %4202 = vmatmul.msk.bf16.gmra.mxu1 %vm7086_vm0, %v68_v9 }
  0x73   :  { %4250 = vmatmul.msk.bf16.gmra.mxu2 %vm7086_vm0, %v329_v10 }
  0x74   :  { %4298 = vmatmul.msk.bf16.gmra.mxu3 %vm7086_vm0, %v475_v11 }
  0x81   :  { %4179 = vmatmul.msk.bf16.gmra.mxu0 %vm7086_vm0, %v101_v16 }
  0x82   :  { %4203 = vmatmul.msk.bf16.gmra.mxu1 %vm7086_vm0, %v69_v17 }
  0x83   :  { %4251 = vmatmul.msk.bf16.gmra.mxu2 %vm7086_vm0, %v330_v18 }
  0x84   :  { %4299 = vmatmul.msk.bf16.gmra.mxu3 %vm7086_vm0, %v476_v19 }
  0x8e   :  { %v169_v20 = vpop.f32.mrf.mxu0 }
  0x8f   :  { %v266_v21 = vpop.f32.mrf.mxu1 }
  0x90   :  { %v267_v22 = vadd.f32 %v266_v21, %v169_v20 }
  0x96   :  { %v397_v23 = vpop.f32.mrf.mxu2  ;;  %v171_v27 = vpop.f32.mrf.mxu0 }
  0x97   :  { %v543_v24 = vpop.f32.mrf.mxu3  ;;  %v437_v25 = vadd.f32 %v397_v23, %v267_v22  ;;  %v268_v28 = vpop.f32.mrf.mxu1 }
  0x98   :  { %v269_v32 = vadd.f32 %v268_v28, %v171_v27 }
  0x99   :  { %v583_v29 = vadd.f32 %v543_v24, %v437_v25 }
  0x9b   :  { %v603_v30 = vadd.f32 %v5440_v26, %v583_v29 }
  0x9d   :  { %v619_v31 = vmax.f32 %v603_v30, 0.0 }
  0x9e   :  { %v399_v33 = vpop.f32.mrf.mxu2  ;;  %v174_v36 = vpop.f32.mrf.mxu0 }
  0x9f   :  { %v545_v34 = vpop.f32.mrf.mxu3  ;;  %636 = vst.msk [vmem:[#allocation2] sm:$0xff] %vm7085_vm1, %v619_v31  ;;  %v438_v35 = vadd.f32 %v399_v33, %v269_v32  ;;  %v271_v37 = vpop.f32.mrf.mxu1 }
  0xa0   :  { %v272_v40 = vadd.f32 %v271_v37, %v174_v36 }
  0xa1   :  { %v584_v38 = vadd.f32 %v545_v34, %v438_v35 }
  0xa3   :  { %v604_v39 = vadd.f32 %v5440_v26, %v584_v38 }
  0xa5   :  { %v620_v41 = vmax.f32 %v604_v39, 0.0 }
  0xa6   :  { %v402_v42 = vpop.f32.mrf.mxu2  ;;  %v176_v45 = vpop.f32.mrf.mxu0 }
  0xa7   :  { %v548_v43 = vpop.f32.mrf.mxu3  ;;  %637 = vst.msk [vmem:[#allocation2 + $0x8] sm:$0xff] %vm7085_vm1, %v620_v41  ;;  %v439_v44 = vadd.f32 %v402_v42, %v272_v40  ;;  %v273_v46 = vpop.f32.mrf.mxu1 }
  0xa8   :  { %v274_v50 = vadd.f32 %v273_v46, %v176_v45 }
  0xa9   :  { %v585_v47 = vadd.f32 %v548_v43, %v439_v44 }
  0xab   :  { %v605_v48 = vadd.f32 %v5440_v26, %v585_v47 }
  0xad   :  { %v621_v49 = vmax.f32 %v605_v48, 0.0 }
  0xae   :  { %v404_v51 = vpop.f32.mrf.mxu2  ;;  %v179_v54 = vpop.f32.mrf.mxu0 }
  0xaf   :  { %v550_v52 = vpop.f32.mrf.mxu3  ;;  %638 = vst.msk [vmem:[#allocation2 + $0x10] sm:$0xff] %vm7085_vm1, %v621_v49  ;;  %v440_v53 = vadd.f32 %v404_v51, %v274_v50  ;;  %v276_v55 = vpop.f32.mrf.mxu1 }
  0xb0   :  { %v277_v58 = vadd.f32 %v276_v55, %v179_v54 }
  0xb1   :  { %v586_v56 = vadd.f32 %v550_v52, %v440_v53 }
  0xb3   :  { %v606_v57 = vadd.f32 %v5440_v26, %v586_v56 }
  0xb5   :  { %v622_v59 = vmax.f32 %v606_v57, 0.0 }
  0xb6   :  { %v407_v60 = vpop.f32.mrf.mxu2  ;;  %v181_v63 = vpop.f32.mrf.mxu0 }
  0xb7   :  { %v553_v61 = vpop.f32.mrf.mxu3  ;;  %639 = vst.msk [vmem:[#allocation2 + $0x18] sm:$0xff] %vm7085_vm1, %v622_v59  ;;  %v441_v62 = vadd.f32 %v407_v60, %v277_v58  ;;  %v278_v0 = vpop.f32.mrf.mxu1 }
  0xb8   :  { %v279_v4 = vadd.f32 %v278_v0, %v181_v63  ;;  %v837_v63 = vld [vmem:[#allocation2 + $0x3] sm:$0x1]  ;;  %v654_v0 = vld [vmem:[#allocation2 + $0x1] sm:$0x1] }
  0xb9   :  { %v587_v1 = vadd.f32 %v553_v61, %v441_v62  ;;  %v1007_v62 = vld [vmem:[#allocation2 + $0x5] sm:$0x1] }
  0xbb   :  { %v607_v2 = vadd.f32 %v5440_v26, %v587_v1 }
  0xbd   :  { %v623_v3 = vmax.f32 %v607_v2, 0.0 }
  0xbe   :  { %v409_v5 = vpop.f32.mrf.mxu2  ;;  %v184_v8 = vpop.f32.mrf.mxu0 }
  0xbf   :  { %v555_v6 = vpop.f32.mrf.mxu3  ;;  %640 = vst.msk [vmem:[#allocation2 + $0x20] sm:$0xff] %vm7085_vm1, %v623_v3  ;;  %v442_v7 = vadd.f32 %v409_v5, %v279_v4  ;;  %v281_v9 = vpop.f32.mrf.mxu1 }
  0xc0   :  { %v282_v12 = vadd.f32 %v281_v9, %v184_v8 }
  0xc1   :  { %v588_v10 = vadd.f32 %v555_v6, %v442_v7 }
  0xc3   :  { %v608_v11 = vadd.f32 %v5440_v26, %v588_v10 }
  0xc5   :  { %v624_v13 = vmax.f32 %v608_v11, 0.0 }
  0xc6   :  { %v412_v14 = vpop.f32.mrf.mxu2  ;;  %v186_v17 = vpop.f32.mrf.mxu0 }
  0xc7   :  { %v558_v15 = vpop.f32.mrf.mxu3  ;;  %641 = vst.msk [vmem:[#allocation2 + $0x28] sm:$0xff] %vm7085_vm1, %v624_v13  ;;  %v443_v16 = vadd.f32 %v412_v14, %v282_v12  ;;  %v283_v18 = vpop.f32.mrf.mxu1 }
  0xc8   :  { %v284_v22 = vadd.f32 %v283_v18, %v186_v17 }
  0xc9   :  { %v589_v19 = vadd.f32 %v558_v15, %v443_v16 }
  0xcb   :  { %v609_v20 = vadd.f32 %v5440_v26, %v589_v19  ;;  %v1009_v19 = vld [vmem:[#allocation2 + $0x6] sm:$0x1] }
  0xcd   :  { %v625_v21 = vmax.f32 %v609_v20, 0.0  ;;  %v656_v20 = vld [vmem:[#allocation2 + $0x2] sm:$0x1] }
  0xce   :  { %v414_v23 = vpop.f32.mrf.mxu2  ;;  %v189_v27 = vpop.f32.mrf.mxu0 }
  0xcf   :  { %v560_v24 = vpop.f32.mrf.mxu3  ;;  %642 = vst.msk [vmem:[#allocation2 + $0x30] sm:$0xff] %vm7085_vm1, %v625_v21  ;;  %v444_v25 = vadd.f32 %v414_v23, %v284_v22  ;;  %v286_v28 = vpop.f32.mrf.mxu1 }
  0xd0   :  { %v287_v31 = vadd.f32 %v286_v28, %v189_v27 }
  0xd1   :  { %v590_v29 = vadd.f32 %v560_v24, %v444_v25  ;;  %v839_v24 = vld [vmem:[#allocation2 + $0x4] sm:$0x1] }
  0xd3   :  { %v610_v30 = vadd.f32 %v5440_v26, %v590_v29 }
  0xd5   :  { %v626_v32 = vmax.f32 %v610_v30, 0.0 }
  0xd6   :  { %v417_v33 = vpop.f32.mrf.mxu2  ;;  %v191_v36 = vpop.f32.mrf.mxu0 }
  0xd7   :  { %v563_v34 = vpop.f32.mrf.mxu3  ;;  %643 = vst.msk [vmem:[#allocation2 + $0x38] sm:$0xff] %vm7085_vm1, %v626_v32  ;;  %v445_v35 = vadd.f32 %v417_v33, %v287_v31  ;;  %v288_v37 = vpop.f32.mrf.mxu1 }
  0xd8   :  { %v289_v41 = vadd.f32 %v288_v37, %v191_v36 }
  0xd9   :  { %v591_v38 = vadd.f32 %v563_v34, %v445_v35 }
  0xdb   :  { %v611_v39 = vadd.f32 %v5440_v26, %v591_v38 }
  0xdd   :  { %v627_v40 = vmax.f32 %v611_v39, 0.0 }
  0xde   :  { %v419_v42 = vpop.f32.mrf.mxu2  ;;  %v194_v45 = vpop.f32.mrf.mxu0 }
  0xdf   :  { %v565_v43 = vpop.f32.mrf.mxu3  ;;  %644 = vst.msk [vmem:[#allocation2 + $0x40] sm:$0xff] %vm7085_vm1, %v627_v40  ;;  %v446_v44 = vadd.f32 %v419_v42, %v289_v41  ;;  %v291_v46 = vpop.f32.mrf.mxu1  ;;  %v658_v41 = vld [vmem:[#allocation2 + $0x3] sm:$0x1]  ;;  %v841_v42 = vld [vmem:[#allocation2 + $0x5] sm:$0x1] }
  0xe0   :  { %v292_v49 = vadd.f32 %v291_v46, %v194_v45  ;;  %v1011_v46 = vld [vmem:[#allocation2 + $0x7] sm:$0x1] }
  0xe1   :  { %v592_v47 = vadd.f32 %v565_v43, %v446_v44 }
  0xe3   :  { %v612_v48 = vadd.f32 %v5440_v26, %v592_v47 }
  0xe5   :  { %v628_v50 = vmax.f32 %v612_v48, 0.0 }
  0xe6   :  { %v422_v51 = vpop.f32.mrf.mxu2  ;;  %v1008_v53 = vld [vmem:[#allocation2 + $0x45] sm:$0x1]  ;;  %v838_v54 = vld [vmem:[#allocation2 + $0x43] sm:$0x1]  ;;  %v655_v55 = vld [vmem:[#allocation2 + $0x41] sm:$0x1]  ;;  %v196_v60 = vpop.f32.mrf.mxu0 }
  0xe7   :  { %v568_v52 = vpop.f32.mrf.mxu3  ;;  %645 = vst.msk [vmem:[#allocation2 + $0x48] sm:$0xff] %vm7085_vm1, %v628_v50  ;;  %v447_v56 = vadd.f32 %v422_v51, %v292_v49  ;;  %v1044_v57 = vrot.slane %v1008_v53, 7  ;;  %v874_v58 = vrot.slane %v838_v54, 7  ;;  %v695_v59 = vrot.slane %v655_v55, 7  ;;  %v293_v61 = vpop.f32.mrf.mxu1  ;;  %v1010_v5 = vld [vmem:[#allocation2 + $0x46] sm:$0x1] }
  0xe8   :  { %v657_v6 = vld [vmem:[#allocation2 + $0x42] sm:$0x1]  ;;  %v294_v8 = vadd.f32 %v293_v61, %v196_v60  ;;  %v840_v9 = vld [vmem:[#allocation2 + $0x44] sm:$0x1]  ;;  %v1051_v11 = vrot.slane %v1010_v5, 7 }
  0xe9   :  { %v593_v1 = vadd.f32 %v568_v52, %v447_v56  ;;  %v1045_v2 = vsel %vm7087_vm2, %v1044_v57, %v1007_v62  ;;  %v875_v3 = vsel %vm7087_vm2, %v874_v58, %v837_v63  ;;  %v696_v4 = vsel %vm7087_vm2, %v695_v59, %v654_v0  ;;  %v659_v27 = vld [vmem:[#allocation2 + $0x43] sm:$0x1]  ;;  %v842_v28 = vld [vmem:[#allocation2 + $0x45] sm:$0x1]  ;;  %v1012_v31 = vld [vmem:[#allocation2 + $0x47] sm:$0x1] }
  0xea   :  { %1046 = vrot.lane.b32.xlu2 %v1045_v2, %s5175_s2  ;;  %876 = vrot.lane.b32.xlu1 %v875_v3, %s5175_s2  ;;  %v702_v12 = vrot.slane %v657_v6, 7  ;;  %v881_v15 = vrot.slane %v840_v9, 7  ;;  %v1052_v22 = vsel %vm7087_vm2, %v1051_v11, %v1009_v19  ;;  %v709_v33 = vrot.slane %v659_v27, 7  ;;  %v845_v62 = vld [vmem:[#allocation2 + $0xb] sm:$0x1] }
  0xeb   :  { %v613_v7 = vadd.f32 %v5440_v26, %v593_v1  ;;  %697 = vrot.lane.b32.xlu0 %v696_v4, %s5175_s2  ;;  %v888_v34 = vrot.slane %v842_v28, 7  ;;  %v1058_v37 = vrot.slane %v1012_v31, 7  ;;  %v849_v63 = vld [vmem:[#allocation2 + $0xd] sm:$0x1]  ;;  %v663_v3 = vld [vmem:[#allocation2 + $0x9] sm:$0x1] }
  0xec   :  { %v703_v23 = vsel %vm7087_vm2, %v702_v12, %v656_v20  ;;  %v882_v25 = vsel %vm7087_vm2, %v881_v15, %v839_v24  ;;  %v710_v44 = vsel %vm7087_vm2, %v709_v33, %v658_v41  ;;  %v1015_v24 = vld [vmem:[#allocation2 + $0xd] sm:$0x1] }
  0xed   :  { %v629_v10 = vmax.f32 %v613_v7, 0.0  ;;  %v889_v45 = vsel %vm7087_vm2, %v888_v34, %v841_v42  ;;  %v1059_v47 = vsel %vm7087_vm2, %v1058_v37, %v1011_v46 }
  0xee   :  { %v424_v13 = vpop.f32.mrf.mxu2  ;;  %v199_v17 = vpop.f32.mrf.mxu0  ;;  %v846_v48 = vld [vmem:[#allocation2 + $0x4b] sm:$0x1]  ;;  %v850_v49 = vld [vmem:[#allocation2 + $0x4d] sm:$0x1]  ;;  %v664_v52 = vld [vmem:[#allocation2 + $0x49] sm:$0x1] }
  0xef   :  { %v570_v14 = vpop.f32.mrf.mxu3  ;;  %646 = vst.msk [vmem:[#allocation2 + $0x50] sm:$0xff] %vm7085_vm1, %v629_v10  ;;  %v448_v16 = vadd.f32 %v424_v13, %v294_v8  ;;  %v296_v18 = vpop.f32.mrf.mxu1  ;;  %v900_v54 = vrot.slane %v846_v48, 7  ;;  %v914_v55 = vrot.slane %v850_v49, 7  ;;  %v721_v58 = vrot.slane %v664_v52, 7  ;;  %v668_v5 = vld [vmem:[#allocation2 + $0x4b] sm:$0x1] }
  0xf0   :  { %v297_v30 = vadd.f32 %v296_v18, %v199_v17  ;;  %v1016_v9 = vld [vmem:[#allocation2 + $0x4d] sm:$0x1]  ;;  %v735_v11 = vrot.slane %v668_v5, 7  ;;  %v667_v17 = vld [vmem:[#allocation2 + $0xb] sm:$0x1] }
  0xf1   :  { %v594_v21 = vadd.f32 %v570_v14, %v448_v16  ;;  %v901_v1 = vsel %vm7087_vm2, %v900_v54, %v845_v62  ;;  %v915_v2 = vsel %vm7087_vm2, %v914_v55, %v849_v63  ;;  %v722_v4 = vsel %vm7087_vm2, %v721_v58, %v663_v3  ;;  %v853_v18 = vld [vmem:[#allocation2 + $0x13] sm:$0x1]  ;;  %v666_v31 = vld [vmem:[#allocation2 + $0x4a] sm:$0x1]  ;;  %v848_v49 = vld [vmem:[#allocation2 + $0x4c] sm:$0x1] }
  0xf2   :  { %1053 = vrot.lane.b32.xlu1 %v1052_v22, %s5176_s24  ;;  %704 = vrot.lane.b32.xlu2 %v703_v23, %s5176_s24  ;;  %v1070_v15 = vrot.slane %v1016_v9, 7  ;;  %v736_v22 = vsel %vm7087_vm2, %v735_v11, %v667_v17  ;;  %v728_v37 = vrot.slane %v666_v31, 7  ;;  %v674_v54 = vld [vmem:[#allocation2 + $0x12] sm:$0x1]  ;;  %v1519_v55 = vld [vmem:[#allocation2 + $0x15] sm:$0x1] }
  0xf3   :  { %v614_v29 = vadd.f32 %v5440_v26, %v594_v21  ;;  %883 = vrot.lane.b32.xlu0 %v882_v25, %s5176_s24  ;;  %v847_v58 = vld [vmem:[#allocation2 + $0xc] sm:$0x1]  ;;  %v1017_v5 = vld [vmem:[#allocation2 + $0xe] sm:$0x1]  ;;  %v1020_v9 = vld [vmem:[#allocation2 + $0x4f] sm:$0x1] }
  0xf4   :  { %v1071_v25 = vsel %vm7087_vm2, %v1070_v15, %v1015_v24  ;;  %v1019_v17 = vld [vmem:[#allocation2 + $0xf] sm:$0x1] }
  0xf5   :  { %v630_v32 = vmax.f32 %v614_v29, 0.0 }
  0xf6   :  { %v427_v35 = vpop.f32.mrf.mxu2  ;;  %v201_v39 = vpop.f32.mrf.mxu0  ;;  %v854_v6 = vld [vmem:[#allocation2 + $0x53] sm:$0x1]  ;;  %v1024_v27 = vld [vmem:[#allocation2 + $0x55] sm:$0x1]  ;;  %v675_v46 = vld [vmem:[#allocation2 + $0x52] sm:$0x1] }
  0xf7   :  { %v573_v36 = vpop.f32.mrf.mxu3  ;;  %647 = vst.msk [vmem:[#allocation2 + $0x58] sm:$0xff] %vm7085_vm1, %v630_v32  ;;  %v449_v38 = vadd.f32 %v427_v35, %v297_v30  ;;  %v298_v40 = vpop.f32.mrf.mxu1  ;;  %v926_v12 = vrot.slane %v854_v6, 7  ;;  %v677_v28 = vld [vmem:[#allocation2 + $0x53] sm:$0x1]  ;;  %v1096_v33 = vrot.slane %v1024_v27, 7 }
  0xf8   :  { %v299_v51 = vadd.f32 %v298_v40, %v201_v39  ;;  %v761_v34 = vrot.slane %v677_v28, 7  ;;  %v1023_v39 = vld [vmem:[#allocation2 + $0x15] sm:$0x1]  ;;  %v676_v40 = vld [vmem:[#allocation2 + $0x13] sm:$0x1] }
  0xf9   :  { %v595_v43 = vadd.f32 %v573_v36, %v449_v38  ;;  %v927_v23 = vsel %vm7087_vm2, %v926_v12, %v853_v18  ;;  %v1097_v42 = vsel %vm7087_vm2, %v1096_v33, %v1023_v39  ;;  %v1084_v12 = vrot.slane %v1020_v9, 7  ;;  %v861_v27 = vld [vmem:[#allocation2 + $0x1b] sm:$0x1]  ;;  %v1031_v39 = vld [vmem:[#allocation2 + $0x1d] sm:$0x1] }
  0xfa   :  { %711 = vrot.lane.b32.xlu1 %v710_v44, %s5177_s25  ;;  %890 = vrot.lane.b32.xlu2 %v889_v45, %s5177_s25  ;;  %v665_v44 = vld [vmem:[#allocation2 + $0xa] sm:$0x1] }
  0xfb   :  { %v615_v50 = vadd.f32 %v5440_v26, %v595_v43  ;;  %1060 = vrot.lane.b32.xlu0 %v1059_v47, %s5177_s25  ;;  %v762_v43 = vsel %vm7087_vm2, %v761_v34, %v676_v40  ;;  %v729_v45 = vsel %vm7087_vm2, %v728_v37, %v665_v44  ;;  %v1520_v47 = vld [vmem:[#allocation2 + $0x55] sm:$0x1]  ;;  %v1085_v18 = vsel %vm7087_vm2, %v1084_v12, %v1019_v17  ;;  %v1522_v44 = vld [vmem:[#allocation2 + $0x56] sm:$0x1]  ;;  %v1033_v12 = vld [vmem:[#allocation2 + $0x1e] sm:$0x1] }
  0xfc   :  { %v1556_v52 = vrot.slane %v1520_v47, 7  ;;  %v858_v34 = vld [vmem:[#allocation2 + $0x55] sm:$0x1]  ;;  %v1563_v47 = vrot.slane %v1522_v44, 7 }
  0xfd   :  { %v631_v53 = vmax.f32 %v615_v50, 0.0  ;;  %v940_v37 = vrot.slane %v858_v34, 7 }
  0xfe   :  { %v429_v56 = vpop.f32.mrf.mxu2  ;;  %v204_v60 = vpop.f32.mrf.mxu0  ;;  %v1032_v33 = vld [vmem:[#allocation2 + $0x5d] sm:$0x1] }
  0xff   :  { %v575_v57 = vpop.f32.mrf.mxu3  ;;  %648 = vst.msk [vmem:[#allocation2 + $0x60] sm:$0xff] %vm7085_vm1, %v631_v53  ;;  %v450_v59 = vadd.f32 %v429_v56, %v299_v51  ;;  %v301_v61 = vpop.f32.mrf.mxu1  ;;  %v754_v51 = vrot.slane %v675_v46, 7  ;;  %v907_v53 = vrot.slane %v848_v49, 7  ;;  %v1178_v46 = vld [vmem:[#allocation2 + $0x51] sm:$0x1] }
 0x100   :  { %v302_v8 = vadd.f32 %v301_v61, %v204_v60  ;;  %v1180_v60 = vld [vmem:[#allocation2 + $0x52] sm:$0x1]  ;;  %v1018_v61 = vld [vmem:[#allocation2 + $0x4e] sm:$0x1]  ;;  %v1216_v49 = vrot.slane %v1178_v46, 7 }
 0x101   :  { %v596_v0 = vadd.f32 %v575_v57, %v450_v59  ;;  %v755_v56 = vsel %vm7087_vm2, %v754_v51, %v674_v54  ;;  %v1557_v57 = vsel %vm7087_vm2, %v1556_v52, %v1519_v55  ;;  %v856_v59 = vld [vmem:[#allocation2 + $0x54] sm:$0x1]  ;;  %v1223_v63 = vrot.slane %v1180_v60, 7  ;;  %v683_v51 = vld [vmem:[#allocation2 + $0x1a] sm:$0x1] }
 0x102   :  { %902 = vrot.lane.b32.xlu1 %v901_v1, %s5175_s2  ;;  %916 = vrot.lane.b32.xlu2 %v915_v2, %s5177_s25  ;;  %v933_v62 = vrot.slane %v856_v59, 7  ;;  %v855_v1 = vld [vmem:[#allocation2 + $0x14] sm:$0x1]  ;;  %v1179_v2 = vld [vmem:[#allocation2 + $0x12] sm:$0x1] }
 0x103   :  { %v616_v7 = vadd.f32 %v5440_v26, %v596_v0  ;;  %723 = vrot.lane.b32.xlu0 %v722_v4, %s5175_s2  ;;  %v1077_v0 = vrot.slane %v1018_v61, 7  ;;  %v1224_v4 = vsel %vm7087_vm2, %v1223_v63, %v1179_v2  ;;  %v1177_v54 = vld [vmem:[#allocation2 + $0x11] sm:$0x1]  ;;  %v863_v63 = vld [vmem:[#allocation2 + $0x1c] sm:$0x1] }
 0x104   :  { %v934_v3 = vsel %vm7087_vm2, %v933_v62, %v855_v1  ;;  %v1217_v55 = vsel %vm7087_vm2, %v1216_v49, %v1177_v54  ;;  %v1181_v62 = vld [vmem:[#allocation2 + $0x13] sm:$0x1]  ;;  %v1351_v2 = vld [vmem:[#allocation2 + $0x14] sm:$0x1]  ;;  %v866_v17 = vld [vmem:[#allocation2 + $0x5d] sm:$0x1] }
 0x105   :  { %v632_v10 = vmax.f32 %v616_v7, 0.0  ;;  %v1078_v6 = vsel %vm7087_vm2, %v1077_v0, %v1017_v5  ;;  %v1026_v7 = vld [vmem:[#allocation2 + $0x56] sm:$0x1]  ;;  %v1034_v5 = vld [vmem:[#allocation2 + $0x5e] sm:$0x1] }
 0x106   :  { %v432_v13 = vpop.f32.mrf.mxu2  ;;  %v206_v19 = vpop.f32.mrf.mxu0  ;;  %v1129_v9 = vrot.slane %v1034_v5, 7  ;;  %v1362_v34 = vld [vmem:[#allocation2 + $0x5d] sm:$0x1]  ;;  %v1357_v54 = vld [vmem:[#allocation2 + $0x1b] sm:$0x1] }
 0x107   :  { %v578_v14 = vpop.f32.mrf.mxu3  ;;  %649 = vst.msk [vmem:[#allocation2 + $0x68] sm:$0xff] %vm7085_vm1, %v632_v10  ;;  %v451_v16 = vadd.f32 %v432_v13, %v302_v8  ;;  %v303_v20 = vpop.f32.mrf.mxu1  ;;  %v1354_v8 = vld [vmem:[#allocation2 + $0x55] sm:$0x1]  ;;  %v1103_v10 = vrot.slane %v1026_v7, 7  ;;  %v1025_v13 = vld [vmem:[#allocation2 + $0x16] sm:$0x1] }
 0x108   :  { %v304_v30 = vadd.f32 %v303_v20, %v206_v19  ;;  %v1400_v11 = vrot.slane %v1354_v8, 7  ;;  %v1028_v19 = vld [vmem:[#allocation2 + $0x57] sm:$0x1]  ;;  %v862_v20 = vld [vmem:[#allocation2 + $0x5b] sm:$0x1]  ;;  %v1426_v44 = vrot.slane %v1362_v34, 7 }
 0x109   :  { %v597_v21 = vadd.f32 %v578_v14, %v451_v16  ;;  %v1353_v14 = vld [vmem:[#allocation2 + $0x15] sm:$0x1]  ;;  %v1104_v15 = vsel %vm7087_vm2, %v1103_v10, %v1025_v13  ;;  %v1866_v34 = vld [vmem:[#allocation2 + $0x65] sm:$0x1] }
 0x10a   :  { %737 = vrot.lane.b32.xlu1 %v736_v22, %s5177_s25  ;;  %928 = vrot.lane.b32.xlu2 %v927_v23, %s5175_s2  ;;  %v1401_v16 = vsel %vm7087_vm2, %v1400_v11, %v1353_v14  ;;  %v1110_v22 = vrot.slane %v1028_v19, 7  ;;  %v952_v23 = vrot.slane %v862_v20, 7  ;;  %v681_v11 = vld [vmem:[#allocation2 + $0x19] sm:$0x1]  ;;  %v1130_v14 = vsel %vm7087_vm2, %v1129_v9, %v1033_v12 }
 0x10b   :  { %v617_v29 = vadd.f32 %v5440_v26, %v597_v21  ;;  %1072 = vrot.lane.b32.xlu0 %v1071_v25, %s5175_s2  ;;  %v673_v21 = vld [vmem:[#allocation2 + $0x51] sm:$0x1]  ;;  %v1027_v25 = vld [vmem:[#allocation2 + $0x17] sm:$0x1]  ;;  %v1186_v19 = vld [vmem:[#allocation2 + $0x59] sm:$0x1] }
 0x10c   :  { %v747_v24 = vrot.slane %v673_v21, 7  ;;  %v1111_v28 = vsel %vm7087_vm2, %v1110_v22, %v1027_v25  ;;  %v966_v21 = vrot.slane %v866_v17, 7  ;;  %v865_v25 = vld [vmem:[#allocation2 + $0x1d] sm:$0x1]  ;;  %v1188_v17 = vld [vmem:[#allocation2 + $0x5a] sm:$0x1] }
 0x10d   :  { %v633_v32 = vmax.f32 %v617_v29, 0.0  ;;  %v953_v29 = vsel %vm7087_vm2, %v952_v23, %v861_v27  ;;  %v1242_v23 = vrot.slane %v1186_v19, 7  ;;  %v1035_v27 = vld [vmem:[#allocation2 + $0x1f] sm:$0x1] }
 0x10e   :  { %v434_v35 = vpop.f32.mrf.mxu2 }
 0x10f   :  { %v580_v36 = vpop.f32.mrf.mxu3  ;;  %650 = vst.msk [vmem:[#allocation2 + $0x70] sm:$0xff] %vm7085_vm1, %v633_v32  ;;  %v452_v38 = vadd.f32 %v434_v35, %v304_v30  ;;  %v672_v30 = vld [vmem:[#allocation2 + $0x11] sm:$0x1]  ;;  %v1350_v32 = vld [vmem:[#allocation2 + $0x53] sm:$0x1] }
 0x110   :  { %v748_v31 = vsel %vm7087_vm2, %v747_v24, %v672_v30  ;;  %v1386_v35 = vrot.slane %v1350_v32, 7  ;;  %v653_v24 = vld [vmem:[#allocation2 + $0x40] sm:$0x1]  ;;  %v1185_v30 = vld [vmem:[#allocation2 + $0x19] sm:$0x1] }
 0x111   :  { %v598_v41 = vadd.f32 %v580_v36, %v452_v38  ;;  %v1122_v36 = vrot.slane %v1032_v33, 7  ;;  %v1349_v38 = vld [vmem:[#allocation2 + $0x13] sm:$0x1]  ;;  %v1243_v32 = vsel %vm7087_vm2, %v1242_v23, %v1185_v30  ;;  %v1190_v33 = vld [vmem:[#allocation2 + $0x5b] sm:$0x1] }
 0x112   :  { %1098 = vrot.lane.b32.xlu1 %v1097_v42, %s5175_s2  ;;  %763 = vrot.lane.b32.xlu2 %v762_v43, %s5177_s25  ;;  %v1387_v40 = vsel %vm7087_vm2, %v1386_v35, %v1349_v38  ;;  %v857_v42 = vld [vmem:[#allocation2 + $0x15] sm:$0x1]  ;;  %v1358_v35 = vld [vmem:[#allocation2 + $0x5b] sm:$0x1] }
 0x113   :  { %v618_v48 = vadd.f32 %v5440_v26, %v598_v41  ;;  %730 = vrot.lane.b32.xlu0 %v729_v45, %s5176_s24  ;;  %v908_v26 = vsel %vm7087_vm2, %v907_v53, %v847_v58  ;;  %v1123_v41 = vsel %vm7087_vm2, %v1122_v36, %v1031_v39  ;;  %v941_v43 = vsel %vm7087_vm2, %v940_v37, %v857_v42  ;;  %v684_v45 = vld [vmem:[#allocation2 + $0x5a] sm:$0x1]  ;;  %v1352_v58 = vld [vmem:[#allocation2 + $0x54] sm:$0x1]  ;;  %v1006_v36 = vld [vmem:[#allocation2 + $0x44] sm:$0x1] }
 0x114   :  { %v1393_v61 = vrot.slane %v1352_v58, 7  ;;  %v652_v39 = vld [vmem:[#allocation2] sm:$0x1]  ;;  %v1412_v46 = vrot.slane %v1358_v35, 7  ;;  %v1199_v58 = vld [vmem:[#allocation2 + $0x63] sm:$0x1] }
 0x115   :  { %v634_v50 = vmax.f32 %v618_v48, 0.0  ;;  %v780_v48 = vrot.slane %v684_v45, 7  ;;  %v1360_v35 = vld [vmem:[#allocation2 + $0x5c] sm:$0x1] }
 0x117   :  { %651 = vst.msk [vmem:[#allocation2 + $0x78] sm:$0xff] %vm7085_vm1, %v634_v50  ;;  %v1521_v50 = vld [vmem:[#allocation2 + $0x16] sm:$0x1]  ;;  %v781_v53 = vsel %vm7087_vm2, %v780_v48, %v683_v51  ;;  %v1361_v51 = vld [vmem:[#allocation2 + $0x1d] sm:$0x1] }
 0x118   :  { %v1564_v52 = vsel %vm7087_vm2, %v1563_v47, %v1521_v50  ;;  %v1039_v47 = vrot.slane %v1006_v36, 7  ;;  %v1189_v50 = vld [vmem:[#allocation2 + $0x1b] sm:$0x1] }
 0x11a   :  { %756 = vrot.lane.b32.xlu1 %v755_v56, %s5176_s24  ;;  %1558 = vrot.lane.b32.xlu2 %v1557_v57, %s5175_s2  ;;  %v1182_v56 = vld [vmem:[#allocation2 + $0x53] sm:$0x1]  ;;  %v864_v57 = vld [vmem:[#allocation2 + $0x5c] sm:$0x1] }
 0x11b   :  { %909 = vrot.lane.b32.xlu0 %v908_v26, %s5176_s24  ;;  %v1230_v59 = vrot.slane %v1182_v56, 7  ;;  %v959_v60 = vrot.slane %v864_v57, 7  ;;  %v1413_v56 = vsel %vm7087_vm2, %v1412_v46, %v1357_v54  ;;  %v1195_v57 = vld [vmem:[#allocation2 + $0x61] sm:$0x1]  ;;  %v662_v54 = vld [vmem:[#allocation2 + $0x48] sm:$0x1] }
 0x11c   :  { %v1268_v5 = vrot.slane %v1195_v57, 7 }
 0x11d   :  { %v1231_v0 = vsel %vm7087_vm2, %v1230_v59, %v1181_v62  ;;  %v960_v1 = vsel %vm7087_vm2, %v959_v60, %v863_v63  ;;  %v835_v60 = vld [vmem:[#allocation2 + $0x2] sm:$0x1] }
 0x122   :  { %935 = vrot.lane.b32.xlu1 %v934_v3, %s5176_s24  ;;  %1225 = vrot.lane.b32.xlu2 %v1224_v4, %s5176_s24  ;;  %v1394_v3 = vsel %vm7087_vm2, %v1393_v61, %v1351_v2  ;;  %v682_v4 = vld [vmem:[#allocation2 + $0x59] sm:$0x1]  ;;  %v1528_v61 = vld [vmem:[#allocation2 + $0x5d] sm:$0x1] }
 0x123   :  { %1079 = vrot.lane.b32.xlu0 %v1078_v6, %s5176_s24  ;;  %v1524_v6 = vld [vmem:[#allocation2 + $0x57] sm:$0x1]  ;;  %v773_v8 = vrot.slane %v682_v4, 7 }
 0x124   :  { %v1570_v10 = vrot.slane %v1524_v6, 7  ;;  %v1282_v6 = vrot.slane %v1199_v58, 7 }
 0x125   :  { %v774_v13 = vsel %vm7087_vm2, %v773_v8, %v681_v11  ;;  %v1582_v8 = vrot.slane %v1528_v61, 7  ;;  %v1203_v61 = vld [vmem:[#allocation2 + $0x29] sm:$0x1] }
 0x12a   :  { %1105 = vrot.lane.b32.xlu1 %v1104_v15, %s5176_s24  ;;  %1402 = vrot.lane.b32.xlu2 %v1401_v16, %s5177_s25  ;;  %v1523_v15 = vld [vmem:[#allocation2 + $0x17] sm:$0x1] }
 0x12b   :  { %1086 = vrot.lane.b32.xlu0 %v1085_v18, %s5177_s25  ;;  %v1571_v16 = vsel %vm7087_vm2, %v1570_v10, %v1523_v15  ;;  %v1036_v18 = vld [vmem:[#allocation2 + $0x5f] sm:$0x1]  ;;  %v1198_v10 = vld [vmem:[#allocation2 + $0x23] sm:$0x1] }
 0x12c   :  { %v1136_v22 = vrot.slane %v1036_v18, 7  ;;  %v1283_v12 = vsel %vm7087_vm2, %v1282_v6, %v1198_v10  ;;  %v1366_v15 = vld [vmem:[#allocation2 + $0x63] sm:$0x1]  ;;  %v686_v6 = vld [vmem:[#allocation2 + $0x5b] sm:$0x1] }
 0x12d   :  { %v844_v10 = vld [vmem:[#allocation2 + $0x4a] sm:$0x1] }
 0x132   :  { %1112 = vrot.lane.b32.xlu1 %v1111_v28, %s5177_s25  ;;  %954 = vrot.lane.b32.xlu2 %v953_v29, %s5175_s2  ;;  %v967_v28 = vsel %vm7087_vm2, %v966_v21, %v865_v25  ;;  %v1137_v29 = vsel %vm7087_vm2, %v1136_v22, %v1035_v27  ;;  %v1438_v22 = vrot.slane %v1366_v15, 7  ;;  %v1249_v25 = vrot.slane %v1188_v17, 7  ;;  %v1365_v27 = vld [vmem:[#allocation2 + $0x23] sm:$0x1] }
 0x133   :  { %749 = vrot.lane.b32.xlu0 %v748_v31, %s5175_s2  ;;  %v689_v31 = vrot.slane %v653_v24, 7 }
 0x135   :  { %v691_v42 = vsel %vm7087_vm2, %v689_v31, %v652_v39  ;;  %v1187_v31 = vld [vmem:[#allocation2 + $0x1a] sm:$0x1] }
 0x13a   :  { %1388 = vrot.lane.b32.xlu1 %v1387_v40, %s5175_s2  ;;  %1124 = vrot.lane.b32.xlu2 %v1123_v41, %s5175_s2  ;;  %v836_v40 = vld [vmem:[#allocation2 + $0x42] sm:$0x1] }
 0x13b   :  { %942 = vrot.lane.b32.xlu0 %v941_v43, %s5177_s25  ;;  %v1256_v43 = vrot.slane %v1190_v33, 7  ;;  %v869_v49 = vrot.slane %v836_v40, 7  ;;  %v1536_v33 = vld [vmem:[#allocation2 + $0x65] sm:$0x1] }
 0x13c   :  { %v1608_v40 = vrot.slane %v1536_v33, 7  ;;  %v1544_v33 = vld [vmem:[#allocation2 + $0x6d] sm:$0x1] }
 0x13d   :  { %v870_v63 = vsel %vm7087_vm2, %v869_v49, %v835_v60  ;;  %v1197_v49 = vld [vmem:[#allocation2 + $0x62] sm:$0x1] }
 0x13e   :  { %v1196_v60 = vld [vmem:[#allocation2 + $0x22] sm:$0x1] }
 0x142   :  { %1565 = vrot.lane.b32.xlu1 %v1564_v52, %s5176_s24  ;;  %782 = vrot.lane.b32.xlu2 %v781_v53, %s5176_s24  ;;  %v1257_v52 = vsel %vm7087_vm2, %v1256_v43, %v1189_v50  ;;  %v1427_v53 = vsel %vm7087_vm2, %v1426_v44, %v1361_v51  ;;  %v1535_v43 = vld [vmem:[#allocation2 + $0x25] sm:$0x1]  ;;  %v1204_v50 = vld [vmem:[#allocation2 + $0x69] sm:$0x1]  ;;  %v1530_v51 = vld [vmem:[#allocation2 + $0x5e] sm:$0x1] }
 0x143   :  { %1218 = vrot.lane.b32.xlu0 %v1217_v55, %s5175_s2  ;;  %v1005_v55 = vld [vmem:[#allocation2 + $0x4] sm:$0x1]  ;;  %v1865_v44 = vld [vmem:[#allocation2 + $0x25] sm:$0x1]  ;;  %v1294_v57 = vrot.slane %v1204_v50, 7  ;;  %v1589_v58 = vrot.slane %v1530_v51, 7 }
 0x144   :  { %v5546_v26 = vpop.permute.xlu2 %1046  ;;  %v1040_v59 = vsel %vm7087_vm2, %v1039_v47, %v1005_v55  ;;  %v1359_v47 = vld [vmem:[#allocation2 + $0x1c] sm:$0x1]  ;;  %v1543_v50 = vld [vmem:[#allocation2 + $0x2d] sm:$0x1] }
 0x145   :  { %v1141_v62 = vsel %vm7085_vm1, %v1040_v59, %v5546_v26  ;;  %v1194_v26 = vld [vmem:[#allocation2 + $0x21] sm:$0x1]  ;;  %v716_v59 = vrot.slane %v662_v54, 7  ;;  %v1531_v54 = vld [vmem:[#allocation2 + $0x1f] sm:$0x1] }
 0x146   :  { %v1269_v11 = vsel %vm7087_vm2, %v1268_v5, %v1194_v26  ;;  %v661_v5 = vld [vmem:[#allocation2 + $0x8] sm:$0x1] }
 0x14a   :  { %1232 = vrot.lane.b32.xlu1 %v1231_v0, %s5177_s25  ;;  %961 = vrot.lane.b32.xlu2 %v960_v1, %s5176_s24 }
 0x14b   :  { %1395 = vrot.lane.b32.xlu0 %v1394_v3, %s5176_s24 }
 0x14c   :  { %v705_v7 = vpop.permute.xlu2 %704 }
 0x152   :  { %775 = vrot.lane.b32.xlu1 %v774_v13, %s5175_s2  ;;  %1131 = vrot.lane.b32.xlu2 %v1130_v14, %s5176_s24  ;;  %v1527_v13 = vld [vmem:[#allocation2 + $0x1d] sm:$0x1] }
 0x153   :  { %1572 = vrot.lane.b32.xlu0 %v1571_v16, %s5177_s25  ;;  %v1583_v14 = vsel %vm7087_vm2, %v1582_v8, %v1527_v13  ;;  %v1692_v16 = vld [vmem:[#allocation2 + $0x62] sm:$0x1] }
 0x154   :  { %v891_v20 = vpop.permute.xlu2 %890  ;;  %v1735_v23 = vrot.slane %v1692_v16, 7  ;;  %v787_v16 = vrot.slane %v686_v6, 7  ;;  %v1369_v6 = vld [vmem:[#allocation2 + $0x25] sm:$0x1] }
 0x15a   :  { %968 = vrot.lane.b32.xlu1 %v967_v28, %s5177_s25  ;;  %1138 = vrot.lane.b32.xlu2 %v1137_v29, %s5177_s25  ;;  %v1691_v28 = vld [vmem:[#allocation2 + $0x22] sm:$0x1]  ;;  %v1439_v29 = vsel %vm7087_vm2, %v1438_v22, %v1365_v27  ;;  %v1367_v22 = vld [vmem:[#allocation2 + $0x24] sm:$0x1] }
 0x15b   :  { %1244 = vrot.lane.b32.xlu0 %v1243_v32, %s5175_s2  ;;  %v1736_v30 = vsel %vm7087_vm2, %v1735_v23, %v1691_v28  ;;  %v1250_v32 = vsel %vm7087_vm2, %v1249_v25, %v1187_v31  ;;  %v1373_v23 = vld [vmem:[#allocation2 + $0x2b] sm:$0x1]  ;;  %v685_v28 = vld [vmem:[#allocation2 + $0x1b] sm:$0x1] }
 0x15c   :  { %v877_v37 = vpop.permute.xlu1 %876  ;;  %v5566_v38 = vpop.permute.xlu2 %916  ;;  %v788_v31 = vsel %vm7087_vm2, %v787_v16, %v685_v28  ;;  %v1689_v28 = vld [vmem:[#allocation2 + $0x21] sm:$0x1] }
 0x15d   :  { %v698_v41 = vpop.permute.xlu0 %697  ;;  %v971_v2 = vsel %vm7085_vm1, %v870_v63, %v877_v37  ;;  %v1295_v63 = vsel %vm7087_vm2, %v1294_v57, %v1203_v61  ;;  %v1540_v57 = vld [vmem:[#allocation2 + $0x67] sm:$0x1] }
 0x15e   :  { %v792_v45 = vsel %vm7085_vm1, %v691_v42, %v698_v41  ;;  %v1912_v41 = vrot.slane %v1866_v34, 7  ;;  %v1419_v42 = vrot.slane %v1360_v35, 7  ;;  %v843_v34 = vld [vmem:[#allocation2 + $0xa] sm:$0x1]  ;;  %v1532_v35 = vld [vmem:[#allocation2 + $0x5f] sm:$0x1] }
 0x15f   :  { %v793_v48 = vsel %vm7086_vm0, %v792_v45, %v705_v7  ;;  %v1609_v45 = vsel %vm7087_vm2, %v1608_v40, %v1535_v43 }
 0x160   :  { %v1913_v46 = vsel %vm7087_vm2, %v1912_v41, %v1865_v44  ;;  %v1634_v44 = vrot.slane %v1544_v33, 7  ;;  %v1694_v33 = vld [vmem:[#allocation2 + $0x63] sm:$0x1] }
 0x162   :  { %1258 = vrot.lane.b32.xlu1 %v1257_v52, %s5177_s25  ;;  %1428 = vrot.lane.b32.xlu2 %v1427_v53, %s5177_s25 }
 0x163   :  { %1414 = vrot.lane.b32.xlu0 %v1413_v56, %s5175_s2  ;;  %v1275_v56 = vrot.slane %v1197_v49, 7  ;;  %v1537_v49 = vld [vmem:[#allocation2 + $0x26] sm:$0x1] }
 0x164   :  { %v1054_v0 = vpop.permute.xlu1 %1053  ;;  %v5581_v1 = vpop.permute.xlu2 %928 }
 0x165   :  { %v1142_v3 = vsel %vm7086_vm0, %v1141_v62, %v1054_v0  ;;  %v884_v4 = vpop.permute.xlu0 %883  ;;  %v1276_v62 = vsel %vm7087_vm2, %v1275_v56, %v1196_v60  ;;  %v1529_v0 = vld [vmem:[#allocation2 + $0x1e] sm:$0x1] }
 0x166   :  { %v972_v7 = vsel %vm7086_vm0, %v971_v2, %v884_v4  ;;  %v1590_v2 = vsel %vm7087_vm2, %v1589_v58, %v1529_v0  ;;  %v1374_v4 = vld [vmem:[#allocation2 + $0x6b] sm:$0x1]  ;;  %v1206_v58 = vld [vmem:[#allocation2 + $0x6a] sm:$0x1] }
 0x167   :  { %v5587_v9 = vsel %vm7083_vm3, %v972_v7, %v891_v20  ;;  %v717_v7 = vsel %vm7087_vm2, %v716_v59, %v661_v5  ;;  %v1370_v59 = vld [vmem:[#allocation2 + $0x65] sm:$0x1] }
 0x168   :  { %v1452_v0 = vrot.slane %v1370_v59, 7  ;;  %v1030_v59 = vld [vmem:[#allocation2 + $0x5c] sm:$0x1] }
 0x16a   :  { %1270 = vrot.lane.b32.xlu1 %v1269_v11, %s5175_s2  ;;  %1284 = vrot.lane.b32.xlu2 %v1283_v12, %s5177_s25 }
 0x16b   :  { %1584 = vrot.lane.b32.xlu0 %v1583_v14, %s5175_s2  ;;  %v1464_v14 = vrot.slane %v1374_v4, 7 }
 0x16c   :  { %v712_v18 = vpop.permute.xlu1 %711  ;;  %v5595_v19 = vpop.permute.xlu2 %763 }
 0x16d   :  { %v5598_v20 = vsel %vm7083_vm3, %v793_v48, %v712_v18  ;;  %v1061_v21 = vpop.permute.xlu0 %1060  ;;  %v1420_v48 = vsel %vm7087_vm2, %v1419_v42, %v1359_v47  ;;  %v895_v18 = vrot.slane %v844_v10, 7  ;;  %v1465_v27 = vsel %vm7087_vm2, %v1464_v14, %v1373_v23  ;;  %v1862_v10 = vld [vmem:[#allocation2 + $0x63] sm:$0x1]  ;;  %v1375_v23 = vld [vmem:[#allocation2 + $0x2c] sm:$0x1] }
 0x16e   :  { %v5601_v24 = vsel %vm7083_vm3, %v1142_v3, %v1061_v21  ;;  %v1368_v3 = vld [vmem:[#allocation2 + $0x64] sm:$0x1]  ;;  %v1898_v16 = vrot.slane %v1862_v10, 7 }
 0x16f   :  { %v1445_v13 = vrot.slane %v1368_v3, 7  ;;  %v1205_v3 = vld [vmem:[#allocation2 + $0x2a] sm:$0x1] }
 0x171   :  { %v1446_v25 = vsel %vm7087_vm2, %v1445_v13, %v1367_v22  ;;  %v1861_v22 = vld [vmem:[#allocation2 + $0x23] sm:$0x1] }
 0x172   :  { %1440 = vrot.lane.b32.xlu1 %v1439_v29, %s5175_s2  ;;  %1737 = vrot.lane.b32.xlu2 %v1736_v30, %s5176_s24 }
 0x173   :  { %1251 = vrot.lane.b32.xlu0 %v1250_v32, %s5176_s24  ;;  %v1538_v32 = vld [vmem:[#allocation2 + $0x66] sm:$0x1] }
 0x174   :  { %v5609_v36 = vpop.permute.xlu1 %902  ;;  %v5611_v37 = vpop.permute.xlu2 %1558  ;;  %v1615_v43 = vrot.slane %v1538_v32, 7 }
 0x175   :  { %v724_v39 = vpop.permute.xlu0 %723 }
 0x176   :  { %v796_v11 = vsel %vm7085_vm1, %v717_v7, %v724_v39  ;;  %v896_v39 = vsel %vm7087_vm2, %v895_v18, %v843_v34  ;;  %v1616_v51 = vsel %vm7087_vm2, %v1615_v43, %v1537_v49  ;;  %v1453_v7 = vsel %vm7087_vm2, %v1452_v0, %v1369_v6  ;;  %v1546_v34 = vld [vmem:[#allocation2 + $0x6e] sm:$0x1]  ;;  %v1014_v49 = vld [vmem:[#allocation2 + $0x4c] sm:$0x1]  ;;  %v1378_v0 = vld [vmem:[#allocation2 + $0x6d] sm:$0x1] }
 0x17a   :  { %1610 = vrot.lane.b32.xlu1 %v1609_v45, %s5175_s2  ;;  %1914 = vrot.lane.b32.xlu2 %v1913_v46, %s5177_s25  ;;  %v1596_v46 = vrot.slane %v1532_v35, 7  ;;  %v1864_v35 = vld [vmem:[#allocation2 + $0x64] sm:$0x1] }
 0x17b   :  { %1421 = vrot.lane.b32.xlu0 %v1420_v48, %s5176_s24 }
 0x17c   :  { %v738_v52 = vpop.permute.xlu1 %737  ;;  %v5619_v53 = vpop.permute.xlu2 %1225 }
 0x17d   :  { %v5621_v55 = vpop.permute.xlu0 %1072 }
 0x182   :  { %1277 = vrot.lane.b32.xlu1 %v1276_v62, %s5176_s24  ;;  %1296 = vrot.lane.b32.xlu2 %v1295_v63, %s5175_s2  ;;  %v1622_v63 = vrot.slane %v1540_v57, 7  ;;  %v1863_v57 = vld [vmem:[#allocation2 + $0x24] sm:$0x1] }
 0x183   :  { %1591 = vrot.lane.b32.xlu0 %v1590_v2, %s5176_s24  ;;  %v1539_v2 = vld [vmem:[#allocation2 + $0x27] sm:$0x1] }
 0x184   :  { %v5630_v8 = vpop.permute.xlu1 %1098  ;;  %v5632_v26 = vpop.permute.xlu2 %1402  ;;  %v1623_v4 = vsel %vm7087_vm2, %v1622_v63, %v1539_v2  ;;  %v1065_v2 = vrot.slane %v1014_v49, 7 }
 0x185   :  { %v731_v12 = vpop.permute.xlu0 %730 }
 0x186   :  { %v797_v15 = vsel %vm7086_vm0, %v796_v11, %v731_v12  ;;  %v1376_v11 = vld [vmem:[#allocation2 + $0x6c] sm:$0x1]  ;;  %v1690_v12 = vld [vmem:[#allocation2 + $0x61] sm:$0x1] }
 0x187   :  { %v798_v17 = vsel %vm7083_vm3, %v797_v15, %v738_v52  ;;  %v1635_v52 = vsel %vm7087_vm2, %v1634_v44, %v1543_v50  ;;  %v1728_v18 = vrot.slane %v1690_v12, 7  ;;  %v1478_v12 = vrot.slane %v1378_v0, 7  ;;  %v1348_v0 = vld [vmem:[#allocation2 + $0x52] sm:$0x1] }
 0x188   :  { %v809_v21 = vrot.slane %v798_v17, 7  ;;  %v1471_v17 = vrot.slane %v1376_v11, 7 }
 0x189   :  { %v1729_v32 = vsel %vm7087_vm2, %v1728_v18, %v1689_v28  ;;  %v1021_v18 = vld [vmem:[#allocation2 + $0x14] sm:$0x1]  ;;  %v1377_v28 = vld [vmem:[#allocation2 + $0x2d] sm:$0x1] }
 0x18a   :  { %v5641_v29 = vsel %vm812_vm4, %v5598_v20, %v809_v21  ;;  %v5645_v30 = vsel %vm7087_vm2, %v5598_v20, %v809_v21  ;;  %1447 = vrot.lane.b32.xlu1 %v1446_v25, %s5176_s24  ;;  %1466 = vrot.lane.b32.xlu2 %v1465_v27, %s5175_s2  ;;  %v974_v20 = vsel %vm7085_vm1, %v896_v39, %v5609_v36  ;;  %v671_v21 = vld [vmem:[#allocation2 + $0x50] sm:$0x1] }
 0x18b   :  { %789 = vrot.lane.b32.xlu0 %v788_v31, %s5177_s25  ;;  %v1899_v25 = vsel %vm7087_vm2, %v1898_v16, %v1861_v22  ;;  %v1472_v27 = vsel %vm7087_vm2, %v1471_v17, %v1375_v23  ;;  %v742_v31 = vrot.slane %v671_v21, 7  ;;  %v1176_v16 = vld [vmem:[#allocation2 + $0x50] sm:$0x1]  ;;  %v1517_v17 = vld [vmem:[#allocation2 + $0x14] sm:$0x1] }
 0x18c   :  { %v5652_v40 = vpop.permute.xlu1 %756  ;;  %v5654_v41 = vpop.permute.xlu2 %954 }
 0x18d   :  { %v910_v42 = vpop.permute.xlu0 %909 }
 0x18e   :  { %v975_v45 = vsel %vm7086_vm0, %v974_v20, %v910_v42  ;;  %v670_v42 = vld [vmem:[#allocation2 + $0x10] sm:$0x1] }
 0x18f   :  { %v976_v47 = vsel %vm7083_vm3, %v975_v45, %v5566_v38  ;;  %v1597_v38 = vsel %vm7087_vm2, %v1596_v46, %v1531_v54  ;;  %v743_v43 = vsel %vm7087_vm2, %v742_v31, %v670_v42  ;;  %v1742_v45 = vrot.slane %v1694_v33, 7  ;;  %v1702_v31 = vld [vmem:[#allocation2 + $0x6b] sm:$0x1] }
 0x190   :  { %v987_v48 = vrot.slane %v976_v47, 7  ;;  %v1641_v46 = vrot.slane %v1546_v34, 7  ;;  %v1211_v34 = vrot.slane %v1176_v16, 7  ;;  %v1870_v42 = vld [vmem:[#allocation2 + $0x6b] sm:$0x1] }
 0x192   :  { %v5665_v36 = vsel %vm812_vm4, %v5587_v9, %v987_v48  ;;  %v5669_v56 = vsel %vm7087_vm2, %v5587_v9, %v987_v48  ;;  %1617 = vrot.lane.b32.xlu1 %v1616_v51, %s5176_s24  ;;  %1636 = vrot.lane.b32.xlu2 %v1635_v52, %s5175_s2  ;;  %v1301_v9 = vrot.slane %v1206_v58, 7  ;;  %v1905_v48 = vrot.slane %v1864_v35, 7  ;;  %v1693_v51 = vld [vmem:[#allocation2 + $0x23] sm:$0x1]  ;;  %v1518_v52 = vld [vmem:[#allocation2 + $0x54] sm:$0x1] }
 0x193   :  { %1598 = vrot.lane.b32.xlu0 %v1597_v38, %s5177_s25  ;;  %v1545_v38 = vld [vmem:[#allocation2 + $0x2e] sm:$0x1]  ;;  %v1022_v58 = vld [vmem:[#allocation2 + $0x54] sm:$0x1]  ;;  %v1743_v63 = vsel %vm7087_vm2, %v1742_v45, %v1693_v51  ;;  %v1874_v35 = vld [vmem:[#allocation2 + $0x6d] sm:$0x1] }
 0x194   :  { %v5675_v60 = vpop.permute.xlu1 %935  ;;  %v5677_v61 = vpop.permute.xlu2 %1124  ;;  %v1302_v5 = vsel %vm7087_vm2, %v1301_v9, %v1205_v3  ;;  %v1642_v9 = vsel %vm7087_vm2, %v1641_v46, %v1545_v38  ;;  %v1548_v3 = vld [vmem:[#allocation2 + $0x6f] sm:$0x1]  ;;  %v1091_v6 = vrot.slane %v1022_v58, 7  ;;  %v1479_v46 = vsel %vm7087_vm2, %v1478_v12, %v1377_v28 }
 0x195   :  { %v5679_v62 = vpop.permute.xlu0 %1079  ;;  %v1648_v22 = vrot.slane %v1548_v3, 7  ;;  %v1768_v38 = vrot.slane %v1702_v31, 7  ;;  %v1924_v58 = vrot.slane %v1870_v42, 7  ;;  %v1869_v31 = vld [vmem:[#allocation2 + $0x2b] sm:$0x1] }
 0x196   :  { %v1700_v42 = vld [vmem:[#allocation2 + $0x6a] sm:$0x1] }
 0x19a   :  { %1624 = vrot.lane.b32.xlu1 %v1623_v4, %s5177_s25  ;;  %1303 = vrot.lane.b32.xlu2 %v1302_v5, %s5176_s24  ;;  %v1698_v4 = vld [vmem:[#allocation2 + $0x69] sm:$0x1]  ;;  %v1013_v5 = vld [vmem:[#allocation2 + $0xc] sm:$0x1] }
 0x19b   :  { %1454 = vrot.lane.b32.xlu0 %v1453_v7, %s5177_s25  ;;  %v1117_v7 = vrot.slane %v1030_v59, 7  ;;  %v1754_v23 = vrot.slane %v1698_v4, 7  ;;  %v826_v59 = vlaneseq }
 0x19c   :  { %v5687_v13 = vpop.permute.xlu1 %1105  ;;  %v5689_v14 = vpop.permute.xlu2 %782 }
 0x19d   :  { %v5691_v15 = vpop.permute.xlu0 %1086  ;;  %vm5755_vm9 = vcmp.lt.s32.totalorder %v826_v59, 512 }
 0x1a2   :  { %1900 = vrot.lane.b32.xlu1 %v1899_v25, %s5175_s2  ;;  %1473 = vrot.lane.b32.xlu2 %v1472_v27, %s5176_s24  ;;  %v1066_v25 = vsel %vm7087_vm2, %v1065_v2, %v1013_v5  ;;  %v1029_v27 = vld [vmem:[#allocation2 + $0x1c] sm:$0x1] }
 0x1a3   :  { %1730 = vrot.lane.b32.xlu0 %v1729_v32, %s5175_s2  ;;  %v1144_v33 = vsel %vm7085_vm1, %v1066_v25, %v5621_v55 }
 0x1a4   :  { %v5699_v39 = vpop.permute.xlu1 %1112  ;;  %v5701_v20 = vpop.permute.xlu2 %961  ;;  %v1145_v45 = vsel %vm7086_vm0, %v1144_v33, %v5679_v62  ;;  %v1175_v62 = vld [vmem:[#allocation2 + $0x10] sm:$0x1] }
 0x1a5   :  { %v750_v44 = vpop.permute.xlu0 %749  ;;  %v1146_v55 = vsel %vm7083_vm3, %v1145_v45, %v5691_v15 }
 0x1a6   :  { %v799_v47 = vsel %vm7085_vm1, %v743_v43, %v750_v44  ;;  %v1092_v43 = vsel %vm7087_vm2, %v1091_v6, %v1021_v18  ;;  %v1118_v44 = vsel %vm7087_vm2, %v1117_v7, %v1029_v27  ;;  %v1381_v6 = vrot.slane %v1348_v0, 7 }
 0x1a7   :  { %v800_v50 = vsel %vm7086_vm0, %v799_v47, %v5652_v40  ;;  %v1906_v40 = vsel %vm7087_vm2, %v1905_v48, %v1863_v57  ;;  %v1547_v47 = vld [vmem:[#allocation2 + $0x2f] sm:$0x1]  ;;  %v1697_v48 = vld [vmem:[#allocation2 + $0x29] sm:$0x1]  ;;  %v1147_v49 = vsel %vm7085_vm1, %v1092_v43, %v5630_v8  ;;  %v1938_v57 = vrot.slane %v1874_v35, 7 }
 0x1a8   :  { %v5709_v54 = vsel %vm7083_vm3, %v800_v50, %v5595_v19  ;;  %v1551_v19 = vrot.slane %v1518_v52, 7  ;;  %v1649_v50 = vsel %vm7087_vm2, %v1648_v22, %v1547_v47  ;;  %v1755_v51 = vsel %vm7087_vm2, %v1754_v23, %v1697_v48  ;;  %v1701_v22 = vld [vmem:[#allocation2 + $0x2b] sm:$0x1]  ;;  %v1873_v23 = vld [vmem:[#allocation2 + $0x2d] sm:$0x1] }
 0x1a9   :  { %v1148_v52 = vsel %vm7086_vm0, %v1147_v49, %v5687_v13  ;;  %v1150_v8 = vsel %vm7085_vm1, %v1118_v44, %v5677_v61  ;;  %v1769_v28 = vsel %vm7087_vm2, %v1768_v38, %v1701_v22  ;;  %v1347_v35 = vld [vmem:[#allocation2 + $0x12] sm:$0x1]  ;;  %v1710_v38 = vld [vmem:[#allocation2 + $0x33] sm:$0x1] }
 0x1aa   :  { %1744 = vrot.lane.b32.xlu1 %v1743_v63, %s5177_s25  ;;  %1643 = vrot.lane.b32.xlu2 %v1642_v9, %s5176_s24  ;;  %v1552_v32 = vsel %vm7087_vm2, %v1551_v19, %v1517_v17  ;;  %v1149_v15 = vsel %vm7083_vm3, %v1148_v52, %v5699_v39  ;;  %v1212_v63 = vsel %vm7087_vm2, %v1211_v34, %v1175_v62  ;;  %v1157_v9 = vrot.slane %v1146_v55, 7  ;;  %v1711_v34 = vld [vmem:[#allocation2 + $0x73] sm:$0x1]  ;;  %v1706_v62 = vld [vmem:[#allocation2 + $0x31] sm:$0x1] }
 0x1ab   :  { %1907 = vrot.lane.b32.xlu0 %v1906_v40, %s5176_s24  ;;  %v1653_v13 = vsel %vm7085_vm1, %v1552_v32, %v5611_v37  ;;  %v1158_v19 = vrot.slane %v1149_v15, 6  ;;  %v1707_v32 = vld [vmem:[#allocation2 + $0x71] sm:$0x1]  ;;  %v1382_v43 = vsel %vm7087_vm2, %v1381_v6, %v1347_v35  ;;  %v1794_v55 = vrot.slane %v1711_v34, 7  ;;  %v851_v6 = vld [vmem:[#allocation2 + $0x12] sm:$0x1] }
 0x1ac   :  { %v5717_v10 = vpop.permute.xlu1 %1388  ;;  %v1132_v11 = vpop.permute.xlu2 %1131  ;;  %v1160_v12 = vsel %vm812_vm4, %v5601_v24, %v1157_v9  ;;  %v1163_v16 = vsel %vm7087_vm2, %v5601_v24, %v1157_v9  ;;  %v1925_v24 = vsel %vm7087_vm2, %v1924_v58, %v1869_v31  ;;  %v1780_v49 = vrot.slane %v1707_v32, 7  ;;  %v860_v9 = vld [vmem:[#allocation2 + $0x5a] sm:$0x1]  ;;  %v1886_v31 = vld [vmem:[#allocation2 + $0x7b] sm:$0x1] }
 0x1ad   :  { %v5719_v21 = vpop.permute.xlu0 %942  ;;  %v1151_v2 = vsel %vm7086_vm0, %v1150_v8, %v1132_v11  ;;  %v1699_v8 = vld [vmem:[#allocation2 + $0x2a] sm:$0x1] }
 0x1ae   :  { %v1781_v58 = vsel %vm7087_vm2, %v1780_v49, %v1706_v62 }
 0x1b2   :  { %1480 = vrot.lane.b32.xlu1 %v1479_v46, %s5177_s25  ;;  %1650 = vrot.lane.b32.xlu2 %v1649_v50, %s5177_s25  ;;  %v1483_v46 = vsel %vm7085_vm1, %v1382_v43, %v5717_v10  ;;  %v1795_v10 = vsel %vm7087_vm2, %v1794_v55, %v1710_v38  ;;  %v1708_v55 = vld [vmem:[#allocation2 + $0x32] sm:$0x1] }
 0x1b3   :  { %1756 = vrot.lane.b32.xlu0 %v1755_v51, %s5175_s2  ;;  %v1761_v51 = vrot.slane %v1700_v42, 7 }
 0x1b4   :  { %v1566_v40 = vpop.permute.xlu1 %1565  ;;  %v1139_v3 = vpop.permute.xlu2 %1138 }
 0x1b5   :  { %v5750_v61 = vsel %vm7086_vm0, %v1653_v13, %v1566_v40  ;;  %v1152_v39 = vsel %vm7083_vm3, %v1151_v2, %v1139_v3  ;;  %v1219_v4 = vpop.permute.xlu0 %1218  ;;  %v1762_v15 = vsel %vm7087_vm2, %v1761_v51, %v1699_v8  ;;  %v1716_v13 = vld [vmem:[#allocation2 + $0x79] sm:$0x1] }
 0x1b6   :  { %v1159_v5 = vrot.slane %v1152_v39, 5  ;;  %v1313_v37 = vsel %vm7085_vm1, %v1212_v63, %v1219_v4  ;;  %v1878_v63 = vld [vmem:[#allocation2 + $0x73] sm:$0x1]  ;;  %v1806_v4 = vrot.slane %v1716_v13, 7 }
 0x1b7   :  { %v1314_v11 = vsel %vm7086_vm0, %v1313_v37, %v5619_v53  ;;  %v1939_v53 = vsel %vm7087_vm2, %v1938_v57, %v1873_v23  ;;  %v852_v57 = vld [vmem:[#allocation2 + $0x52] sm:$0x1]  ;;  %v1950_v39 = vrot.slane %v1878_v63, 7 }
 0x1b8   :  { %v1161_v17 = vsel %vm814_vm5, %v1158_v19, %v1159_v5  ;;  %v1164_v18 = vsel %vm819_vm7, %v1158_v19, %v1159_v5  ;;  %v921_v0 = vrot.slane %v852_v57, 7  ;;  %v947_v19 = vrot.slane %v860_v9, 7  ;;  %v1207_v57 = vld [vmem:[#allocation2 + $0x2b] sm:$0x1] }
 0x1b9   :  { %v1162_v25 = vsel %vm816_vm6, %v1160_v12, %v1161_v17  ;;  %v1165_v27 = vsel %vm7084_vm8, %v1163_v16, %v1164_v18  ;;  %v1877_v12 = vld [vmem:[#allocation2 + $0x33] sm:$0x1]  ;;  %v1715_v16 = vld [vmem:[#allocation2 + $0x39] sm:$0x1]  ;;  %v859_v18 = vld [vmem:[#allocation2 + $0x1a] sm:$0x1] }
 0x1ba   :  { %v1166_v33 = vrot.slane %v1165_v27, 1  ;;  %1170 = vst.msk [vmem:[#allocation4 + $0x2] ss:$8 sm:$0xf] %vm5755_vm9, %v1162_v25  ;;  %1770 = vrot.lane.b32.xlu1 %v1769_v28, %s5177_s25  ;;  %1940 = vrot.lane.b32.xlu2 %v1939_v53, %s5177_s25  ;;  %v1951_v22 = vsel %vm7087_vm2, %v1950_v39, %v1877_v12  ;;  %v1807_v23 = vsel %vm7087_vm2, %v1806_v4, %v1715_v16  ;;  %v1871_v25 = vld [vmem:[#allocation2 + $0x2c] sm:$0x1] }
 0x1bb   :  { %1926 = vrot.lane.b32.xlu0 %v1925_v24, %s5175_s2  ;;  %v948_v27 = vsel %vm7087_vm2, %v947_v19, %v859_v18  ;;  %v1709_v53 = vld [vmem:[#allocation2 + $0x72] sm:$0x1]  ;;  %v1717_v39 = vld [vmem:[#allocation2 + $0x3a] sm:$0x1]  ;;  %v1888_v12 = vld [vmem:[#allocation2 + $0x7c] sm:$0x1] }
 0x1bc   :  { %1173 = vst.msk [vmem:[#allocation4 + $0x42] ss:$8 sm:$0xf] %vm5755_vm9, %v1166_v33  ;;  %v1233_v44 = vpop.permute.xlu1 %1232  ;;  %v5780_v45 = vpop.permute.xlu2 %1428  ;;  %v1208_v33 = vld [vmem:[#allocation2 + $0x6b] sm:$0x1]  ;;  %v1787_v43 = vrot.slane %v1709_v53, 7 }
 0x1bd   :  { %v5785_v47 = vsel %vm7083_vm3, %v1314_v11, %v1233_v44  ;;  %v1396_v48 = vpop.permute.xlu0 %1395  ;;  %v922_v11 = vsel %vm7087_vm2, %v921_v0, %v851_v6  ;;  %v1976_v44 = vrot.slane %v1886_v31, 7  ;;  %v2042_v16 = vld [vmem:[#allocation2 + $0x6e] sm:$0x1]  ;;  %v2047_v53 = vld [vmem:[#allocation2 + $0x35] sm:$0x1] }
 0x1be   :  { %v1484_v50 = vsel %vm7086_vm0, %v1483_v46, %v1396_v48  ;;  %v977_v17 = vsel %vm7085_vm1, %v922_v11, %v5581_v1  ;;  %v980_v1 = vsel %vm7085_vm1, %v948_v27, %v5654_v41  ;;  %v1308_v48 = vrot.slane %v1208_v33, 7  ;;  %v2048_v11 = vld [vmem:[#allocation2 + $0x75] sm:$0x1]  ;;  %v1887_v31 = vld [vmem:[#allocation2 + $0x3c] sm:$0x1] }
 0x1bf   :  { %v5790_v52 = vsel %vm7083_vm3, %v1484_v50, %v5632_v26  ;;  %v1872_v26 = vld [vmem:[#allocation2 + $0x6c] sm:$0x1]  ;;  %v1885_v50 = vld [vmem:[#allocation2 + $0x3b] sm:$0x1]  ;;  %v1788_v62 = vsel %vm7087_vm2, %v1787_v43, %v1708_v55  ;;  %v1983_v27 = vrot.slane %v1888_v12, 7 }
 0x1c0   :  { %v1931_v37 = vrot.slane %v1872_v26, 7  ;;  %v1977_v38 = vsel %vm7087_vm2, %v1976_v44, %v1885_v50  ;;  %v1309_v8 = vsel %vm7087_vm2, %v1308_v48, %v1207_v57  ;;  %v2041_v33 = vld [vmem:[#allocation2 + $0x2e] sm:$0x1]  ;;  %v1183_v43 = vld [vmem:[#allocation2 + $0x18] sm:$0x1] }
 0x1c1   :  { %v1882_v44 = vld [vmem:[#allocation2 + $0x75] sm:$0x1] }
 0x1c2   :  { %1782 = vrot.lane.b32.xlu1 %v1781_v58, %s5175_s2  ;;  %1796 = vrot.lane.b32.xlu2 %v1795_v10, %s5177_s25  ;;  %v1932_v28 = vsel %vm7087_vm2, %v1931_v37, %v1871_v25  ;;  %v1880_v58 = vld [vmem:[#allocation2 + $0x74] sm:$0x1]  ;;  %v2039_v37 = vld [vmem:[#allocation2 + $0x2d] sm:$0x1]  ;;  %v2120_v25 = vrot.slane %v2048_v11, 7 }
 0x1c3   :  { %1763 = vrot.lane.b32.xlu0 %v1762_v15, %s5176_s24  ;;  %v1957_v9 = vrot.slane %v1880_v58, 7 }
 0x1c4   :  { %v5798_v2 = vpop.permute.xlu1 %775  ;;  %v5800_v40 = vpop.permute.xlu2 %1284 }
 0x1c5   :  { %v1573_v3 = vpop.permute.xlu0 %1572 }
 0x1c6   :  { %v5804_v5 = vsel %vm7083_vm3, %v5750_v61, %v1573_v3  ;;  %v978_v61 = vsel %vm7086_vm0, %v977_v17, %v5675_v60  ;;  %v981_v60 = vsel %vm7086_vm0, %v980_v1, %v5701_v20  ;;  %v1879_v3 = vld [vmem:[#allocation2 + $0x34] sm:$0x1]  ;;  %v2121_v1 = vsel %vm7087_vm2, %v2120_v25, %v2047_v53 }
 0x1c7   :  { %v979_v32 = vsel %vm7083_vm3, %v978_v61, %v5719_v21  ;;  %v1958_v4 = vsel %vm7087_vm2, %v1957_v9, %v1879_v3  ;;  %v2101_v61 = vrot.slane %v2042_v16, 7  ;;  %v1881_v9 = vld [vmem:[#allocation2 + $0x35] sm:$0x1]  ;;  %v2056_v3 = vld [vmem:[#allocation2 + $0x7d] sm:$0x1] }
 0x1c8   :  { %v988_v46 = vrot.slane %v979_v32, 6  ;;  %v1984_v32 = vsel %vm7087_vm2, %v1983_v27, %v1887_v31  ;;  %v2146_v25 = vrot.slane %v2056_v3, 7 }
 0x1ca   :  { %1952 = vrot.lane.b32.xlu1 %v1951_v22, %s5175_s2  ;;  %1808 = vrot.lane.b32.xlu2 %v1807_v23, %s5175_s2  ;;  %v1184_v22 = vld [vmem:[#allocation2 + $0x58] sm:$0x1] }
 0x1cb   :  { %1933 = vrot.lane.b32.xlu0 %v1932_v28, %s5176_s24  ;;  %v1237_v28 = vrot.slane %v1184_v22, 7 }
 0x1cc   :  { %v969_v24 = vpop.permute.xlu1 %968  ;;  %v5824_v34 = vpop.permute.xlu2 %1737 }
 0x1cd   :  { %v982_v35 = vsel %vm7083_vm3, %v981_v60, %v969_v24  ;;  %v5827_v42 = vpop.permute.xlu0 %1244  ;;  %v2102_v60 = vsel %vm7087_vm2, %v2101_v61, %v2041_v33  ;;  %v2050_v24 = vld [vmem:[#allocation2 + $0x76] sm:$0x1]  ;;  %v2055_v33 = vld [vmem:[#allocation2 + $0x3d] sm:$0x1] }
 0x1ce   :  { %v989_v41 = vrot.slane %v982_v35, 5  ;;  %v2052_v35 = vld [vmem:[#allocation2 + $0x77] sm:$0x1]  ;;  %v2127_v50 = vrot.slane %v2050_v24, 7  ;;  %v1192_v24 = vld [vmem:[#allocation2 + $0x20] sm:$0x1] }
 0x1d0   :  { %v991_v21 = vsel %vm814_vm5, %v988_v46, %v989_v41  ;;  %v994_v49 = vsel %vm819_vm7, %v988_v46, %v989_v41  ;;  %v1238_v46 = vsel %vm7087_vm2, %v1237_v28, %v1183_v43  ;;  %v1719_v43 = vld [vmem:[#allocation2 + $0x3b] sm:$0x1] }
 0x1d1   :  { %v992_v20 = vsel %vm816_vm6, %v5665_v36, %v991_v21  ;;  %v995_v51 = vsel %vm7084_vm8, %v5669_v56, %v994_v49  ;;  %v1718_v36 = vld [vmem:[#allocation2 + $0x7a] sm:$0x1]  ;;  %v2040_v56 = vld [vmem:[#allocation2 + $0x6d] sm:$0x1]  ;;  %v1316_v21 = vsel %vm7085_vm1, %v1238_v46, %v5827_v42 }
 0x1d2   :  { %v996_v10 = vrot.slane %v995_v51, 1  ;;  %1000 = vst.msk [vmem:[#allocation4 + $0x1] ss:$8 sm:$0xf] %vm5755_vm9, %v992_v20  ;;  %1789 = vrot.lane.b32.xlu1 %v1788_v62, %s5176_s24  ;;  %1978 = vrot.lane.b32.xlu2 %v1977_v38, %s5175_s2  ;;  %v1813_v26 = vrot.slane %v1718_v36, 7  ;;  %v2094_v0 = vrot.slane %v2040_v56, 7 }
 0x1d3   :  { %1310 = vrot.lane.b32.xlu0 %v1309_v8, %s5177_s25  ;;  %v1356_v49 = vld [vmem:[#allocation2 + $0x5a] sm:$0x1]  ;;  %v2134_v20 = vrot.slane %v2052_v35, 7  ;;  %v1964_v62 = vrot.slane %v1882_v44, 7  ;;  %v2051_v8 = vld [vmem:[#allocation2 + $0x37] sm:$0x1] }
 0x1d4   :  { %1003 = vst.msk [vmem:[#allocation4 + $0x41] ss:$8 sm:$0xf] %vm5755_vm9, %v996_v10  ;;  %v1259_v15 = vpop.permute.xlu1 %1258  ;;  %v5845_v63 = vpop.permute.xlu2 %1914  ;;  %v1814_v19 = vsel %vm7087_vm2, %v1813_v26, %v1717_v39  ;;  %v2095_v6 = vsel %vm7087_vm2, %v2094_v0, %v2039_v37  ;;  %v1407_v57 = vrot.slane %v1356_v49, 7  ;;  %v2049_v10 = vld [vmem:[#allocation2 + $0x36] sm:$0x1] }
 0x1d5   :  { %v5847_v13 = vpop.permute.xlu0 %1414  ;;  %v2128_v36 = vsel %vm7087_vm2, %v2127_v50, %v2049_v10  ;;  %v2135_v56 = vsel %vm7087_vm2, %v2134_v20, %v2051_v8  ;;  %v1890_v0 = vld [vmem:[#allocation2 + $0x7d] sm:$0x1]  ;;  %v1355_v39 = vld [vmem:[#allocation2 + $0x1a] sm:$0x1]  ;;  %v1193_v37 = vld [vmem:[#allocation2 + $0x60] sm:$0x1] }
 0x1d6   :  { %v1990_v22 = vrot.slane %v1890_v0, 7  ;;  %v1263_v28 = vrot.slane %v1193_v37, 7  ;;  %v1201_v44 = vld [vmem:[#allocation2 + $0x28] sm:$0x1]  ;;  %v2044_v49 = vld [vmem:[#allocation2 + $0x6f] sm:$0x1] }
 0x1d7   :  { %v5000_v10 = vld [vmem:[%s7072_s3 + $0xb8] sm:$0xff]  ;;  %v2057_v37 = vld [vmem:[#allocation2 + $0x3e] sm:$0x1] }
 0x1d8   :  { %v1264_v50 = vsel %vm7087_vm2, %v1263_v28, %v1192_v24  ;;  %v4984_v8 = vld [vmem:[%s7072_s3 + $0x38] sm:$0xff]  ;;  %2674 = vmatpush.bf16.msrb.mxu2 %v5000_v10  ;;  %v2060_v28 = vld [vmem:[#allocation2 + $0x7f] sm:$0x1] }
 0x1d9   :  { %v4992_v0 = vld [vmem:[%s7072_s3 + $0x78] sm:$0xff]  ;;  %2638 = vmatpush.bf16.msrb.mxu0 %v4984_v8 }
 0x1da   :  { %1959 = vrot.lane.b32.xlu1 %v1958_v4, %s5176_s24  ;;  %1815 = vrot.lane.b32.xlu2 %v1814_v19, %s5176_s24  ;;  %v1720_v4 = vld [vmem:[#allocation2 + $0x7b] sm:$0x1]  ;;  %v1408_v19 = vsel %vm7087_vm2, %v1407_v57, %v1355_v39 }
 0x1db   :  { %2096 = vrot.lane.b32.xlu0 %v2095_v6, %s5175_s2  ;;  %v1202_v6 = vld [vmem:[#allocation2 + $0x68] sm:$0x1]  ;;  %v1486_v12 = vsel %vm7085_vm1, %v1408_v19, %v5847_v13  ;;  %v1820_v61 = vrot.slane %v1720_v4, 7  ;;  %v2147_v13 = vsel %vm7087_vm2, %v2146_v25, %v2055_v33  ;;  %2656 = vmatpush.bf16.msrb.mxu1 %v4992_v0  ;;  %v679_v4 = vld [vmem:[#allocation2 + $0x18] sm:$0x1] }
 0x1dc   :  { %v5855_v17 = vpop.permute.xlu1 %1270  ;;  %v5857_v18 = vpop.permute.xlu2 %1296  ;;  %v1289_v53 = vrot.slane %v1202_v6, 7  ;;  %v2043_v19 = vld [vmem:[#allocation2 + $0x2f] sm:$0x1]  ;;  %v2034_v25 = vld [vmem:[#allocation2 + $0x66] sm:$0x1] }
 0x1dd   :  { %v5859_v23 = vpop.permute.xlu0 %1584 }
 0x1de   :  { %v1290_v20 = vsel %vm7087_vm2, %v1289_v53, %v1201_v44 }
 0x1e2   :  { %2122 = vrot.lane.b32.xlu1 %v2121_v1, %s5175_s2  ;;  %1985 = vrot.lane.b32.xlu2 %v1984_v32, %s5176_s24  ;;  %v1889_v32 = vld [vmem:[#allocation2 + $0x3d] sm:$0x1] }
 0x1e3   :  { %2103 = vrot.lane.b32.xlu0 %v2102_v60, %s5176_s24  ;;  %v680_v60 = vld [vmem:[#allocation2 + $0x58] sm:$0x1]  ;;  %v1991_v35 = vsel %vm7087_vm2, %v1990_v22, %v1889_v32  ;;  %v2031_v22 = vld [vmem:[#allocation2 + $0x25] sm:$0x1] }
 0x1e4   :  { %v5868_v41 = vpop.permute.xlu1 %1440  ;;  %v5870_v48 = vpop.permute.xlu2 %1466 }
 0x1e5   :  { %v1252_v55 = vpop.permute.xlu0 %1251 }
 0x1e6   :  { %v1317_v51 = vsel %vm7086_vm0, %v1316_v21, %v1252_v55  ;;  %v2058_v55 = vld [vmem:[#allocation2 + $0x7e] sm:$0x1] }
 0x1e7   :  { %v1318_v38 = vsel %vm7083_vm3, %v1317_v51, %v1259_v15  ;;  %v1965_v15 = vsel %vm7087_vm2, %v1964_v62, %v1881_v9  ;;  %v2032_v51 = vld [vmem:[#allocation2 + $0x65] sm:$0x1]  ;;  %v768_v62 = vrot.slane %v680_v60, 7  ;;  %v2108_v9 = vrot.slane %v2044_v49, 7  ;;  %v1526_v60 = vld [vmem:[#allocation2 + $0x5c] sm:$0x1] }
 0x1e8   :  { %v1329_v58 = vrot.slane %v1318_v38, 7  ;;  %v1322_v38 = vsel %vm7085_vm1, %v1290_v20, %v5857_v18  ;;  %v2068_v39 = vrot.slane %v2032_v51, 7  ;;  %v4983_v49 = vld [vmem:[%s7072_s3 + $0x30] sm:$0xff]  ;;  %v1577_v20 = vrot.slane %v1526_v60, 7 }
 0x1e9   :  { %v769_v6 = vsel %vm7087_vm2, %v768_v62, %v679_v4  ;;  %2639 = vmatpush.bf16.msrb.mxu0 %v4983_v49 }
 0x1ea   :  { %v5880_v42 = vsel %vm812_vm4, %v5785_v47, %v1329_v58  ;;  %v5884_v26 = vsel %vm7087_vm2, %v5785_v47, %v1329_v58  ;;  %2129 = vrot.lane.b32.xlu1 %v2128_v36, %s5176_s24  ;;  %2136 = vrot.lane.b32.xlu2 %v2135_v56, %s5177_s25  ;;  %v5008_v36 = vld [vmem:[%s7072_s3 + $0xf8] sm:$0xff] }
 0x1eb   :  { %1966 = vrot.lane.b32.xlu0 %v1965_v15, %s5177_s25  ;;  %v2153_v15 = vrot.slane %v2058_v55, 7  ;;  %2692 = vmatpush.bf16.msrb.mxu3 %v5008_v36  ;;  %v1542_v36 = vld [vmem:[#allocation2 + $0x6c] sm:$0x1] }
 0x1ec   :  { %v5891_v11 = vpop.permute.xlu1 %1610  ;;  %v5893_v47 = vpop.permute.xlu2 %1636 }
 0x1ed   :  { %v1422_v16 = vpop.permute.xlu0 %1421 }
 0x1ee   :  { %v1487_v27 = vsel %vm7086_vm0, %v1486_v12, %v1422_v16  ;;  %v2109_v12 = vsel %vm7087_vm2, %v2108_v9, %v2043_v19  ;;  %v2154_v16 = vsel %vm7087_vm2, %v2153_v15, %v2057_v37  ;;  %v1525_v9 = vld [vmem:[#allocation2 + $0x1c] sm:$0x1]  ;;  %v1629_v19 = vrot.slane %v1542_v36, 7  ;;  %v1859_v36 = vld [vmem:[#allocation2 + $0x22] sm:$0x1] }
 0x1ef   :  { %v1488_v31 = vsel %vm7083_vm3, %v1487_v27, %v5780_v45  ;;  %v1821_v45 = vsel %vm7087_vm2, %v1820_v61, %v1719_v43  ;;  %v2069_v27 = vsel %vm7087_vm2, %v2068_v39, %v2031_v22  ;;  %v2036_v61 = vld [vmem:[#allocation2 + $0x67] sm:$0x1]  ;;  %v810_v43 = vrot.slane %v5709_v54, 6  ;;  %v4991_v54 = vld [vmem:[%s7072_s3 + $0x70] sm:$0xff] }
 0x1f0   :  { %v1499_v1 = vrot.slane %v1488_v31, 7  ;;  %2657 = vmatpush.bf16.msrb.mxu1 %v4991_v54 }
 0x1f2   :  { %v5904_v46 = vsel %vm812_vm4, %v5790_v52, %v1499_v1  ;;  %v5908_v21 = vsel %vm7087_vm2, %v5790_v52, %v1499_v1  ;;  %1992 = vrot.lane.b32.xlu1 %v1991_v35, %s5177_s25  ;;  %2148 = vrot.lane.b32.xlu2 %v2147_v13, %s5175_s2  ;;  %v1319_v52 = vsel %vm7085_vm1, %v1264_v50, %v5855_v17  ;;  %v2075_v1 = vrot.slane %v2034_v25, 7  ;;  %v2033_v35 = vld [vmem:[#allocation2 + $0x26] sm:$0x1]  ;;  %v2035_v50 = vld [vmem:[#allocation2 + $0x27] sm:$0x1] }
 0x1f3   :  { %1822 = vrot.lane.b32.xlu0 %v1821_v45, %s5177_s25  ;;  %v2160_v13 = vrot.slane %v2060_v28, 7  ;;  %v4999_v45 = vld [vmem:[%s7072_s3 + $0xb0] sm:$0xff] }
 0x1f4   :  { %v1278_v57 = vpop.permute.xlu1 %1277  ;;  %v1304_v58 = vpop.permute.xlu2 %1303  ;;  %v2076_v55 = vsel %vm7087_vm2, %v2075_v1, %v2033_v35  ;;  %2675 = vmatpush.bf16.msrb.mxu2 %v4999_v45  ;;  %v5006_v35 = vld [vmem:[%s7072_s3 + $0xe8] sm:$0xff] }
 0x1f5   :  { %v1320_v56 = vsel %vm7086_vm0, %v1319_v52, %v1278_v57  ;;  %v5931_v17 = vsel %vm7086_vm0, %v1322_v38, %v1304_v58  ;;  %v5933_v18 = vpop.permute.xlu0 %1591  ;;  %v2059_v38 = vld [vmem:[#allocation2 + $0x3f] sm:$0x1]  ;;  %v1534_v57 = vld [vmem:[#allocation2 + $0x64] sm:$0x1] }
 0x1f6   :  { %v5940_v3 = vsel %vm7083_vm3, %v1320_v56, %v5800_v40  ;;  %v802_v40 = vsel %vm7085_vm1, %v769_v6, %v5798_v2  ;;  %v2082_v2 = vrot.slane %v2036_v61, 7  ;;  %v2161_v8 = vsel %vm7087_vm2, %v2160_v13, %v2059_v38 }
 0x1f7   :  { %v803_v32 = vsel %vm7086_vm0, %v802_v40, %v5689_v14  ;;  %v5007_v14 = vld [vmem:[%s7072_s3 + $0xf0] sm:$0xff]  ;;  %v1603_v4 = vrot.slane %v1534_v57, 7 }
 0x1f8   :  { %v2083_v52 = vsel %vm7087_vm2, %v2082_v2, %v2035_v50  ;;  %2693 = vmatpush.bf16.msrb.mxu3 %v5007_v14  ;;  %v1688_v50 = vld [vmem:[#allocation2 + $0x60] sm:$0x1] }
 0x1fa   :  { %2110 = vrot.lane.b32.xlu1 %v2109_v12, %s5177_s25  ;;  %2155 = vrot.lane.b32.xlu2 %v2154_v16, %s5176_s24  ;;  %v1533_v12 = vld [vmem:[#allocation2 + $0x24] sm:$0x1]  ;;  %v1541_v16 = vld [vmem:[#allocation2 + $0x2c] sm:$0x1] }
 0x1fb   :  { %2070 = vrot.lane.b32.xlu0 %v2069_v27, %s5175_s2  ;;  %v1604_v22 = vsel %vm7087_vm2, %v1603_v4, %v1533_v12  ;;  %v1630_v25 = vsel %vm7087_vm2, %v1629_v19, %v1541_v16  ;;  %v1371_v16 = vld [vmem:[#allocation2 + $0x2a] sm:$0x1] }
 0x1fc   :  { %v5951_v53 = vpop.permute.xlu1 %1447  ;;  %v5953_v31 = vpop.permute.xlu2 %1473  ;;  %v1659_v40 = vsel %vm7085_vm1, %v1604_v22, %v5891_v11  ;;  %v1662_v27 = vsel %vm7085_vm1, %v1630_v25, %v5893_v47  ;;  %v4998_v11 = vld [vmem:[%s7072_s3 + $0xa8] sm:$0xff]  ;;  %2694 = vmatpush.bf16.msrb.mxu3 %v5006_v35  ;;  %v4997_v25 = vld [vmem:[%s7072_s3 + $0xa0] sm:$0xff] }
 0x1fd   :  { %v790_v33 = vpop.permute.xlu0 %789  ;;  %v4982_v47 = vld [vmem:[%s7072_s3 + $0x28] sm:$0xff]  ;;  %2676 = vmatpush.bf16.msrb.mxu2 %v4998_v11 }
 0x1fe   :  { %v804_v24 = vsel %vm7083_vm3, %v803_v32, %v790_v33  ;;  %2640 = vmatpush.bf16.msrb.mxu0 %v4982_v47 }
 0x1ff   :  { %v811_v44 = vrot.slane %v804_v24, 5 }
 0x201   :  { %v815_v51 = vsel %vm814_vm5, %v810_v43, %v811_v44  ;;  %v820_v62 = vsel %vm819_vm7, %v810_v43, %v811_v44  ;;  %v4990_v43 = vld [vmem:[%s7072_s3 + $0x68] sm:$0xff]  ;;  %2677 = vmatpush.bf16.msrb.mxu2 %v4997_v25  ;;  %v1867_v25 = vld [vmem:[#allocation2 + $0x2a] sm:$0x1] }
 0x202   :  { %v817_v58 = vsel %vm816_vm6, %v5641_v29, %v815_v51  ;;  %v822_v10 = vsel %vm7084_vm8, %v5645_v30, %v820_v62  ;;  %2077 = vrot.lane.b32.xlu1 %v2076_v55, %s5176_s24  ;;  %2084 = vrot.lane.b32.xlu2 %v2083_v52, %s5177_s25  ;;  %v1578_v30 = vsel %vm7087_vm2, %v1577_v20, %v1525_v9  ;;  %v1723_v20 = vrot.slane %v1688_v50, 7  ;;  %v1860_v51 = vld [vmem:[#allocation2 + $0x62] sm:$0x1]  ;;  %v1687_v52 = vld [vmem:[#allocation2 + $0x20] sm:$0x1] }
 0x203   :  { %v823_v56 = vrot.slane %v822_v10, 1  ;;  %830 = vst.msk [vmem:[#allocation4] ss:$8 sm:$0xf] %vm5755_vm9, %v817_v58  ;;  %2162 = vrot.lane.b32.xlu0 %v2161_v8, %s5177_s25  ;;  %v1656_v39 = vsel %vm7085_vm1, %v1578_v30, %v5859_v23  ;;  %2658 = vmatpush.bf16.msrb.mxu1 %v4990_v43  ;;  %v1893_v38 = vrot.slane %v1860_v51, 7  ;;  %v4988_v43 = vld [vmem:[%s7072_s3 + $0x58] sm:$0xff] }
 0x204   :  { %v1618_v15 = vpop.permute.xlu1 %1617  ;;  %v1644_v29 = vpop.permute.xlu2 %1643  ;;  %v1657_v37 = vsel %vm7086_vm0, %v1656_v39, %v5933_v18  ;;  %v1724_v57 = vsel %vm7087_vm2, %v1723_v20, %v1687_v52  ;;  %v1364_v58 = vld [vmem:[#allocation2 + $0x62] sm:$0x1]  ;;  %v1372_v8 = vld [vmem:[#allocation2 + $0x6a] sm:$0x1]  ;;  %s5178_s25 = smov [#allocation6]  }
 0x205   :  { %833 = vst.msk [vmem:[#allocation4 + $0x40] ss:$8 sm:$0xf] %vm5755_vm9, %v823_v56  ;;  %v1599_v0 = vpop.permute.xlu0 %1598  ;;  %v1660_v61 = vsel %vm7086_vm0, %v1659_v40, %v1618_v15  ;;  %v1663_v28 = vsel %vm7086_vm0, %v1662_v27, %v1644_v29  ;;  %v1433_v56 = vrot.slane %v1364_v58, 7  ;;  %v1894_v9 = vsel %vm7087_vm2, %v1893_v38, %v1859_v36  ;;  %v4981_v40 = vld [vmem:[%s7072_s3 + $0x20] sm:$0xff]  ;;  %v5003_v20 = vld [vmem:[%s7072_s3 + $0xd0] sm:$0xff] }
 0x206   :  { %v1658_v6 = vsel %vm7083_vm3, %v1657_v37, %v1599_v0  ;;  %v1459_v4 = vrot.slane %v1372_v8, 7  ;;  %v1363_v37 = vld [vmem:[#allocation2 + $0x22] sm:$0x1]  ;;  %v5005_v27 = vld [vmem:[%s7072_s3 + $0xe0] sm:$0xff]  ;;  %2641 = vmatpush.bf16.msrb.mxu0 %v4981_v40  ;;  %v4987_v51 = vld [vmem:[%s7072_s3 + $0x50] sm:$0xff]  ;;  %s4137_s26 = sshll.u32 %s5178_s25, 4  ;;  %s4138_s26 = int_to_ptr.vmem [resolvable:$true] %s4137_s26 }
 0x207   :  { %v1669_v23 = vrot.slane %v1658_v6, 7  ;;  %v1434_v6 = vsel %vm7087_vm2, %v1433_v56, %v1363_v37  ;;  %2695 = vmatpush.bf16.msrb.mxu3 %v5005_v27  ;;  %v1714_v27 = vld [vmem:[#allocation2 + $0x78] sm:$0x1] }
 0x208   :  { %v1489_v12 = vsel %vm7085_vm1, %v1434_v6, %v5868_v41  ;;  %v1460_v22 = vsel %vm7087_vm2, %v1459_v4, %v1371_v16  ;;  %v1868_v4 = vld [vmem:[#allocation2 + $0x6a] sm:$0x1]  ;;  %v1695_v16 = vld [vmem:[#allocation2 + $0x28] sm:$0x1] }
 0x209   :  { %v1672_v13 = vsel %vm812_vm4, %v5804_v5, %v1669_v23  ;;  %v1675_v44 = vsel %vm7087_vm2, %v5804_v5, %v1669_v23  ;;  %v1492_v41 = vsel %vm7085_vm1, %v1460_v22, %v5870_v48  ;;  %v1919_v6 = vrot.slane %v1868_v4, 7 }
 0x20c   :  { %v1625_v18 = vpop.permute.xlu1 %1624  ;;  %v1651_v1 = vpop.permute.xlu2 %1650 }
 0x20d   :  { %v1661_v32 = vsel %vm7083_vm3, %v1660_v61, %v1625_v18  ;;  %v1664_v33 = vsel %vm7083_vm3, %v1663_v28, %v1651_v1  ;;  %v1455_v2 = vpop.permute.xlu0 %1454  ;;  %v1493_v61 = vsel %vm7086_vm0, %v1492_v41, %v5953_v31 }
 0x20e   :  { %v1670_v60 = vrot.slane %v1661_v32, 6  ;;  %v1671_v24 = vrot.slane %v1664_v33, 5 }
 0x210   :  { %v1673_v45 = vsel %vm814_vm5, %v1670_v60, %v1671_v24  ;;  %v1676_v49 = vsel %vm819_vm7, %v1670_v60, %v1671_v24 }
 0x211   :  { %v1674_v14 = vsel %vm816_vm6, %v1672_v13, %v1673_v45  ;;  %v1677_v55 = vsel %vm7084_vm8, %v1675_v44, %v1676_v49  ;;  %v4996_v13 = vld [vmem:[%s7072_s3 + $0x98] sm:$0xff] }
 0x212   :  { %v1678_v54 = vrot.slane %v1677_v55, 1  ;;  %1682 = vst.msk [vmem:[#allocation4 + $0x5] ss:$8 sm:$0xf] %vm5755_vm9, %v1674_v14  ;;  %2678 = vmatpush.bf16.msrb.mxu2 %v4996_v13  ;;  %v1875_v13 = vld [vmem:[#allocation2 + $0x32] sm:$0x1] }
 0x214   :  { %1685 = vst.msk [vmem:[#allocation4 + $0x45] ss:$8 sm:$0xf] %vm5755_vm9, %v1678_v54  ;;  %v1901_v5 = vpop.permute.xlu1 %1900  ;;  %v6071_v24 = vpop.permute.xlu2 %1940  ;;  %v4995_v54 = vld [vmem:[%s7072_s3 + $0x90] sm:$0xff] }
 0x215   :  { %v1731_v62 = vpop.permute.xlu0 %1730  ;;  %v1995_v30 = vsel %vm7085_vm1, %v1894_v9, %v1901_v5  ;;  %v4979_v5 = vld [vmem:[%s7072_s3 + $0x10] sm:$0xff] }
 0x216   :  { %v1825_v10 = vsel %vm7085_vm1, %v1724_v57, %v1731_v62  ;;  %2679 = vmatpush.bf16.msrb.mxu2 %v4995_v54  ;;  %v1330_v57 = vrot.slane %v5940_v3, 6 }
 0x217   :  { %v1826_v29 = vsel %vm7086_vm0, %v1825_v10, %v5824_v34  ;;  %v1490_v34 = vsel %vm7086_vm0, %v1489_v12, %v5951_v53  ;;  %v4989_v53 = vld [vmem:[%s7072_s3 + $0x60] sm:$0xff]  ;;  %v1876_v12 = vld [vmem:[#allocation2 + $0x72] sm:$0x1] }
 0x218   :  { %v1491_v23 = vsel %vm7083_vm3, %v1490_v34, %v1455_v2  ;;  %2659 = vmatpush.bf16.msrb.mxu1 %v4989_v53  ;;  %v1884_v34 = vld [vmem:[#allocation2 + $0x7a] sm:$0x1]  ;;  %v1945_v53 = vrot.slane %v1876_v12, 7 }
 0x219   :  { %v1500_v32 = vrot.slane %v1491_v23, 6  ;;  %v1920_v23 = vsel %vm7087_vm2, %v1919_v6, %v1867_v25 }
 0x21c   :  { %v1745_v15 = vpop.permute.xlu1 %1744  ;;  %2660 = vmatpush.bf16.msrb.mxu1 %v4988_v43  ;;  %v6091_v44 = vpop.permute.xlu2 %1796  ;;  %v1883_v43 = vld [vmem:[#allocation2 + $0x3a] sm:$0x1] }
 0x21d   :  { %v6034_v0 = vsel %vm7083_vm3, %v1826_v29, %v1745_v15  ;;  %v1908_v39 = vpop.permute.xlu0 %1907 }
 0x21e   :  { %v6037_v19 = vsel %vm7086_vm0, %v1995_v30, %v1908_v39  ;;  %v1696_v30 = vld [vmem:[#allocation2 + $0x68] sm:$0x1] }
 0x220   :  { %2661 = vmatpush.bf16.msrb.mxu1 %v4987_v51 }
 0x224   :  { %v1481_v28 = vpop.permute.xlu1 %1480  ;;  %v6093_v50 = vpop.permute.xlu2 %1808 }
 0x225   :  { %v1494_v18 = vsel %vm7083_vm3, %v1493_v61, %v1481_v28  ;;  %v6063_v1 = vpop.permute.xlu0 %1756 }
 0x226   :  { %v1501_v48 = vrot.slane %v1494_v18, 5 }
 0x228   :  { %v1503_v33 = vsel %vm814_vm5, %v1500_v32, %v1501_v48  ;;  %v1506_v2 = vsel %vm819_vm7, %v1500_v32, %v1501_v48 }
 0x229   :  { %v1504_v60 = vsel %vm816_vm6, %v5904_v46, %v1503_v33  ;;  %v1507_v31 = vsel %vm7084_vm8, %v5908_v21, %v1506_v2  ;;  %v4980_v46 = vld [vmem:[%s7072_s3 + $0x18] sm:$0xff]  ;;  %v1971_v33 = vrot.slane %v1884_v34, 7 }
 0x22a   :  { %v1508_v11 = vrot.slane %v1507_v31, 1  ;;  %1512 = vst.msk [vmem:[#allocation4 + $0x4] ss:$8 sm:$0xf] %vm5755_vm9, %v1504_v60  ;;  %v5004_v21 = vld [vmem:[%s7072_s3 + $0xd8] sm:$0xff]  ;;  %2642 = vmatpush.bf16.msrb.mxu0 %v4980_v46  ;;  %v1801_v31 = vrot.slane %v1714_v27, 7 }
 0x22b   :  { %2696 = vmatpush.bf16.msrb.mxu3 %v5004_v21  ;;  %v1704_v2 = vld [vmem:[#allocation2 + $0x30] sm:$0x1]  ;;  %v1946_v21 = vsel %vm7087_vm2, %v1945_v53, %v1875_v13  ;;  %v6180_v27 = vld [vmem:[#allocation2 + $0x6c] sm:$0x1]  ;;  %v6188_v53 = vld [vmem:[#allocation2 + $0x7c] sm:$0x1] }
 0x22c   :  { %1515 = vst.msk [vmem:[#allocation4 + $0x44] ss:$8 sm:$0xf] %vm5755_vm9, %v1508_v11  ;;  %v6077_v47 = vpop.permute.xlu1 %1770  ;;  %v1979_v10 = vpop.permute.xlu2 %1978 }
 0x22d   :  { %v1927_v35 = vpop.permute.xlu0 %1926 }
 0x22e   :  { %2643 = vmatpush.bf16.msrb.mxu0 %v4979_v5  ;;  %v1998_v18 = vsel %vm7085_vm1, %v1920_v23, %v1927_v35  ;;  %v1972_v5 = vsel %vm7087_vm2, %v1971_v33, %v1883_v43  ;;  %v6186_v23 = vld [vmem:[#allocation2 + $0x64] sm:$0x1]  ;;  %v2089_v33 = vrot.slane %v6180_v27, 7 }
 0x22f   :  { %2697 = vmatpush.bf16.msrb.mxu3 %v5003_v20  ;;  %v2004_v51 = vsel %vm7085_vm1, %v1972_v5, %v1979_v10  ;;  %v1997_v10 = vsel %vm7083_vm3, %v6037_v19, %v5845_v63 }
 0x234   :  { %v1783_v45 = vpop.permute.xlu1 %1782  ;;  %v1816_v3 = vpop.permute.xlu2 %1815 }
 0x235   :  { %v1764_v49 = vpop.permute.xlu0 %1763 }
 0x23c   :  { %v1953_v14 = vpop.permute.xlu1 %1952  ;;  %v1986_v61 = vpop.permute.xlu2 %1985 }
 0x23d   :  { %v1934_v55 = vpop.permute.xlu0 %1933  ;;  %v2001_v35 = vsel %vm7085_vm1, %v1946_v21, %v1953_v14 }
 0x23e   :  { %v1999_v60 = vsel %vm7086_vm0, %v1998_v18, %v1934_v55  ;;  %v1713_v55 = vld [vmem:[#allocation2 + $0x38] sm:$0x1]  ;;  %v4978_v18 = vld [vmem:[%s7072_s3 + $0x8] sm:$0xff] }
 0x23f   :  { %2644 = vmatpush.bf16.msrb.mxu0 %v4978_v18  ;;  %v2053_v18 = vld [vmem:[#allocation2 + $0x3c] sm:$0x1] }
 0x244   :  { %v1790_v62 = vpop.permute.xlu1 %1789 }
 0x245   :  { %v1311_v52 = vpop.permute.xlu0 %1310 }
 0x246   :  { %v1324_v38 = vsel %vm7083_vm3, %v5931_v17, %v1311_v52 }
 0x247   :  { %v1331_v58 = vrot.slane %v1324_v38, 5  ;;  %v2005_v38 = vsel %vm7086_vm0, %v2004_v51, %v1986_v61  ;;  %v4994_v61 = vld [vmem:[%s7072_s3 + $0x88] sm:$0xff] }
 0x248   :  { %2680 = vmatpush.bf16.msrb.mxu2 %v4994_v61 }
 0x249   :  { %v1333_v8 = vsel %vm814_vm5, %v1330_v57, %v1331_v58  ;;  %v1336_v36 = vsel %vm819_vm7, %v1330_v57, %v1331_v58 }
 0x24a   :  { %v1334_v56 = vsel %vm816_vm6, %v5880_v42, %v1333_v8  ;;  %v1337_v9 = vsel %vm7084_vm8, %v5884_v26, %v1336_v36  ;;  %v1749_v42 = vrot.slane %v1696_v30, 7  ;;  %v1705_v26 = vld [vmem:[#allocation2 + $0x70] sm:$0x1] }
 0x24b   :  { %v1338_v15 = vrot.slane %v1337_v9, 1  ;;  %1342 = vst.msk [vmem:[#allocation4 + $0x3] ss:$8 sm:$0xf] %vm5755_vm9, %v1334_v56  ;;  %v1775_v40 = vrot.slane %v1705_v26, 7  ;;  %v6159_v56 = vpop.permute.xlu2 %2136 }
 0x24c   :  { %v1960_v29 = vpop.permute.xlu1 %1959  ;;  %v1750_v22 = vsel %vm7087_vm2, %v1749_v42, %v1695_v16 }
 0x24d   :  { %1345 = vst.msk [vmem:[#allocation4 + $0x43] ss:$8 sm:$0xf] %vm5755_vm9, %v1338_v15  ;;  %v6120_v17 = vpop.permute.xlu0 %2096  ;;  %v1828_v41 = vsel %vm7085_vm1, %v1750_v22, %v6063_v1  ;;  %v1776_v11 = vsel %vm7087_vm2, %v1775_v40, %v1704_v2  ;;  %v2002_v20 = vsel %vm7086_vm0, %v2001_v35, %v1960_v29  ;;  %v2046_v22 = vld [vmem:[#allocation2 + $0x74] sm:$0x1] }
 0x24e   :  { %v1829_v32 = vsel %vm7086_vm0, %v1828_v41, %v1764_v49  ;;  %v1831_v1 = vsel %vm7085_vm1, %v1776_v11, %v1783_v45  ;;  %v2000_v49 = vsel %vm7083_vm3, %v1999_v60, %v6071_v24  ;;  %v1802_v45 = vsel %vm7087_vm2, %v1801_v31, %v1713_v55  ;;  %v2045_v2 = vld [vmem:[#allocation2 + $0x34] sm:$0x1]  ;;  %v4986_v31 = vld [vmem:[%s7072_s3 + $0x48] sm:$0xff] }
 0x24f   :  { %v1830_v46 = vsel %vm7083_vm3, %v1829_v32, %v6077_v47  ;;  %v1832_v54 = vsel %vm7086_vm0, %v1831_v1, %v1790_v62  ;;  %v1834_v14 = vsel %vm7085_vm1, %v1802_v45, %v6093_v50  ;;  %v2011_v24 = vrot.slane %v2000_v49, 7  ;;  %v5002_v32 = vld [vmem:[%s7072_s3 + $0xc8] sm:$0xff]  ;;  %2662 = vmatpush.bf16.msrb.mxu1 %v4986_v31 }
 0x250   :  { %v1841_v47 = vrot.slane %v1830_v46, 7  ;;  %v1833_v62 = vsel %vm7083_vm3, %v1832_v54, %v6091_v44  ;;  %v1835_v58 = vsel %vm7086_vm0, %v1834_v14, %v1816_v3  ;;  %v2115_v41 = vrot.slane %v2046_v22, 7  ;;  %2698 = vmatpush.bf16.msrb.mxu3 %v5002_v32 }
 0x251   :  { %v1842_v3 = vrot.slane %v1833_v62, 6  ;;  %v2014_v4 = vsel %vm812_vm4, %v1997_v10, %v2011_v24  ;;  %v2017_v42 = vsel %vm7087_vm2, %v1997_v10, %v2011_v24  ;;  %v2063_v60 = vrot.slane %v6186_v23, 7 }
 0x252   :  { %v1844_v29 = vsel %vm812_vm4, %v6034_v0, %v1841_v47  ;;  %v1847_v44 = vsel %vm7087_vm2, %v6034_v0, %v1841_v47  ;;  %v2141_v11 = vrot.slane %v6188_v53, 7  ;;  %v2116_v13 = vsel %vm7087_vm2, %v2115_v41, %v2045_v2 }
 0x254   :  { %v6122_v39 = vpop.permute.xlu1 %2122 }
 0x255   :  { %v6124_v37 = vpop.permute.xlu0 %2103  ;;  %v2171_v49 = vsel %vm7085_vm1, %v2116_v13, %v6122_v39  ;;  %vm7092_vm1 = vcmask 1042433  }
 0x25c   :  { %v6130_v28 = vpop.permute.xlu1 %2129 }
 0x25d   :  { %v1967_v48 = vpop.permute.xlu0 %1966  ;;  %v2172_v45 = vsel %vm7086_vm0, %v2171_v49, %v6130_v28  ;;  %vm7094_vm0 = vcmask 1043458  }
 0x25e   :  { %v2003_v52 = vsel %vm7083_vm3, %v2002_v20, %v1967_v48  ;;  %v6199_v48 = vpop.permute.xlu2 %2148 }
 0x25f   :  { %v2012_v9 = vrot.slane %v2003_v52, 6 }
 0x264   :  { %v1993_v57 = vpop.permute.xlu1 %1992 }
 0x265   :  { %v2006_v8 = vsel %vm7083_vm3, %v2005_v38, %v1993_v57  ;;  %v1823_v36 = vpop.permute.xlu0 %1822 }
 0x266   :  { %v2013_v50 = vrot.slane %v2006_v8, 5  ;;  %v1836_v15 = vsel %vm7083_vm3, %v1835_v58, %v1823_v36  ;;  %vm2269_vm3 = vcmask 1046528  }
 0x267   :  { %v1843_v30 = vrot.slane %v1836_v15, 5 }
 0x268   :  { %v2015_v63 = vsel %vm814_vm5, %v2012_v9, %v2013_v50  ;;  %v2018_v19 = vsel %vm819_vm7, %v2012_v9, %v2013_v50 }
 0x269   :  { %v2016_v6 = vsel %vm816_vm6, %v2014_v4, %v2015_v63  ;;  %v2019_v26 = vsel %vm7084_vm8, %v2017_v42, %v2018_v19  ;;  %v1845_v12 = vsel %vm814_vm5, %v1842_v3, %v1843_v30  ;;  %v1848_v16 = vsel %vm819_vm7, %v1842_v3, %v1843_v30  ;;  %v2156_v42 = vpop.permute.xlu2 %2155 }
 0x26a   :  { %v2020_v0 = vrot.slane %v2019_v26, 1  ;;  %2024 = vst.msk [vmem:[#allocation4 + $0x7] ss:$8 sm:$0xf] %vm5755_vm9, %v2016_v6  ;;  %v1846_v34 = vsel %vm816_vm6, %v1844_v29, %v1845_v12  ;;  %v1849_v25 = vsel %vm7084_vm8, %v1847_v44, %v1848_v16  ;;  %vm7089_vm8 = vcmask 1046533  }
 0x26b   :  { %v1850_v40 = vrot.slane %v1849_v25, 1  ;;  %1854 = vst.msk [vmem:[#allocation4 + $0x6] ss:$8 sm:$0xf] %vm5755_vm9, %v1846_v34  ;;  %v2037_v34 = vld [vmem:[#allocation2 + $0x2c] sm:$0x1] }
 0x26c   :  { %2027 = vst.msk [vmem:[#allocation4 + $0x47] ss:$8 sm:$0xf] %vm5755_vm9, %v2020_v0  ;;  %v2111_v8 = vpop.permute.xlu1 %2110 }
 0x26d   :  { %1857 = vst.msk [vmem:[#allocation4 + $0x46] ss:$8 sm:$0xf] %vm5755_vm9, %v1850_v40  ;;  %v2071_v15 = vpop.permute.xlu0 %2070 }
 0x272   :  { %v2200_v1 = vld [vmem:[#allocation4 + $0x8] sm:$0xff]  ;;  %v2201_v46 = vld [vmem:[#allocation4 + $0x10] sm:$0xff]  ;;  %v2202_v21 = vld [vmem:[#allocation4 + $0x18] sm:$0xff] }
 0x273   :  { %v2231_v43 = vrot.slane %v2200_v1, 7  ;;  %v2232_v35 = vrot.slane %v2201_v46, 6  ;;  %v2199_v54 = vld [vmem:[#allocation4] sm:$0xff]  ;;  %v2233_v20 = vrot.slane %v2202_v21, 5  ;;  %v2029_v46 = vld [vmem:[#allocation2 + $0x24] sm:$0x1] }
 0x274   :  { %v2208_v55 = vld [vmem:[#allocation4 + $0x48] sm:$0xff]  ;;  %v2209_v5 = vld [vmem:[#allocation4 + $0x50] sm:$0xff]  ;;  %v2210_v29 = vld [vmem:[#allocation4 + $0x58] sm:$0xff]  ;;  %v2078_v49 = vpop.permute.xlu1 %2077 }
 0x275   :  { %v6212_v51 = vrot.slane %v2208_v55, 7  ;;  %v2243_v47 = vsel %vm812_vm4, %v2199_v54, %v2231_v43  ;;  %v2246_v52 = vsel %vm7087_vm2, %v2199_v54, %v2231_v43  ;;  %v6216_v14 = vrot.slane %v2209_v5, 6  ;;  %vm7095_vm2 = vmmov %vm7093_vm11 }
 0x276   :  { %v2244_v38 = vsel %vm814_vm5, %v2232_v35, %v2233_v20  ;;  %v2247_v39 = vsel %vm819_vm7, %v2232_v35, %v2233_v20  ;;  %v2250_v24 = vsel %vm814_vm5, %v2199_v54, %v2231_v43  ;;  %v2252_v28 = vsel %vm7093_vm11, %v2232_v35, %v2233_v20 }
 0x277   :  { %v2245_v62 = vsel %vm816_vm6, %v2243_v47, %v2244_v38  ;;  %v2248_v57 = vsel %vm7092_vm1, %v2246_v52, %v2247_v39  ;;  %v2256_v58 = vsel %vm819_vm7, %v2199_v54, %v2231_v43  ;;  %v2254_v10 = vsel %vm7094_vm0, %v2250_v24, %v2252_v28  ;;  %v2085_v39 = vpop.permute.xlu2 %2084 }
 0x278   :  { %v2249_v36 = vrot.slane %v2248_v57, 1  ;;  %v2258_v9 = vsel %vm2257_vm12, %v2232_v35, %v2233_v20  ;;  %v2262_v50 = vsel %vm7095_vm2, %v2199_v54, %v2231_v43  ;;  %2321 = vst [vmem:[#allocation1] ss:$9 sm:$0xff] %v2245_v62  ;;  %v2255_v44 = vrot.slane %v2254_v10, 2 }
 0x279   :  { %v2260_v3 = vsel %vm2259_vm13, %v2256_v58, %v2258_v9  ;;  %v2264_v30 = vsel %vm2263_vm14, %v2232_v35, %v2233_v20  ;;  %v2268_v4 = vsel %vm2257_vm12, %v2199_v54, %v2231_v43  ;;  %v2270_v6 = vsel %vm2269_vm3, %v2233_v20, %v2232_v35 }
 0x27a   :  { %v2261_v63 = vrot.slane %v2260_v3, 3  ;;  %v2266_v19 = vsel %vm2265_vm15, %v2262_v50, %v2264_v30  ;;  %v2274_v26 = vsel %vm2263_vm14, %v2199_v54, %v2231_v43  ;;  %2323 = vst [vmem:[#allocation1 + $0x1] ss:$9 sm:$0xff] %v2249_v36  ;;  %v2272_v16 = vsel %vm7089_vm8, %v2268_v4, %v2270_v6 }
 0x27b   :  { %v2267_v12 = vrot.slane %v2266_v19, 4  ;;  %v2275_v22 = vsel %vm812_vm4, %v2232_v35, %v2233_v20  ;;  %v2279_v0 = vsel %vm2269_vm3, %v2231_v43, %v2199_v54  ;;  %2325 = vst [vmem:[#allocation1 + $0x2] ss:$9 sm:$0xff] %v2255_v44  ;;  %v6237_v25 = vrot.slane %v2210_v29, 5 }
 0x27c   :  { %v2273_v40 = vrot.slane %v2272_v16, 5  ;;  %v2277_v41 = vsel %vm7088_vm10, %v2275_v22, %v2274_v26  ;;  %vm7096_vm0 = vcmask 1041409   ;;  %2327 = vst [vmem:[#allocation1 + $0x3] ss:$9 sm:$0xff] %v2261_v63  ;;  %vm7098_vm2 = vcmask 1046529   ;;  %v4977_v16 = vld [vmem:[%s7072_s3] sm:$0xff] }
 0x27d   :  { %v2280_v61 = vsel %vm7096_vm0, %v2232_v35, %v2233_v20  ;;  %vm7097_vm1 = vmmov %vm7096_vm0  ;;  %v2278_v2 = vrot.slane %v2277_v41, 6  ;;  %2329 = vst [vmem:[#allocation1 + $0x4] ss:$9 sm:$0xff] %v2267_v12  ;;  %vm7099_vm11 = vcmask 261120   ;;  %vm7102_vm8 = vcmask 785408   ;;  %v2163_v20 = vpop.permute.xlu0 %2162  ;;  %v4993_v12 = vld [vmem:[%s7072_s3 + $0x80] sm:$0xff]  ;;  %2645 = vmatpush.bf16.msrb.mxu0 %v4977_v16 }
 0x27e   :  { %v2090_v32 = vsel %vm7097_vm1, %v2089_v33, %v2037_v34  ;;  %v2282_v31 = vsel %vm7098_vm2, %v2280_v61, %v2279_v0  ;;  %2331 = vst [vmem:[#allocation1 + $0x5] ss:$9 sm:$0xff] %v2273_v40  ;;  %vm7100_vm10 = vmmov %vm7096_vm0  ;;  %vm7101_vm0 = vcmask 523264   ;;  %v2173_v27 = vsel %vm7102_vm8, %v2172_v45, %v6159_v56  ;;  %v6254_v33 = vld [vmem:[#allocation4 + $0x40] sm:$0xff]  ;;  %2681 = vmatpush.bf16.msrb.mxu2 %v4993_v12 }
 0x27f   :  { %v2168_v13 = vsel %vm7099_vm11, %v2090_v32, %v6120_v17  ;;  %v2283_v1 = vrot.slane %v2282_v31, 7  ;;  %v2142_v21 = vsel %vm7100_vm10, %v2141_v11, %v2053_v18  ;;  %2333 = vst [vmem:[#allocation1 + $0x6] ss:$9 sm:$0xff] %v2278_v2  ;;  %v2064_v17 = vsel %vm7097_vm1, %v2063_v60, %v2029_v46  ;;  %vm7103_vm2 = vmmov %vm7099_vm11  ;;  %v5001_v41 = vld [vmem:[%s7072_s3 + $0xc0] sm:$0xff] }
 0x280   :  { %v2169_v43 = vsel %vm7101_vm0, %v2168_v13, %v6124_v37  ;;  %v2174_v35 = vsel %vm7103_vm2, %v2142_v21, %v6199_v48  ;;  %vm7104_vm11 = vmmov %vm7097_vm1  ;;  %v2291_v37 = vsel %vm819_vm7, %v6216_v14, %v6237_v25  ;;  %v2294_v23 = vsel %vm814_vm5, %v6254_v33, %v6212_v51  ;;  %v4985_v61 = vld [vmem:[%s7072_s3 + $0x40] sm:$0xff]  ;;  %2699 = vmatpush.bf16.msrb.mxu3 %v5001_v41 }
 0x281   :  { %v2290_v53 = vsel %vm7104_vm11, %v6254_v33, %v6212_v51  ;;  %2335 = vst [vmem:[#allocation1 + $0x7] ss:$9 sm:$0xff] %v2283_v1  ;;  %v2170_v56 = vsel %vm7102_vm8, %v2169_v43, %v2111_v8  ;;  %vm7105_vm10 = vcmask 1044484   ;;  %v2298_v48 = vsel %vm819_vm7, %v6254_v33, %v6212_v51  ;;  %vm7106_vm1 = vmmov %vm7103_vm2  ;;  %2663 = vmatpush.bf16.msrb.mxu1 %v4985_v61 }
 0x282   :  { %v2295_v60 = vsel %vm7105_vm10, %v6216_v14, %v6237_v25  ;;  %v2299_v11 = vsel %vm2257_vm12, %v6216_v14, %v6237_v25  ;;  %v2175_v54 = vsel %vm7101_vm0, %v2174_v35, %v2156_v42  ;;  %v2182_v55 = vrot.slane %v2173_v27, 6  ;;  %vm7109_vm8 = vmmov %vm7105_vm10 }
 0x283   :  { %v2165_v5 = vsel %vm7106_vm1, %v2064_v17, %v2071_v15  ;;  %v2287_v45 = vsel %vm812_vm4, %v6254_v33, %v6212_v51  ;;  %v2288_v47 = vsel %vm814_vm5, %v6216_v14, %v6237_v25  ;;  %vm7107_vm2 = vcmask 1042433   ;;  %vm7110_vm10 = vmmov %vm7101_vm0 }
 0x284   :  { %v2292_v52 = vsel %vm7107_vm2, %v2290_v53, %v2291_v37  ;;  %v2181_v38 = vrot.slane %v2170_v56, 7  ;;  %vm7108_vm11 = vcmask 1043458   ;;  %v2300_v62 = vsel %vm2259_vm13, %v2298_v48, %v2299_v11 }
 0x285   :  { %v2296_v24 = vsel %vm7108_vm11, %v2294_v23, %v2295_v60  ;;  %v2302_v57 = vsel %vm7109_vm8, %v6254_v33, %v6212_v51  ;;  %v2166_v28 = vsel %vm7110_vm10, %v2165_v5, %v2078_v49  ;;  %v2303_v58 = vsel %vm2263_vm14, %v6216_v14, %v6237_v25 }
 0x286   :  { %v2306_v8 = vsel %vm2257_vm12, %v6254_v33, %v6212_v51  ;;  %vm7111_vm0 = vcmask 785408   ;;  %v2307_v9 = vsel %vm2269_vm3, %v6237_v25, %v6216_v14  ;;  %v2310_v50 = vsel %vm2263_vm14, %v6254_v33, %v6212_v51 }
 0x287   :  { %v2167_v36 = vsel %vm7111_vm0, %v2166_v28, %v2085_v39  ;;  %vm7112_vm1 = vmmov %vm7111_vm0  ;;  %v2311_v15 = vsel %vm812_vm4, %v6216_v14, %v6237_v25  ;;  %vm7113_vm12 = vcmask 1041409   ;;  %v2289_v42 = vsel %vm816_vm6, %v2287_v45, %v2288_v47 }
 0x288   :  { %v2176_v10 = vsel %vm7112_vm1, %v2175_v54, %v2163_v20  ;;  %v6312_v44 = vld [vmem:[#allocation1] sm:$0xff]  ;;  %v6314_v3 = vld [vmem:[#allocation1 + $0x9] sm:$0xff]  ;;  %v6316_v30 = vld [vmem:[#allocation1 + $0x12] sm:$0xff]  ;;  %v2187_v4 = vsel %vm7113_vm12, %v2167_v36, %v2181_v38  ;;  %v2293_v63 = vrot.slane %v2292_v52, 1  ;;  %v2304_v19 = vsel %vm2265_vm15, %v2302_v57, %v2303_v58 }
 0x289   :  { %v2183_v29 = vrot.slane %v2176_v10, 5  ;;  %v6321_v6 = vld [vmem:[#allocation1 + $0x1b] sm:$0xff]  ;;  %v2297_v22 = vrot.slane %v2296_v24, 2  ;;  %v2301_v0 = vrot.slane %v2300_v62, 3  ;;  %vm7114_vm13 = vcmask 1046533   ;;  %vm7116_vm15 = vmmov %vm7107_vm2 }
 0x28a   :  { %v2308_v34 = vsel %vm7114_vm13, %v2306_v8, %v2307_v9  ;;  %vm7115_vm14 = vcmask 1045504   ;;  %2341 = vst [vmem:[#allocation1 + $0x1] ss:$9 sm:$0xff] %v2289_v42  ;;  %v2184_v18 = vsel %vm812_vm4, %v2167_v36, %v2181_v38  ;;  %v2305_v31 = vrot.slane %v2304_v19, 4 }
 0x28b   :  { %v2188_v26 = vsel %vm819_vm7, %v2182_v55, %v2183_v29  ;;  %v2312_v40 = vsel %vm7115_vm14, %v2311_v15, %v2310_v50  ;;  %2342 = vst [vmem:[#allocation1 + $0x2] ss:$9 sm:$0xff] %v2293_v63  ;;  %v2185_v32 = vsel %vm814_vm5, %v2182_v55, %v2183_v29  ;;  %v2309_v13 = vrot.slane %v2308_v34, 5 }
 0x28c   :  { %v2189_v2 = vsel %vm7116_vm15, %v2187_v4, %v2188_v26  ;;  %2343 = vst [vmem:[#allocation1 + $0x3] ss:$9 sm:$0xff] %v2297_v22  ;;  %v2313_v1 = vrot.slane %v2312_v40, 6  ;;  %v2186_v46 = vsel %vm816_vm6, %v2184_v18, %v2185_v32  ;;  %v2314_v7 = vsel %vm2269_vm3, %v6212_v51, %v6254_v33 }
 0x28d   :  { %2344 = vst [vmem:[#allocation1 + $0x4] ss:$9 sm:$0xff] %v2301_v0  ;;  %v2190_v21 = vrot.slane %v2189_v2, 1  ;;  %vm7118_vm2 = vcmask 1046529   ;;  %vm2763_vm3 = vcmask 518144   ;;  %vm7124_vm1 = vcmask 523264  }
 0x28e   :  { %2345 = vst [vmem:[#allocation1 + $0x5] ss:$9 sm:$0xff] %v2305_v31  ;;  %vm7128_vm15 = vmmov %vm7124_vm1 }
 0x28f   :  { %2346 = vst [vmem:[#allocation1 + $0x6] ss:$9 sm:$0xff] %v2309_v13 }
 0x290   :  { %2347 = vst [vmem:[#allocation1 + $0x7] ss:$9 sm:$0xff] %v2313_v1 }
 0x291   :  { %2194 = vst.msk [vmem:[#allocation4 + $0x20] ss:$8 sm:$0xf] %vm5755_vm9, %v2186_v46 }
 0x292   :  { %2197 = vst.msk [vmem:[#allocation4 + $0x60] ss:$8 sm:$0xf] %vm5755_vm9, %v2190_v21  ;;  %vm7117_vm9 = vmmov %vm7113_vm12 }
 0x293   :  { %v2315_v55 = vsel %vm7117_vm9, %v6216_v14, %v6237_v25 }
 0x294   :  { %v2316_v47 = vsel %vm7118_vm2, %v2315_v55, %v2314_v7 }
 0x295   :  { %v2317_v24 = vrot.slane %v2316_v47, 7 }
 0x298   :  { %v2204_v43 = vld [vmem:[#allocation4 + $0x28] sm:$0x1]  ;;  %v2205_v27 = vld [vmem:[#allocation4 + $0x30] sm:$0x1]  ;;  %v2206_v17 = vld [vmem:[#allocation4 + $0x38] sm:$0x1] }
 0x299   :  { %v2234_v35 = vrot.slane %v2204_v43, 7  ;;  %v2235_v53 = vrot.slane %v2205_v27, 6  ;;  %v2203_v37 = vld [vmem:[#allocation4 + $0x20] sm:$0x1]  ;;  %v2236_v56 = vrot.slane %v2206_v17, 5 }
 0x29a   :  { %v2212_v48 = vld [vmem:[#allocation4 + $0x68] sm:$0x1]  ;;  %v2213_v11 = vld [vmem:[#allocation4 + $0x70] sm:$0x1]  ;;  %v2214_v49 = vld [vmem:[#allocation4 + $0x78] sm:$0x1] }
 0x29b   :  { %v2284_v23 = vsel %vm812_vm4, %v2203_v37, %v2234_v35  ;;  %v2285_v60 = vsel %vm814_vm5, %v2235_v53, %v2236_v56  ;;  %v2240_v5 = vrot.slane %v2212_v48, 7  ;;  %v2241_v20 = vrot.slane %v2213_v11, 6  ;;  %v2211_v52 = vld [vmem:[#allocation4 + $0x60] sm:$0x1] }
 0x29c   :  { %v2286_v54 = vsel %vm816_vm6, %v2284_v23, %v2285_v60  ;;  %v2242_v45 = vrot.slane %v2214_v49, 5 }
 0x29d   :  { %2340 = vst [vmem:[#allocation1] ss:$9 sm:$0xff] %v2286_v54  ;;  %v2318_v38 = vsel %vm812_vm4, %v2211_v52, %v2240_v5 }
 0x29e   :  { %v2319_v39 = vsel %vm814_vm5, %v2241_v20, %v2242_v45  ;;  %vm7119_vm5 = vmmov %vm7117_vm9 }
 0x29f   :  { %v2320_v25 = vsel %vm816_vm6, %v2318_v38, %v2319_v39  ;;  %vm7120_vm11 = vmmov %vm7119_vm5 }
 0x2a0   :  { %vm7121_vm8 = vmmov %vm7119_vm5 }
 0x2a1   :  { %vm7122_vm10 = vmmov %vm7119_vm5 }
 0x2a2   :  { %vm7123_vm0 = vmmov %vm7119_vm5 }
 0x2a3   :  { %vm7125_vm12 = vmmov %vm7123_vm0 }
 0x2a4   :  { %v2348_v62 = vld [vmem:[#allocation1] sm:$0xff]  ;;  %v2349_v57 = vld [vmem:[#allocation1 + $0x9] sm:$0xff]  ;;  %v2350_v28 = vld [vmem:[#allocation1 + $0x12] sm:$0xff] }
 0x2a5   :  { %v2351_v58 = vld [vmem:[#allocation1 + $0x1b] sm:$0xff]  ;;  %v2370_v51 = vpack.c.bf16 %v2348_v62, %v6312_v44  ;;  %v2371_v33 = vpack.c.bf16 %v2349_v57, %v6314_v3  ;;  %v2372_v14 = vpack.c.bf16 %v2350_v28, %v6316_v30  ;;  %vm7126_vm13 = vmmov %vm7123_vm0 }
 0x2a6   :  { %2352 = vst [vmem:[#allocation1] ss:$9 sm:$0xff] %v2317_v24  ;;  %v2373_v8 = vpack.c.bf16 %v2351_v58, %v6321_v6  ;;  %v5146_v30 = vld [vmem:[%s7073_s4] ss:$0 sm:$0xff]  ;;  %vm7127_vm14 = vmmov %vm7123_vm0 }
 0x2a7   :  { %2353 = vst [vmem:[#allocation1 + $0x1] ss:$9 sm:$0xff] %v2320_v25  ;;  %2646 = vmatmul.bf16.vlgmr.msrb.gmra.mxu0 %v2370_v51  ;;  %2664 = vmatmul.bf16.vlgmr.msrb.gmra.mxu1 %v2371_v33  ;;  %vm7129_vm9 = vmmov %vm7124_vm1 }
 0x2a8   :  { %2682 = vmatmul.bf16.vlgmr.msrb.gmra.mxu2 %v2372_v14  ;;  %2700 = vmatmul.bf16.vlgmr.msrb.gmra.mxu3 %v2373_v8  ;;  %vm7130_vm2 = vmmov %vm7123_vm0 }
 0x2ae   :  { %v2354_v36 = vld [vmem:[#allocation1] sm:$0xff]  ;;  %v2355_v10 = vld [vmem:[#allocation1 + $0x9] sm:$0xff]  ;;  %v2356_v9 = vld [vmem:[#allocation1 + $0x12] sm:$0xff] }
 0x2af   :  { %v2357_v50 = vld [vmem:[#allocation1 + $0x1b] sm:$0xff]  ;;  %v2374_v15 = vpack.c.bf16 %v2354_v36, %v2354_v36  ;;  %v2375_v29 = vpack.c.bf16 %v2355_v10, %v2355_v10  ;;  %v2376_v44 = vpack.c.bf16 %v2356_v9, %v2356_v9 }
 0x2b0   :  { %v2377_v3 = vpack.c.bf16 %v2357_v50, %v2357_v50 }
 0x2b7   :  { %2651 = vmatmul.bf16.gmra.mxu0 %v2374_v15  ;;  %2669 = vmatmul.bf16.gmra.mxu1 %v2375_v29 }
 0x2b8   :  { %2687 = vmatmul.bf16.gmra.mxu2 %v2376_v44  ;;  %2705 = vmatmul.bf16.gmra.mxu3 %v2377_v3 }
 0x324   :  { %v2647_v4 = vpop.f32.mrf.mxu0  ;;  %v2665_v42 = vpop.f32.mrf.mxu1 }
 0x325   :  { %v2648_v63 = vadd.f32 %v5146_v30, %v2647_v4 }
 0x327   :  { %v2666_v19 = vadd.f32 %v2665_v42, %v2648_v63 }
 0x32b   :  { %v2683_v6 = vpop.f32.mrf.mxu2  ;;  %v2701_v26 = vpop.f32.mrf.mxu3 }
 0x32c   :  { %v2684_v12 = vadd.f32 %v2683_v6, %v2666_v19  ;;  %v2649_v16 = vpop.f32.mrf.mxu0  ;;  %v2667_v22 = vpop.f32.mrf.mxu1 }
 0x32d   :  { %v2650_v31 = vadd.f32 %v5146_v30, %v2649_v16  ;;  %v5032_v16 = vld [vmem:[%s7074_s5 + $0xb8] sm:$0xff] }
 0x32e   :  { %v2702_v0 = vadd.f32 %v2701_v26, %v2684_v12  ;;  %v5016_v26 = vld [vmem:[%s7074_s5 + $0x38] sm:$0xff]  ;;  %3265 = vmatpush.bf16.msra.mxu2 %v5032_v16 }
 0x32f   :  { %v2668_v53 = vadd.f32 %v2667_v22, %v2650_v31  ;;  %v5024_v12 = vld [vmem:[%s7074_s5 + $0x78] sm:$0xff]  ;;  %3239 = vmatpush.bf16.msra.mxu0 %v5016_v26  ;;  %v5013_v31 = vld [vmem:[%s7074_s5 + $0x20] sm:$0xff] }
 0x330   :  { %v2710_v34 = vmax.f32 %v2702_v0, 0.0  ;;  %v5040_v22 = vld [vmem:[%s7074_s5 + $0xf8] sm:$0xff]  ;;  %3252 = vmatpush.bf16.msra.mxu1 %v5024_v12  ;;  %v5015_v0 = vld [vmem:[%s7074_s5 + $0x30] sm:$0xff] }
 0x331   :  { %3278 = vmatpush.bf16.msra.mxu3 %v5040_v22 }
 0x332   :  { %v2716_v40 = vrot.slane %v2710_v34, 1  ;;  %v2717_v41 = vrot.slane %v2710_v34, 2  ;;  %2731 = vst [vmem:[#allocation1] ss:$9 sm:$0xff] %v2710_v34  ;;  %v2718_v13 = vrot.slane %v2710_v34, 3  ;;  %v2719_v21 = vrot.slane %v2710_v34, 4 }
 0x333   :  { %v2685_v61 = vpop.f32.mrf.mxu2  ;;  %v2703_v18 = vpop.f32.mrf.mxu3  ;;  %v2720_v35 = vrot.slane %v2710_v34, 5  ;;  %v2721_v48 = vrot.slane %v2710_v34, 6  ;;  %v2722_v11 = vrot.slane %v2710_v34, 7  ;;  %v5023_v34 = vld [vmem:[%s7074_s5 + $0x70] sm:$0xff]  ;;  %3240 = vmatpush.bf16.msra.mxu0 %v5015_v0 }
 0x334   :  { %2733 = vst [vmem:[#allocation1 + $0x1] ss:$9 sm:$0xff] %v2716_v40  ;;  %v2652_v32 = vpop.f32.mrf.mxu0  ;;  %v2670_v2 = vpop.f32.mrf.mxu1  ;;  %v2686_v37 = vadd.f32 %v2685_v61, %v2668_v53  ;;  %v5031_v40 = vld [vmem:[%s7074_s5 + $0xb0] sm:$0xff]  ;;  %3253 = vmatpush.bf16.msra.mxu1 %v5023_v34  ;;  %v5014_v61 = vld [vmem:[%s7074_s5 + $0x28] sm:$0xff] }
 0x335   :  { %2735 = vst [vmem:[#allocation1 + $0x2] ss:$9 sm:$0xff] %v2717_v41  ;;  %v2653_v45 = vadd.f32 %v5146_v30, %v2652_v32  ;;  %v5039_v41 = vld [vmem:[%s7074_s5 + $0xf0] sm:$0xff]  ;;  %3266 = vmatpush.bf16.msra.mxu2 %v5031_v40  ;;  %v5030_v32 = vld [vmem:[%s7074_s5 + $0xa8] sm:$0xff] }
 0x336   :  { %v2704_v56 = vadd.f32 %v2703_v18, %v2686_v37  ;;  %3279 = vmatpush.bf16.msra.mxu3 %v5039_v41  ;;  %v5022_v18 = vld [vmem:[%s7074_s5 + $0x68] sm:$0xff]  ;;  %v5019_v53 = vld [vmem:[%s7074_s5 + $0x50] sm:$0xff] }
 0x337   :  { %v2671_v47 = vadd.f32 %v2670_v2, %v2653_v45  ;;  %v5038_v2 = vld [vmem:[%s7074_s5 + $0xe8] sm:$0xff]  ;;  %3241 = vmatpush.bf16.msra.mxu0 %v5014_v61  ;;  %v5027_v37 = vld [vmem:[%s7074_s5 + $0x90] sm:$0xff] }
 0x338   :  { %v2711_v54 = vmax.f32 %v2704_v56, 0.0  ;;  %3254 = vmatpush.bf16.msra.mxu1 %v5022_v18  ;;  %v5035_v56 = vld [vmem:[%s7074_s5 + $0xd0] sm:$0xff]  ;;  %v5042_v18 = vld [vmem:[%s7074_s5 + $0x108] sm:$0xff] }
 0x339   :  { %3267 = vmatpush.bf16.msra.mxu2 %v5030_v32 }
 0x33a   :  { %v2723_v7 = vrot.slane %v2711_v54, 1  ;;  %v2724_v55 = vrot.slane %v2711_v54, 2  ;;  %v2725_v20 = vrot.slane %v2711_v54, 3  ;;  %v2726_v52 = vrot.slane %v2711_v54, 4  ;;  %3280 = vmatpush.bf16.msra.mxu3 %v5038_v2 }
 0x33b   :  { %v2688_v1 = vpop.f32.mrf.mxu2  ;;  %v2706_v46 = vpop.f32.mrf.mxu3  ;;  %v2727_v38 = vrot.slane %v2711_v54, 5  ;;  %v2728_v62 = vrot.slane %v2711_v54, 6  ;;  %v2729_v58 = vrot.slane %v2711_v54, 7  ;;  %3242 = vmatpush.bf16.msra.mxu0 %v5013_v31  ;;  %v5041_v31 = vld [vmem:[%s7074_s5 + $0x100] sm:$0xff] }
 0x33c   :  { %v2736_v43 = vld [vmem:[#allocation1] sm:$0xff]  ;;  %v2654_v27 = vpop.f32.mrf.mxu0  ;;  %v2672_v17 = vpop.f32.mrf.mxu1  ;;  %v2689_v39 = vadd.f32 %v2688_v1, %v2671_v47 }
 0x33d   :  { %2737 = vst [vmem:[#allocation1] ss:$9 sm:$0xff] %v2718_v13  ;;  %v5021_v13 = vld [vmem:[%s7074_s5 + $0x60] sm:$0xff]  ;;  %v5028_v27 = vld [vmem:[%s7074_s5 + $0x98] sm:$0xff] }
 0x33e   :  { %2738 = vst [vmem:[#allocation1 + $0x1] ss:$9 sm:$0xff] %v2719_v21  ;;  %v2707_v57 = vadd.f32 %v2706_v46, %v2689_v39  ;;  %v5029_v1 = vld [vmem:[%s7074_s5 + $0xa0] sm:$0xff]  ;;  %3255 = vmatpush.bf16.msra.mxu1 %v5021_v13  ;;  %v5012_v21 = vld [vmem:[%s7074_s5 + $0x18] sm:$0xff] }
 0x33f   :  { %2739 = vst [vmem:[#allocation1 + $0x2] ss:$9 sm:$0xff] %v2720_v35  ;;  %v5037_v46 = vld [vmem:[%s7074_s5 + $0xe0] sm:$0xff]  ;;  %3268 = vmatpush.bf16.msra.mxu2 %v5029_v1  ;;  %v5036_v17 = vld [vmem:[%s7074_s5 + $0xd8] sm:$0xff]  ;;  %3243 = vmatpush.bf16.msra.mxu0 %v5012_v21  ;;  %v5011_v35 = vld [vmem:[%s7074_s5 + $0x10] sm:$0xff] }
 0x340   :  { %2764 = vst.msk [vmem:[#allocation3] sm:$0x7] %vm2763_vm3, %v2736_v43  ;;  %v2712_v28 = vmax.f32 %v2707_v57, 0.0  ;;  %v5020_v43 = vld [vmem:[%s7074_s5 + $0x58] sm:$0xff]  ;;  %3281 = vmatpush.bf16.msra.mxu3 %v5037_v46 }
 0x342   :  { %v2730_v33 = vrot.slane %v2712_v28, 1  ;;  %3256 = vmatpush.bf16.msra.mxu1 %v5020_v43 }
 0x343   :  { %v2690_v23 = vpop.f32.mrf.mxu2  ;;  %v2708_v60 = vpop.f32.mrf.mxu3  ;;  %3269 = vmatpush.bf16.msra.mxu2 %v5028_v27  ;;  %3244 = vmatpush.bf16.msra.mxu0 %v5011_v35 }
 0x344   :  { %3282 = vmatpush.bf16.msra.mxu3 %v5036_v17 }
 0x346   :  { %v2740_v49 = vld [vmem:[#allocation1] sm:$0xff]  ;;  %3257 = vmatpush.bf16.msra.mxu1 %v5019_v53 }
 0x347   :  { %2741 = vst [vmem:[#allocation1] ss:$9 sm:$0xff] %v2721_v48  ;;  %v2772_v30 = vld [vmem:[#allocation3 + $0x1] sm:$0x1]  ;;  %3270 = vmatpush.bf16.msra.mxu2 %v5027_v37 }
 0x348   :  { %2742 = vst [vmem:[#allocation1 + $0x1] ss:$9 sm:$0xff] %v2722_v11  ;;  %v5010_v11 = vld [vmem:[%s7074_s5 + $0x8] sm:$0xff]  ;;  %3283 = vmatpush.bf16.msra.mxu3 %v5035_v56 }
 0x349   :  { %2743 = vst [vmem:[#allocation1 + $0x2] ss:$9 sm:$0xff] %v2711_v54  ;;  %3245 = vmatpush.bf16.msra.mxu0 %v5010_v11 }
 0x34a   :  { %2765 = vst.msk [vmem:[#allocation3 + $0x4] sm:$0x7] %vm2763_vm3, %v2740_v49  ;;  %v5018_v49 = vld [vmem:[%s7074_s5 + $0x48] sm:$0xff] }
 0x34b   :  { %3258 = vmatpush.bf16.msra.mxu1 %v5018_v49 }
 0x350   :  { %v2744_v5 = vld [vmem:[#allocation1] sm:$0xff] }
 0x351   :  { %2745 = vst [vmem:[#allocation1] ss:$9 sm:$0xff] %v2723_v7  ;;  %v2781_v10 = vld [vmem:[#allocation3 + $0x6] sm:$0x1]  ;;  %v2777_v9 = vld [vmem:[#allocation3 + $0x4] sm:$0x1] }
 0x352   :  { %2746 = vst [vmem:[#allocation1 + $0x1] ss:$9 sm:$0xff] %v2724_v55  ;;  %v5026_v7 = vld [vmem:[%s7074_s5 + $0x88] sm:$0xff] }
 0x353   :  { %2747 = vst [vmem:[#allocation1 + $0x2] ss:$9 sm:$0xff] %v2725_v20  ;;  %v5034_v55 = vld [vmem:[%s7074_s5 + $0xc8] sm:$0xff]  ;;  %3271 = vmatpush.bf16.msra.mxu2 %v5026_v7 }
 0x354   :  { %2766 = vst.msk [vmem:[#allocation3 + $0x8] sm:$0x7] %vm2763_vm3, %v2744_v5  ;;  %3284 = vmatpush.bf16.msra.mxu3 %v5034_v55 }
 0x35a   :  { %v2748_v24 = vld [vmem:[#allocation1] sm:$0xff] }
 0x35b   :  { %2749 = vst [vmem:[#allocation1] ss:$9 sm:$0xff] %v2726_v52  ;;  %v2786_v19 = vld [vmem:[#allocation3 + $0x9] sm:$0x1]  ;;  %v2784_v57 = vld [vmem:[#allocation3 + $0x8] sm:$0x1] }
 0x35c   :  { %2750 = vst [vmem:[#allocation1 + $0x1] ss:$9 sm:$0xff] %v2727_v38 }
 0x35d   :  { %2751 = vst [vmem:[#allocation1 + $0x2] ss:$9 sm:$0xff] %v2728_v62  ;;  %v5017_v62 = vld [vmem:[%s7074_s5 + $0x40] sm:$0xff] }
 0x35e   :  { %2767 = vst.msk [vmem:[#allocation3 + $0xc] sm:$0x7] %vm2763_vm3, %v2748_v24  ;;  %v5009_v24 = vld [vmem:[%s7074_s5] sm:$0xff]  ;;  %3259 = vmatpush.bf16.msra.mxu1 %v5017_v62 }
 0x35f   :  { %3246 = vmatpush.bf16.msra.mxu0 %v5009_v24 }
 0x364   :  { %v2752_v51 = vld [vmem:[#allocation1] sm:$0xff] }
 0x365   :  { %2768 = vst.msk [vmem:[#allocation3 + $0x10] sm:$0x7] %vm2763_vm3, %v2752_v51  ;;  %v2773_v44 = vld [vmem:[#allocation3 + $0xd] sm:$0x1]  ;;  %v2775_v48 = vld [vmem:[#allocation3 + $0xe] sm:$0x1] }
 0x366   :  { %2753 = vst [vmem:[#allocation1] ss:$9 sm:$0xff] %v2729_v58  ;;  %v2797_v3 = vrot.slane %v2773_v44, 7  ;;  %v2804_v20 = vrot.slane %v2775_v48, 7  ;;  %v2771_v39 = vld [vmem:[#allocation3 + $0xc] sm:$0x1] }
 0x367   :  { %2754 = vst [vmem:[#allocation1 + $0x1] ss:$9 sm:$0xff] %v2712_v28  ;;  %v5025_v28 = vld [vmem:[%s7074_s5 + $0x80] sm:$0xff] }
 0x368   :  { %2755 = vst [vmem:[#allocation1 + $0x2] ss:$9 sm:$0xff] %v2730_v33  ;;  %v2798_v4 = vsel %vm7121_vm8, %v2797_v3, %v2772_v30  ;;  %v5033_v58 = vld [vmem:[%s7074_s5 + $0xc0] sm:$0xff]  ;;  %3272 = vmatpush.bf16.msra.mxu2 %v5025_v28  ;;  %vm2867_vm8 = vcmp.lt.s32.totalorder %v826_v59, 576 }
 0x369   :  { %3285 = vmatpush.bf16.msra.mxu3 %v5033_v58 }
 0x36c   :  { %v2782_v14 = vld [vmem:[#allocation3 + $0x12] sm:$0x1]  ;;  %v2778_v25 = vld [vmem:[#allocation3 + $0x10] sm:$0x1]  ;;  %v2780_v54 = vld [vmem:[#allocation3 + $0x11] sm:$0x1] }
 0x36d   :  { %v2821_v8 = vrot.slane %v2782_v14, 7  ;;  %v2809_v36 = vrot.slane %v2778_v25, 7  ;;  %v2816_v38 = vrot.slane %v2780_v54, 7  ;;  %v2774_v14 = vld [vmem:[#allocation3 + $0x2] sm:$0x1]  ;;  %v5044_v25 = vld [vmem:[%s7074_s5 + $0x118] sm:$0xff] }
 0x36e   :  { %3295 = vmatpush.bf16.msrb.mxu0 %v5044_v25 }
 0x36f   :  { %v2822_v50 = vsel %vm7119_vm5, %v2821_v8, %v2781_v10  ;;  %v2810_v15 = vsel %vm7120_vm11, %v2809_v36, %v2777_v9  ;;  %v2756_v29 = vld [vmem:[#allocation1] sm:$0xff]  ;;  %v2788_v8 = vld [vmem:[#allocation3 + $0xa] sm:$0x1]  ;;  %v2779_v10 = vld [vmem:[#allocation3 + $0x5] sm:$0x1]  ;;  %v2805_v9 = vsel %vm7125_vm12, %v2804_v20, %v2774_v14  ;;  %vm2862_vm5 = vcmask 1043457  }
 0x370   :  { %2823 = vrot.lane.b32.xlu1 %v2822_v50, %s5176_s24  ;;  %2811 = vrot.lane.b32.xlu0 %v2810_v15, %s5176_s24  ;;  %2769 = vst.msk [vmem:[#allocation3 + $0x14] sm:$0x7] %vm2763_vm3, %v2756_v29  ;;  %v2792_v50 = vrot.slane %v2771_v39, 7  ;;  %v2817_v29 = vsel %vm7127_vm14, %v2816_v38, %v2779_v10  ;;  %vm2857_vm3 = vcmask 1042432   ;;  %vm7131_vm11 = vmmov %vm7124_vm1 }
 0x371   :  { %vm7138_vm12 = vmmov %vm7130_vm2 }
 0x372   :  { %vm7140_vm14 = vmmov %vm7129_vm9 }
 0x377   :  { %v2787_v42 = vld [vmem:[#allocation3 + $0x15] sm:$0x1]  ;;  %v2789_v23 = vld [vmem:[#allocation3 + $0x16] sm:$0x1]  ;;  %v2785_v60 = vld [vmem:[#allocation3 + $0x14] sm:$0x1] }
 0x378   :  { %2799 = vrot.lane.b32.xlu0 %v2798_v4, %s5176_s24  ;;  %v2833_v63 = vrot.slane %v2787_v42, 7  ;;  %v2828_v5 = vrot.slane %v2785_v60, 7  ;;  %v2840_v47 = vrot.slane %v2789_v23, 7  ;;  %v2770_v4 = vld [vmem:[#allocation3] sm:$0x1]  ;;  %v5043_v42 = vld [vmem:[%s7074_s5 + $0x110] sm:$0xff] }
 0x379   :  { %3296 = vmatpush.bf16.msrb.mxu0 %v5043_v42 }
 0x37a   :  { %v2834_v6 = vsel %vm7122_vm10, %v2833_v63, %v2786_v19  ;;  %v2829_v51 = vsel %vm7123_vm0, %v2828_v5, %v2784_v57  ;;  %v2841_v15 = vsel %vm7126_vm13, %v2840_v47, %v2788_v8  ;;  %vm7132_vm10 = vmmov %vm7123_vm0  ;;  %vm7133_vm0 = vcmask 1044484  }
 0x37b   :  { %2835 = vrot.lane.b32.xlu2 %v2834_v6, %s5176_s24  ;;  %v2853_v63 = vrot.slane %v2841_v15, 4  ;;  %v2793_v6 = vsel %vm7130_vm2, %v2792_v50, %v2770_v4  ;;  %vm7139_vm13 = vmmov %vm7130_vm2 }
 0x37d   :  { %3297 = vmatpush.bf16.msrb.mxu0 %v5042_v18 }
 0x381   :  { %3298 = vmatpush.bf16.msrb.mxu0 %v5041_v31 }
 0x3d5   :  { %v2836_v52 = vpop.permute.xlu2 %2835 }
 0x3d6   :  { %v2845_v36 = vsel %vm7124_vm1, %v2829_v51, %v2836_v52  ;;  %vm7134_vm1 = vcmask 1042433  }
 0x3d7   :  { %v2852_v30 = vrot.slane %v2845_v36, 5 }
 0x3d9   :  { %v2856_v34 = vsel %vm819_vm7, %v2852_v30, %v2853_v63  ;;  %v2861_v40 = vsel %vm7133_vm0, %v2852_v30, %v2853_v63  ;;  %vm7137_vm7 = vmmov %vm7130_vm2  ;;  %v4623_v63 = vld [vmem:[%s7076_s7 + $0x60] sm:$0xf] }
 0x3e2   :  { %v2812_v45 = vpop.permute.xlu0 %2811  ;;  %v2824_v33 = vpop.permute.xlu1 %2823 }
 0x3e3   :  { %v2843_v44 = vsel %vm7128_vm15, %v2805_v9, %v2812_v45  ;;  %v2844_v3 = vsel %vm7129_vm9, %v2817_v29, %v2824_v33  ;;  %vm7141_vm15 = vmmov %vm7129_vm9 }
 0x3e4   :  { %v2850_v19 = vrot.slane %v2843_v44, 7  ;;  %v2851_v12 = vrot.slane %v2844_v3, 6 }
 0x3ea   :  { %v2800_v26 = vpop.permute.xlu0 %2799 }
 0x3eb   :  { %v2842_v16 = vsel %vm7131_vm11, %v2793_v6, %v2800_v26  ;;  %v5057_v6 = vld [vmem:[%s7076_s7 + $0x64] sm:$0xf] }
 0x3ec   :  { %v2854_v22 = vsel %vm812_vm4, %v2842_v16, %v2850_v19  ;;  %v2859_v0 = vsel %vm7132_vm10, %v2842_v16, %v2850_v19  ;;  %vm7135_vm4 = vmmov %vm7130_vm2  ;;  %v5059_v19 = vld [vmem:[%s7076_s7 + $0x6c] sm:$0xf0]  ;;  %v5058_v16 = vld [vmem:[%s7076_s7 + $0x6c] sm:$0xf] }
 0x3ed   :  { %v2855_v41 = vsel %vm816_vm6, %v2854_v22, %v2851_v12  ;;  %v2860_v61 = vsel %vm7134_vm1, %v2859_v0, %v2851_v12  ;;  %vm7136_vm6 = vmmov %vm7130_vm2  ;;  %v4624_v26 = vor.u32 %v5059_v19, %v4623_v63  ;;  %v4625_v12 = vld [vmem:[%s7076_s7 + $0x70] sm:$0xf0]  ;;  %v4633_v22 = vld [vmem:[%s7076_s7 + $0x78] sm:$0xf0] }
 0x3ee   :  { %v2858_v32 = vsel %vm2857_vm3, %v2855_v41, %v2856_v34  ;;  %v2863_v2 = vsel %vm2862_vm5, %v2860_v61, %v2861_v40  ;;  %v4628_v0 = vor.u32 %v5057_v6, %v4625_v12  ;;  %v4636_v34 = vor.u32 %v5058_v16, %v4633_v22  ;;  %v4607_v40 = vld [vmem:[%s7076_s7 + $0x40] sm:$0xf]  ;;  %v5055_v41 = vld [vmem:[%s7076_s7 + $0x4c] sm:$0xf0]  ;;  %v5053_v61 = vld [vmem:[%s7076_s7 + $0x44] sm:$0xf] }
 0x3ef   :  { %v2864_v59 = vrot.slane %v2863_v2, 1  ;;  %2869 = vst.msk [vmem:[#allocation5] sm:$0x1f] %vm2867_vm8, %v2858_v32  ;;  %3419 = vmatpush.bf16.msrb.mxu3 %v4624_v26  ;;  %v4608_v18 = vor.u32 %v5055_v41, %v4607_v40  ;;  %v4609_v32 = vld [vmem:[%s7076_s7 + $0x50] sm:$0xf0]  ;;  %vm7142_vm2 = vmmov %vm7129_vm9 }
 0x3f0   :  { %v5054_v2 = vld [vmem:[%s7076_s7 + $0x4c] sm:$0xf]  ;;  %3432 = vmatpush.bf16.msrb.mxu2 %v4628_v0  ;;  %v4612_v31 = vor.u32 %v5053_v61, %v4609_v32  ;;  %v4763_v19 = vld [vmem:[%s7078_s9 + $0xf0] sm:$0xf]  ;;  %v5092_v6 = vld [vmem:[%s7078_s9 + $0xf4] sm:$0xf0] }
 0x3f1   :  { %2870 = vst.msk [vmem:[#allocation5 + $0x5] sm:$0x1f] %vm2867_vm8, %v2864_v59  ;;  %v4617_v59 = vld [vmem:[%s7076_s7 + $0x58] sm:$0xf0]  ;;  %v4764_v12 = vor.u32 %v5092_v6, %v4763_v19  ;;  %v4875_v16 = vld [vmem:[%s7078_s9 + $0x1d0] sm:$0xf]  ;;  %vm7143_vm3 = vmmov %vm7142_vm2 }
 0x3f2   :  { %v4691_v22 = vld [vmem:[%s7078_s9 + $0x60] sm:$0xf]  ;;  %v5074_v0 = vld [vmem:[%s7078_s9 + $0x64] sm:$0xf0]  ;;  %v5120_v40 = vld [vmem:[%s7078_s9 + $0x1d4] sm:$0xf0] }
 0x3f3   :  { %3420 = vmatpush.bf16.msrb.mxu3 %v4608_v18  ;;  %v4692_v41 = vor.u32 %v5074_v0, %v4691_v22  ;;  %v4755_v61 = vld [vmem:[%s7078_s9 + $0xe0] sm:$0xf]  ;;  %v5090_v18 = vld [vmem:[%s7078_s9 + $0xe4] sm:$0xf0]  ;;  %v4651_v6 = vld [vmem:[%s7078_s9 + $0x10] sm:$0xf] }
 0x3f4   :  { %3433 = vmatpush.bf16.msrb.mxu2 %v4612_v31  ;;  %v4756_v32 = vor.u32 %v5090_v18, %v4755_v61  ;;  %v4747_v31 = vld [vmem:[%s7078_s9 + $0xd0] sm:$0xf]  ;;  %v5080_v0 = vld [vmem:[%s7078_s9 + $0x94] sm:$0xf0]  ;;  %v5110_v61 = vld [vmem:[%s7078_s9 + $0x184] sm:$0xf0] }
 0x3f5   :  { %v5123_v18 = vld [vmem:[%s7078_s9 + $0x1f4] sm:$0xf] }
 0x3f6   :  { %v2871_v13 = vld [vmem:[#allocation5] sm:$0x1f] }
 0x3f7   :  { %v2875_v1 = vperm.slane %v2871_v13, 0  ;;  %v2876_v46 = vperm.slane %v2871_v13, 1  ;;  %v2877_v43 = vperm.slane %v2871_v13, 2  ;;  %v2878_v27 = vperm.slane %v2871_v13, 3 }
 0x3f8   :  { %v2872_v21 = vld [vmem:[#allocation5 + $0x5] sm:$0x1f]  ;;  %v2879_v15 = vperm.slane %v2871_v13, 4  ;;  %v4620_v13 = vor.u32 %v5054_v2, %v4617_v59  ;;  %v4683_v2 = vld [vmem:[%s7078_s9 + $0x50] sm:$0xf] }
 0x3f9   :  { %v2880_v17 = vperm.slane %v2872_v21, 0  ;;  %v2881_v35 = vperm.slane %v2872_v21, 1  ;;  %v2895_v53 = vpack.c.bf16 %v2875_v1, %v2875_v1  ;;  %v2882_v37 = vperm.slane %v2872_v21, 2  ;;  %v4591_v1 = vld [vmem:[%s7076_s7 + $0x20] sm:$0xf] }
 0x3fa   :  { %v2883_v56 = vperm.slane %v2872_v21, 3  ;;  %v2896_v60 = vpack.c.bf16 %v2876_v46, %v2876_v46  ;;  %v2897_v11 = vpack.c.bf16 %v2877_v43, %v2877_v43  ;;  %v2898_v54 = vpack.c.bf16 %v2878_v27, %v2878_v27  ;;  %v5051_v46 = vld [vmem:[%s7076_s7 + $0x2c] sm:$0xf0]  ;;  %v5049_v43 = vld [vmem:[%s7076_s7 + $0x24] sm:$0xf] }
 0x3fb   :  { %v2900_v23 = vpack.c.bf16 %v2880_v17, %v2880_v17  ;;  %v2901_v48 = vpack.c.bf16 %v2881_v35, %v2881_v35  ;;  %v2902_v49 = vpack.c.bf16 %v2882_v37, %v2882_v37  ;;  %v2991_v20 = vunpack.c.l.b16 %v2895_v53  ;;  %v4593_v27 = vld [vmem:[%s7076_s7 + $0x30] sm:$0xf0]  ;;  %v5050_v17 = vld [vmem:[%s7076_s7 + $0x2c] sm:$0xf]  ;;  %v4601_v53 = vld [vmem:[%s7076_s7 + $0x38] sm:$0xf0] }
 0x3fc   :  { %v2903_v7 = vpack.c.bf16 %v2883_v56, %v2883_v56  ;;  %v2992_v38 = vunpack.c.l.b16 %v2896_v60  ;;  %v2884_v24 = vperm.slane %v2872_v21, 4  ;;  %v2993_v62 = vunpack.c.l.b16 %v2897_v11  ;;  %v4575_v37 = vld [vmem:[%s7076_s7] sm:$0xf]  ;;  %v5047_v56 = vld [vmem:[%s7076_s7 + $0xc] sm:$0xf0] }
 0x3fd   :  { %v2996_v55 = vunpack.c.l.b16 %v2900_v23  ;;  %v2997_v5 = vunpack.c.l.b16 %v2901_v48  ;;  %v2998_v45 = vunpack.c.l.b16 %v2902_v49  ;;  %v2994_v28 = vunpack.c.l.b16 %v2898_v54  ;;  %v5045_v48 = vld [vmem:[%s7076_s7 + $0x4] sm:$0xf]  ;;  %v4577_v11 = vld [vmem:[%s7076_s7 + $0x10] sm:$0xf0]  ;;  %v5046_v49 = vld [vmem:[%s7076_s7 + $0xc] sm:$0xf] }
 0x3fe   :  { %v2999_v47 = vunpack.c.l.b16 %v2903_v7  ;;  %v2904_v50 = vpack.c.bf16 %v2884_v24, %v2884_v24  ;;  %v2899_v44 = vpack.c.bf16 %v2879_v15, %v2879_v15  ;;  %v4592_v21 = vor.u32 %v5051_v46, %v4591_v1  ;;  %v4585_v7 = vld [vmem:[%s7076_s7 + $0x18] sm:$0xf0]  ;;  %v5052_v24 = vld [vmem:[%s7076_s7 + $0x34] sm:$0xf0] }
 0x3ff   :  { %v3001_v52 = vrot.slane %v2996_v55, 7  ;;  %v3003_v39 = vrot.slane %v2997_v5, 7  ;;  %v3005_v57 = vrot.slane %v2998_v45, 7  ;;  %v4596_v35 = vor.u32 %v5049_v43, %v4593_v27  ;;  %v4631_v55 = vld [vmem:[%s7076_s7 + $0x68] sm:$0xf] }
 0x400   :  { %v3007_v58 = vrot.slane %v2999_v47, 7  ;;  %v3000_v29 = vunpack.c.l.b16 %v2904_v50  ;;  %v2995_v30 = vunpack.c.l.b16 %v2899_v44  ;;  %3421 = vmatpush.bf16.msrb.mxu3 %v4592_v21  ;;  %v4604_v23 = vor.u32 %v5050_v17, %v4601_v53  ;;  %v5060_v5 = vld [vmem:[%s7076_s7 + $0x74] sm:$0xf0]  ;;  %v4615_v47 = vld [vmem:[%s7076_s7 + $0x48] sm:$0xf] }
 0x401   :  { %v3002_v51 = vsel %vm7135_vm4, %v3001_v52, %v2991_v20  ;;  %v3004_v33 = vsel %vm7136_vm6, %v3003_v39, %v2992_v38  ;;  %v3006_v8 = vsel %vm7137_vm7, %v3005_v57, %v2993_v62  ;;  %v4576_v60 = vor.u32 %v5047_v56, %v4575_v37  ;;  %3434 = vmatpush.bf16.msrb.mxu2 %v4596_v35  ;;  %v5056_v52 = vld [vmem:[%s7076_s7 + $0x54] sm:$0xf0]  ;;  %v4599_v39 = vld [vmem:[%s7076_s7 + $0x28] sm:$0xf]  ;;  %v4883_v50 = vld [vmem:[%s7078_s9 + $0x1e0] sm:$0xf] }
 0x402   :  { %v3011_v14 = vpack.c.b16 %v3002_v51, %v3002_v51  ;;  %v3012_v25 = vpack.c.b16 %v3004_v33, %v3004_v33  ;;  %v3008_v36 = vsel %vm7138_vm12, %v3007_v58, %v2994_v28  ;;  %v3013_v10 = vpack.c.b16 %v3006_v8, %v3006_v8  ;;  %v4583_v58 = vld [vmem:[%s7076_s7 + $0x8] sm:$0xf]  ;;  %v5048_v51 = vld [vmem:[%s7076_s7 + $0x14] sm:$0xf0]  ;;  %v5147_v33 = vld [vmem:[%s7075_s6] ss:$0 sm:$0xff] }
 0x403   :  { %v3014_v9 = vpack.c.b16 %v3008_v36, %v3008_v36  ;;  %v3009_v3 = vrot.slane %v3000_v29, 7  ;;  %v4580_v54 = vor.u32 %v5045_v48, %v4577_v11  ;;  %v4588_v20 = vor.u32 %v5046_v49, %v4585_v7  ;;  %v5072_v59 = vld [vmem:[%s7078_s9 + $0x54] sm:$0xf0]  ;;  %v4867_v27 = vld [vmem:[%s7078_s9 + $0x1c0] sm:$0xf] }
 0x404   :  { %3247 = vmatmul.bf16.vlgmr.msra.gmra.mxu0 %v3011_v14  ;;  %3260 = vmatmul.bf16.vlgmr.msra.gmra.mxu1 %v3012_v25  ;;  %v4632_v45 = vor.u32 %v5060_v5, %v4631_v55  ;;  %v4616_v38 = vor.u32 %v5056_v52, %v4615_v47  ;;  %v4600_v62 = vor.u32 %v5052_v24, %v4599_v39  ;;  %v5118_v17 = vld [vmem:[%s7078_s9 + $0x1c4] sm:$0xf0]  ;;  %v4739_v48 = vld [vmem:[%s7078_s9 + $0xc0] sm:$0xf]  ;;  %v5108_v7 = vld [vmem:[%s7078_s9 + $0x174] sm:$0xf0] }
 0x405   :  { %3273 = vmatmul.bf16.vlgmr.msra.gmra.mxu2 %v3013_v10  ;;  %3286 = vmatmul.bf16.vlgmr.msra.gmra.mxu3 %v3014_v9  ;;  %v3010_v4 = vsel %vm7139_vm13, %v3009_v3, %v2995_v30  ;;  %v4584_v14 = vor.u32 %v5048_v51, %v4583_v58  ;;  %v4891_v10 = vld [vmem:[%s7078_s9 + $0x1f0] sm:$0xf]  ;;  %v5124_v9 = vld [vmem:[%s7078_s9 + $0x1f4] sm:$0xf0]  ;;  %v5122_v3 = vld [vmem:[%s7078_s9 + $0x1e4] sm:$0xf0]  ;;  %v4876_v1 = vor.u32 %v5120_v40, %v4875_v16 }
 0x406   :  { %v3015_v42 = vpack.c.b16 %v3010_v4, %v3010_v4  ;;  %3458 = vmatpush.bf16.msra.mxu0 %v4636_v34  ;;  %3422 = vmatpush.bf16.msrb.mxu3 %v4576_v60  ;;  %v4892_v44 = vor.u32 %v5124_v9, %v4891_v10  ;;  %v4699_v30 = vld [vmem:[%s7078_s9 + $0x70] sm:$0xf]  ;;  %v5076_v4 = vld [vmem:[%s7078_s9 + $0x74] sm:$0xf0]  ;;  %v4884_v26 = vor.u32 %v5122_v3, %v4883_v50  ;;  %v5070_v60 = vld [vmem:[%s7078_s9 + $0x44] sm:$0xf0] }
 0x407   :  { %3435 = vmatpush.bf16.msrb.mxu2 %v4580_v54  ;;  %v4700_v63 = vor.u32 %v5076_v4, %v4699_v30  ;;  %v4684_v35 = vor.u32 %v5072_v59, %v4683_v2  ;;  %v4868_v11 = vor.u32 %v5118_v17, %v4867_v27  ;;  %v5086_v49 = vld [vmem:[%s7078_s9 + $0xc4] sm:$0xf0]  ;;  %v4827_v54 = vld [vmem:[%s7078_s9 + $0x170] sm:$0xf]  ;;  %v5068_v39 = vld [vmem:[%s7078_s9 + $0x34] sm:$0xf0] }
 0x408   :  { %v4859_v5 = vld [vmem:[%s7078_s9 + $0x1b0] sm:$0xf]  ;;  %v4740_v52 = vor.u32 %v5086_v49, %v4739_v48  ;;  %v4819_v58 = vld [vmem:[%s7078_s9 + $0x160] sm:$0xf]  ;;  %v5106_v51 = vld [vmem:[%s7078_s9 + $0x164] sm:$0xf0] }
 0x409   :  { %3865 = vmatpush.bf16.msrb.mxu1 %v4700_v63  ;;  %v4731_v24 = vld [vmem:[%s7078_s9 + $0xb0] sm:$0xf]  ;;  %v4659_v10 = vld [vmem:[%s7078_s9 + $0x20] sm:$0xf]  ;;  %v5066_v9 = vld [vmem:[%s7078_s9 + $0x24] sm:$0xf0] }
 0x40a   :  { %3459 = vmatpush.bf16.msra.mxu0 %v4620_v13  ;;  %3445 = vmatpush.bf16.msra.mxu3 %v4632_v45  ;;  %v5088_v13 = vld [vmem:[%s7078_s9 + $0xd4] sm:$0xf0]  ;;  %v4723_v50 = vld [vmem:[%s7078_s9 + $0xa0] sm:$0xf]  ;;  %v4811_v3 = vld [vmem:[%s7078_s9 + $0x150] sm:$0xf]  ;;  %v4660_v63 = vor.u32 %v5066_v9, %v4659_v10 }
 0x40b   :  { %3878 = vmatpush.bf16.msra.mxu2 %v4764_v12  ;;  %v4748_v37 = vor.u32 %v5088_v13, %v4747_v31  ;;  %v5104_v30 = vld [vmem:[%s7078_s9 + $0x154] sm:$0xf0]  ;;  %v4843_v4 = vld [vmem:[%s7078_s9 + $0x190] sm:$0xf]  ;;  %v5102_v40 = vld [vmem:[%s7078_s9 + $0x144] sm:$0xf0] }
 0x40c   :  { %v4715_v12 = vld [vmem:[%s7078_s9 + $0x90] sm:$0xf]  ;;  %v4812_v16 = vor.u32 %v5104_v30, %v4811_v3  ;;  %v4643_v31 = vld [vmem:[%s7078_s9] sm:$0xf]  ;;  %v5062_v13 = vld [vmem:[%s7078_s9 + $0x4] sm:$0xf0] }
 0x40d   :  { %3866 = vmatpush.bf16.msrb.mxu1 %v4692_v41  ;;  %v4835_v41 = vld [vmem:[%s7078_s9 + $0x180] sm:$0xf]  ;;  %v4716_v59 = vor.u32 %v5080_v0, %v4715_v12  ;;  %v5075_v27 = vld [vmem:[%s7078_s9 + $0x74] sm:$0xf]  ;;  %v4701_v17 = vld [vmem:[%s7078_s9 + $0x78] sm:$0xf0] }
 0x40e   :  { %3460 = vmatpush.bf16.msra.mxu0 %v4604_v23  ;;  %3446 = vmatpush.bf16.msra.mxu3 %v4616_v38  ;;  %v4675_v23 = vld [vmem:[%s7078_s9 + $0x40] sm:$0xf]  ;;  %v4667_v38 = vld [vmem:[%s7078_s9 + $0x30] sm:$0xf]  ;;  %v5087_v9 = vld [vmem:[%s7078_s9 + $0xd4] sm:$0xf] }
 0x40f   :  { %3879 = vmatpush.bf16.msra.mxu2 %v4756_v32  ;;  %v4676_v45 = vor.u32 %v5070_v60, %v4675_v23  ;;  %v4893_v32 = vld [vmem:[%s7078_s9 + $0x1f8] sm:$0xf0]  ;;  %v4885_v23 = vld [vmem:[%s7078_s9 + $0x1e8] sm:$0xf0]  ;;  %v4644_v60 = vor.u32 %v5062_v13, %v4643_v31  ;;  %v4779_v3 = vld [vmem:[%s7078_s9 + $0x110] sm:$0xf] }
 0x410   :  { %v5096_v30 = vld [vmem:[%s7078_s9 + $0x114] sm:$0xf0]  ;;  %v4741_v12 = vld [vmem:[%s7078_s9 + $0xc8] sm:$0xf0]  ;;  %v5107_v13 = vld [vmem:[%s7078_s9 + $0x174] sm:$0xf] }
 0x411   :  { %3867 = vmatpush.bf16.msrb.mxu1 %v4684_v35  ;;  %v4896_v35 = vor.u32 %v5123_v18, %v4893_v32  ;;  %v4669_v18 = vld [vmem:[%s7078_s9 + $0x38] sm:$0xf0]  ;;  %v5083_v32 = vld [vmem:[%s7078_s9 + $0xb4] sm:$0xf] }
 0x412   :  { %3461 = vmatpush.bf16.msra.mxu0 %v4588_v20  ;;  %3447 = vmatpush.bf16.msra.mxu3 %v4600_v62  ;;  %v5116_v20 = vld [vmem:[%s7078_s9 + $0x1b4] sm:$0xf0]  ;;  %v4828_v62 = vor.u32 %v5108_v7, %v4827_v54  ;;  %v5119_v7 = vld [vmem:[%s7078_s9 + $0x1d4] sm:$0xf] }
 0x413   :  { %3880 = vmatpush.bf16.msra.mxu2 %v4748_v37  ;;  %v4765_v37 = vld [vmem:[%s7078_s9 + $0xf8] sm:$0xf0] }
 0x414   :  { %4572 = vmatmul.msk.bf16.vlgmr.msrb.gmra.mxu0 %vm7140_vm14, %v3015_v42 }
 0x415   :  { %3868 = vmatpush.bf16.msrb.mxu1 %v4676_v45  ;;  %v5100_v45 = vld [vmem:[%s7078_s9 + $0x134] sm:$0xf0] }
 0x416   :  { %3448 = vmatpush.bf16.msra.mxu3 %v4584_v14  ;;  %3904 = vmatpush.bf16.msrb.mxu0 %v4892_v44  ;;  %v5114_v14 = vld [vmem:[%s7078_s9 + $0x1a4] sm:$0xf0] }
 0x417   :  { %3881 = vmatpush.bf16.msra.mxu2 %v4740_v52  ;;  %v5082_v44 = vld [vmem:[%s7078_s9 + $0xa4] sm:$0xf0]  ;;  %v4693_v52 = vld [vmem:[%s7078_s9 + $0x68] sm:$0xf0] }
 0x418   :  { %v4724_v19 = vor.u32 %v5082_v44, %v4723_v50  ;;  %v4749_v50 = vld [vmem:[%s7078_s9 + $0xd8] sm:$0xf0] }
 0x419   :  { %v4861_v44 = vld [vmem:[%s7078_s9 + $0x1b8] sm:$0xf0] }
 0x41a   :  { %3905 = vmatpush.bf16.msrb.mxu0 %v4884_v26  ;;  %v5064_v26 = vld [vmem:[%s7078_s9 + $0x14] sm:$0xf0] }
 0x41b   :  { %v4652_v2 = vor.u32 %v5064_v26, %v4651_v6  ;;  %v5085_v6 = vld [vmem:[%s7078_s9 + $0xc4] sm:$0xf] }
 0x41c   :  { %v4744_v0 = vor.u32 %v5085_v6, %v4741_v12 }
 0x41e   :  { %3906 = vmatpush.bf16.msrb.mxu0 %v4876_v1  ;;  %v4707_v1 = vld [vmem:[%s7078_s9 + $0x80] sm:$0xf] }
 0x422   :  { %3907 = vmatpush.bf16.msrb.mxu0 %v4868_v11  ;;  %v4704_v11 = vor.u32 %v5075_v27, %v4701_v17  ;;  %v4845_v27 = vld [vmem:[%s7078_s9 + $0x198] sm:$0xf0]  ;;  %v5065_v17 = vld [vmem:[%s7078_s9 + $0x24] sm:$0xf] }
 0x481   :  { %v3248_v57 = vpop.f32.mrf.mxu0  ;;  %v3261_v28 = vpop.f32.mrf.mxu1 }
 0x482   :  { %v3249_v25 = vadd.f32 %v5147_v33, %v3248_v57  ;;  %v4860_v57 = vor.u32 %v5116_v20, %v4859_v5  ;;  %v4851_v33 = vld [vmem:[%s7078_s9 + $0x1a0] sm:$0xf]  ;;  %v4795_v5 = vld [vmem:[%s7078_s9 + $0x130] sm:$0xf] }
 0x484   :  { %v3262_v42 = vadd.f32 %v3261_v28, %v3249_v25  ;;  %v5084_v28 = vld [vmem:[%s7078_s9 + $0xb4] sm:$0xf0]  ;;  %3908 = vmatpush.bf16.msrb.mxu0 %v4860_v57  ;;  %v5117_v57 = vld [vmem:[%s7078_s9 + $0x1c4] sm:$0xf] }
 0x488   :  { %v3274_v8 = vpop.f32.mrf.mxu2  ;;  %v3287_v36 = vpop.f32.mrf.mxu3 }
 0x489   :  { %v3250_v15 = vpop.f32.mrf.mxu0  ;;  %v3263_v29 = vpop.f32.mrf.mxu1  ;;  %v3275_v34 = vadd.f32 %v3274_v8, %v3262_v42  ;;  %v4668_v8 = vor.u32 %v5068_v39, %v4667_v38  ;;  %v5112_v42 = vld [vmem:[%s7078_s9 + $0x194] sm:$0xf0]  ;;  %v4796_v38 = vor.u32 %v5100_v45, %v4795_v5  ;;  %v5063_v45 = vld [vmem:[%s7078_s9 + $0x14] sm:$0xf] }
 0x48a   :  { %v4820_v15 = vor.u32 %v5106_v51, %v4819_v58  ;;  %v4852_v29 = vor.u32 %v5114_v14, %v4851_v33  ;;  %v4844_v22 = vor.u32 %v5112_v42, %v4843_v4  ;;  %v4869_v58 = vld [vmem:[%s7078_s9 + $0x1c8] sm:$0xf0]  ;;  %v4787_v51 = vld [vmem:[%s7078_s9 + $0x120] sm:$0xf]  ;;  %v5098_v33 = vld [vmem:[%s7078_s9 + $0x124] sm:$0xf0]  ;;  %v4780_v42 = vor.u32 %v5096_v30, %v4779_v3 }
 0x48b   :  { %v3288_v46 = vadd.f32 %v3287_v36, %v3275_v34  ;;  %v4732_v36 = vor.u32 %v5084_v28, %v4731_v24  ;;  %3869 = vmatpush.bf16.msrb.mxu1 %v4668_v8  ;;  %v4803_v34 = vld [vmem:[%s7078_s9 + $0x140] sm:$0xf]  ;;  %v5089_v24 = vld [vmem:[%s7078_s9 + $0xe4] sm:$0xf]  ;;  %v4872_v14 = vor.u32 %v5117_v57, %v4869_v58  ;;  %v5071_v8 = vld [vmem:[%s7078_s9 + $0x54] sm:$0xf] }
 0x48c   :  { %3909 = vmatpush.bf16.msrb.mxu0 %v4852_v29  ;;  %v4752_v29 = vor.u32 %v5087_v9, %v4749_v50  ;;  %v5061_v58 = vld [vmem:[%s7078_s9 + $0x4] sm:$0xf]  ;;  %v5099_v50 = vld [vmem:[%s7078_s9 + $0x134] sm:$0xf] }
 0x48d   :  { %3882 = vmatpush.bf16.msra.mxu2 %v4732_v36  ;;  %v4685_v36 = vld [vmem:[%s7078_s9 + $0x58] sm:$0xf0] }
 0x48e   :  { %v4688_v10 = vor.u32 %v5071_v8, %v4685_v36  ;;  %v5101_v8 = vld [vmem:[%s7078_s9 + $0x144] sm:$0xf]  ;;  %v4805_v36 = vld [vmem:[%s7078_s9 + $0x148] sm:$0xf0] }
 0x48f   :  { %3870 = vmatpush.bf16.msrb.mxu1 %v4660_v63  ;;  %v5069_v63 = vld [vmem:[%s7078_s9 + $0x44] sm:$0xf]  ;;  %v4808_v9 = vor.u32 %v5101_v8, %v4805_v36 }
 0x490   :  { %v3276_v21 = vpop.f32.mrf.mxu2  ;;  %v3289_v43 = vpop.f32.mrf.mxu3  ;;  %3910 = vmatpush.bf16.msrb.mxu0 %v4844_v22  ;;  %v4853_v22 = vld [vmem:[%s7078_s9 + $0x1a8] sm:$0xf0] }
 0x491   :  { %v3300_v53 = vpop.f32.mrf.mxu0  ;;  %3883 = vmatpush.bf16.msra.mxu2 %v4724_v19  ;;  %v4836_v21 = vor.u32 %v5110_v61, %v4835_v41  ;;  %v5078_v43 = vld [vmem:[%s7078_s9 + $0x84] sm:$0xf0]  ;;  %v4677_v19 = vld [vmem:[%s7078_s9 + $0x48] sm:$0xf0]  ;;  %v5067_v41 = vld [vmem:[%s7078_s9 + $0x34] sm:$0xf] }
 0x492   :  { %v3301_v56 = vadd.f32 %v3300_v53, %v3288_v46  ;;  %v4804_v46 = vor.u32 %v5102_v40, %v4803_v34  ;;  %v5091_v53 = vld [vmem:[%s7078_s9 + $0xf4] sm:$0xf]  ;;  %v4708_v48 = vor.u32 %v5078_v43, %v4707_v1  ;;  %v4680_v26 = vor.u32 %v5069_v63, %v4677_v19  ;;  %v4771_v34 = vld [vmem:[%s7078_s9 + $0x100] sm:$0xf]  ;;  %v5094_v40 = vld [vmem:[%s7078_s9 + $0x104] sm:$0xf0] }
 0x493   :  { %3871 = vmatpush.bf16.msrb.mxu1 %v4652_v2  ;;  %v4768_v49 = vor.u32 %v5091_v53, %v4765_v37  ;;  %v4733_v2 = vld [vmem:[%s7078_s9 + $0xb8] sm:$0xf0]  ;;  %v4672_v31 = vor.u32 %v5067_v41, %v4669_v18  ;;  %v5081_v53 = vld [vmem:[%s7078_s9 + $0xa4] sm:$0xf]  ;;  %v4725_v37 = vld [vmem:[%s7078_s9 + $0xa8] sm:$0xf0] }
 0x494   :  { %v3304_v55 = vmax.f32 %v3301_v56, 0.0  ;;  %v5121_v56 = vld [vmem:[%s7078_s9 + $0x1e4] sm:$0xf]  ;;  %3911 = vmatpush.bf16.msrb.mxu0 %v4836_v21  ;;  %v4829_v1 = vld [vmem:[%s7078_s9 + $0x178] sm:$0xf0]  ;;  %v4736_v21 = vor.u32 %v5083_v32, %v4733_v2 }
 0x495   :  { %3884 = vmatpush.bf16.msra.mxu2 %v4716_v59  ;;  %v4888_v54 = vor.u32 %v5121_v56, %v4885_v23  ;;  %v4772_v59 = vor.u32 %v5094_v40, %v4771_v34  ;;  %v4832_v43 = vor.u32 %v5107_v13, %v4829_v1  ;;  %v5105_v56 = vld [vmem:[%s7078_s9 + $0x164] sm:$0xf]  ;;  %v4789_v19 = vld [vmem:[%s7078_s9 + $0x128] sm:$0xf0]  ;;  %v5095_v34 = vld [vmem:[%s7078_s9 + $0x114] sm:$0xf] }
 0x496   :  { %v6693_v47 = vpack.c.bf16 %v3304_v55, %v3304_v55  ;;  %v4877_v55 = vld [vmem:[%s7078_s9 + $0x1d8] sm:$0xf0]  ;;  %v5097_v63 = vld [vmem:[%s7078_s9 + $0x124] sm:$0xf]  ;;  %v4773_v13 = vld [vmem:[%s7078_s9 + $0x108] sm:$0xf0] }
 0x497   :  { %3872 = vmatpush.bf16.msrb.mxu1 %v4644_v60  ;;  %v4880_v20 = vor.u32 %v5119_v7, %v4877_v55  ;;  %v4821_v60 = vld [vmem:[%s7078_s9 + $0x168] sm:$0xf0]  ;;  %v4728_v7 = vor.u32 %v5081_v53, %v4725_v37  ;;  %v4781_v40 = vld [vmem:[%s7078_s9 + $0x118] sm:$0xf0] }
 0x498   :  { %4637 = vmatmul.msk.bf16.vlgmr.msrb.gmra.mxu3 %vm7141_vm15, %v6693_v47  ;;  %4638 = vmatmul.msk.bf16.vlgmr.msrb.gmra.mxu2 %vm7129_vm9, %v6693_v47  ;;  %v4824_v55 = vor.u32 %v5105_v56, %v4821_v60  ;;  %v5132_v56 = vld [vmem:[%s7080_s11 + $0x38] sm:$0xff]  ;;  %v5130_v60 = vld [vmem:[%s7080_s11 + $0x28] sm:$0xff] }
 0x499   :  { %4640 = vmatmul.msk.bf16.vlgmr.msra.gmra.mxu0 %vm7142_vm2, %v6693_v47  ;;  %v3302_v25 = vpop.f32.mrf.mxu0  ;;  %3891 = vmatpush.bf16.msrb.mxu3 %v4828_v62  ;;  %v4757_v62 = vld [vmem:[%s7078_s9 + $0xe8] sm:$0xf0] }
 0x49a   :  { %3956 = vmatpush.bf16.msra.mxu0 %v4896_v35  ;;  %3885 = vmatpush.bf16.msra.mxu2 %v4708_v48  ;;  %v4760_v28 = vor.u32 %v5089_v24, %v4757_v62  ;;  %v4788_v25 = vor.u32 %v5098_v33, %v4787_v51  ;;  %v4661_v35 = vld [vmem:[%s7078_s9 + $0x28] sm:$0xf0]  ;;  %v5103_v24 = vld [vmem:[%s7078_s9 + $0x154] sm:$0xf]  ;;  %v4813_v62 = vld [vmem:[%s7078_s9 + $0x158] sm:$0xf0] }
 0x49b   :  { %3917 = vmatpush.bf16.msra.mxu1 %v4704_v11  ;;  %v4664_v48 = vor.u32 %v5065_v17, %v4661_v35  ;;  %v5109_v11 = vld [vmem:[%s7078_s9 + $0x184] sm:$0xf]  ;;  %v4645_v51 = vld [vmem:[%s7078_s9 + $0x8] sm:$0xf0] }
 0x49c   :  { %v5077_v33 = vld [vmem:[%s7078_s9 + $0x84] sm:$0xf] }
 0x49d   :  { %3892 = vmatpush.bf16.msrb.mxu3 %v4820_v15  ;;  %v5115_v15 = vld [vmem:[%s7078_s9 + $0x1b4] sm:$0xf] }
 0x49e   :  { %3930 = vmatpush.bf16.msrb.mxu2 %v4768_v49  ;;  %3957 = vmatpush.bf16.msra.mxu0 %v4888_v54  ;;  %v4864_v4 = vor.u32 %v5115_v15, %v4861_v44  ;;  %v4837_v49 = vld [vmem:[%s7078_s9 + $0x188] sm:$0xf0]  ;;  %v6946_v54 = vld [vmem:[%s7077_s8] sm:$0xf]  ;;  %v4797_v15 = vld [vmem:[%s7078_s9 + $0x138] sm:$0xf0] }
 0x49f   :  { %v4840_v5 = vor.u32 %v5109_v11, %v4837_v49  ;;  %v3324_v3 = vperm.slane %v6946_v54, 0  ;;  %v3325_v30 = vperm.slane %v6946_v54, 1  ;;  %v5128_v11 = vld [vmem:[%s7080_s11 + $0x18] sm:$0xff] }
 0x4a0   :  { %v5140_v49 = vld [vmem:[%s7080_s11 + $0x78] sm:$0xff] }
 0x4a1   :  { %3893 = vmatpush.bf16.msrb.mxu3 %v4812_v16  ;;  %v5113_v16 = vld [vmem:[%s7078_s9 + $0x1a4] sm:$0xf] }
 0x4a2   :  { %3958 = vmatpush.bf16.msra.mxu0 %v4880_v20  ;;  %3931 = vmatpush.bf16.msrb.mxu2 %v4760_v28  ;;  %v4856_v61 = vor.u32 %v5113_v16, %v4853_v22  ;;  %v3327_v20 = vperm.slane %v6946_v54, 3  ;;  %v4816_v28 = vor.u32 %v5103_v24, %v4813_v62  ;;  %v5135_v62 = vld [vmem:[%s7080_s11 + $0x50] sm:$0xff] }
 0x4a5   :  { %3894 = vmatpush.bf16.msrb.mxu3 %v4804_v46  ;;  %v5111_v46 = vld [vmem:[%s7078_s9 + $0x194] sm:$0xf] }
 0x4a6   :  { %3959 = vmatpush.bf16.msra.mxu0 %v4872_v14  ;;  %3932 = vmatpush.bf16.msrb.mxu2 %v4752_v29  ;;  %v4848_v23 = vor.u32 %v5111_v46, %v4845_v27  ;;  %v4648_v14 = vor.u32 %v5061_v58, %v4645_v51  ;;  %v3539_v58 = vld [vmem:[%s7079_s10] sm:$0x3]  ;;  %v5134_v51 = vld [vmem:[%s7080_s11 + $0x48] sm:$0xff] }
 0x4a8   :  { %4639 = vmatmul.msk.bf16.vlgmr.msra.gmra.mxu3 %vm7143_vm3, %v6693_v47  ;;  %v5073_v47 = vld [vmem:[%s7078_s9 + $0x64] sm:$0xf] }
 0x4a9   :  { %v4696_v39 = vor.u32 %v5073_v47, %v4693_v52  ;;  %3895 = vmatpush.bf16.msrb.mxu3 %v4796_v38  ;;  %v4653_v47 = vld [vmem:[%s7078_s9 + $0x18] sm:$0xf0]  ;;  %v5079_v52 = vld [vmem:[%s7078_s9 + $0x94] sm:$0xf] }
 0x4aa   :  { %3960 = vmatpush.bf16.msra.mxu0 %v4864_v4  ;;  %3933 = vmatpush.bf16.msrb.mxu2 %v4744_v0  ;;  %v4656_v38 = vor.u32 %v5063_v45, %v4653_v47  ;;  %v4800_v4 = vor.u32 %v5099_v50, %v4797_v15  ;;  %v4792_v0 = vor.u32 %v5097_v63, %v4789_v19  ;;  %v5125_v45 = vld [vmem:[%s7080_s11] sm:$0xff]  ;;  %v3542_v63 = vperm.slane %v3539_v58, 1 }
 0x4ab   :  { %3918 = vmatpush.bf16.msra.mxu1 %v4696_v39  ;;  %v4717_v39 = vld [vmem:[%s7078_s9 + $0x98] sm:$0xf0]  ;;  %v5137_v47 = vld [vmem:[%s7080_s11 + $0x60] sm:$0xff] }
 0x4ac   :  { %v4720_v57 = vor.u32 %v5079_v52, %v4717_v39  ;;  %v5136_v39 = vld [vmem:[%s7080_s11 + $0x58] sm:$0xff] }
 0x4ad   :  { %3896 = vmatpush.bf16.msrb.mxu3 %v4788_v25  ;;  %v4709_v25 = vld [vmem:[%s7078_s9 + $0x88] sm:$0xf0] }
 0x4ae   :  { %3961 = vmatpush.bf16.msra.mxu0 %v4856_v61  ;;  %3934 = vmatpush.bf16.msrb.mxu2 %v4736_v21 }
 0x4af   :  { %3919 = vmatpush.bf16.msra.mxu1 %v4688_v10  ;;  %v4712_v10 = vor.u32 %v5077_v33, %v4709_v25  ;;  %v5133_v25 = vld [vmem:[%s7080_s11 + $0x40] sm:$0xff] }
 0x4b1   :  { %3897 = vmatpush.bf16.msrb.mxu3 %v4780_v42 }
 0x4b2   :  { %3962 = vmatpush.bf16.msra.mxu0 %v4848_v23  ;;  %3935 = vmatpush.bf16.msrb.mxu2 %v4728_v7  ;;  %v5131_v23 = vld [vmem:[%s7080_s11 + $0x30] sm:$0xff] }
 0x4b3   :  { %3920 = vmatpush.bf16.msra.mxu1 %v4680_v26  ;;  %v5139_v7 = vld [vmem:[%s7080_s11 + $0x70] sm:$0xff] }
 0x4b5   :  { %3898 = vmatpush.bf16.msrb.mxu3 %v4772_v59  ;;  %v4784_v59 = vor.u32 %v5095_v34, %v4781_v40 }
 0x4b6   :  { %3963 = vmatpush.bf16.msra.mxu0 %v4840_v5  ;;  %3936 = vmatpush.bf16.msrb.mxu2 %v4720_v57  ;;  %v5126_v5 = vld [vmem:[%s7080_s11 + $0x8] sm:$0xff] }
 0x4b7   :  { %3921 = vmatpush.bf16.msra.mxu1 %v4672_v31  ;;  %v5093_v31 = vld [vmem:[%s7078_s9 + $0x104] sm:$0xf] }
 0x4b8   :  { %v4776_v21 = vor.u32 %v5093_v31, %v4773_v13 }
 0x4b9   :  { %3943 = vmatpush.bf16.msra.mxu3 %v4832_v43  ;;  %v3326_v43 = vperm.slane %v6946_v54, 2  ;;  %v5127_v54 = vld [vmem:[%s7080_s11 + $0x10] sm:$0xff] }
 0x4ba   :  { %3937 = vmatpush.bf16.msrb.mxu2 %v4712_v10 }
 0x4bb   :  { %3922 = vmatpush.bf16.msra.mxu1 %v4664_v48  ;;  %v5129_v48 = vld [vmem:[%s7080_s11 + $0x20] sm:$0xff] }
 0x4bd   :  { %3944 = vmatpush.bf16.msra.mxu3 %v4824_v55 }
 0x4bf   :  { %3923 = vmatpush.bf16.msra.mxu1 %v4656_v38 }
 0x4c1   :  { %3945 = vmatpush.bf16.msra.mxu3 %v4816_v28 }
 0x4c3   :  { %3924 = vmatpush.bf16.msra.mxu1 %v4648_v14  ;;  %v3541_v14 = vperm.slane %v3539_v58, 0 }
 0x4c5   :  { %3946 = vmatpush.bf16.msra.mxu3 %v4808_v9 }
 0x4c9   :  { %3947 = vmatpush.bf16.msra.mxu3 %v4800_v4 }
 0x4cd   :  { %3948 = vmatpush.bf16.msra.mxu3 %v4792_v0 }
 0x4d1   :  { %3949 = vmatpush.bf16.msra.mxu3 %v4784_v59 }
 0x4d5   :  { %3950 = vmatpush.bf16.msra.mxu3 %v4776_v21 }
 0x516   :  { %v3463_v29 = vpop.f32.mrf.mxu0 }
 0x517   :  { %v3464_v44 = vadd.f32 %v3463_v29, %v3327_v20  ;;  %v5138_v20 = vld [vmem:[%s7080_s11 + $0x68] sm:$0xff] }
 0x519   :  { %v3470_v42 = vmax.f32 %v3464_v44, 0.0 }
 0x51b   :  { %v3474_v6 = vpack.c.bf16 %v3470_v42, %v3470_v42  ;;  %v3424_v26 = vpop.f32.mrf.mxu3  ;;  %v3437_v12 = vpop.f32.mrf.mxu2 }
 0x51c   :  { %v3425_v16 = vadd.f32 %v3424_v26, %v3324_v3  ;;  %v3438_v22 = vadd.f32 %v3437_v12, %v3325_v30 }
 0x51d   :  { %3912 = vmatmul.bf16.vlgmr.msrb.gmra.mxu0 %v3474_v6 }
 0x51e   :  { %v3467_v41 = vmax.f32 %v3425_v16, 0.0  ;;  %v3468_v61 = vmax.f32 %v3438_v22, 0.0  ;;  %v3465_v18 = vpop.f32.mrf.mxu0 }
 0x51f   :  { %v5148_v18 = vld [vmem:[%s7081_s12] ss:$0 sm:$0xff] }
 0x520   :  { %v3471_v32 = vpack.c.bf16 %v3467_v41, %v3467_v41  ;;  %v3472_v2 = vpack.c.bf16 %v3468_v61, %v3468_v61 }
 0x522   :  { %3873 = vmatmul.bf16.vlgmr.msrb.gmra.mxu1 %v3471_v32  ;;  %3886 = vmatmul.bf16.vlgmr.msra.gmra.mxu2 %v3472_v2 }
 0x523   :  { %v3426_v1 = vpop.f32.mrf.mxu3  ;;  %v3439_v46 = vpop.f32.mrf.mxu2  ;;  %4105 = vmatpush.bf16.msrb.mxu1 %v5132_v56  ;;  %4118 = vmatpush.bf16.msra.mxu2 %v5140_v49 }
 0x527   :  { %4106 = vmatpush.bf16.msrb.mxu1 %v5131_v23  ;;  %4119 = vmatpush.bf16.msra.mxu2 %v5139_v7 }
 0x52b   :  { %v3450_v27 = vpop.f32.mrf.mxu3  ;;  %4107 = vmatpush.bf16.msrb.mxu1 %v5130_v60  ;;  %4120 = vmatpush.bf16.msra.mxu2 %v5138_v20 }
 0x52c   :  { %v3451_v17 = vadd.f32 %v3450_v27, %v3326_v43 }
 0x52d   :  { %3964 = vmatmul.bf16.vlgmr.msra.gmra.mxu0 %v3474_v6 }
 0x52e   :  { %v3469_v35 = vmax.f32 %v3451_v17, 0.0 }
 0x52f   :  { %4108 = vmatpush.bf16.msrb.mxu1 %v5129_v48  ;;  %4121 = vmatpush.bf16.msra.mxu2 %v5137_v47 }
 0x530   :  { %v3473_v53 = vpack.c.bf16 %v3469_v35, %v3469_v35 }
 0x532   :  { %3899 = vmatmul.bf16.vlgmr.msrb.gmra.mxu3 %v3473_v53  ;;  %3925 = vmatmul.bf16.vlgmr.msra.gmra.mxu1 %v3471_v32 }
 0x533   :  { %3938 = vmatmul.bf16.vlgmr.msrb.gmra.mxu2 %v3472_v2  ;;  %v3452_v37 = vpop.f32.mrf.mxu3  ;;  %4109 = vmatpush.bf16.msrb.mxu1 %v5128_v11 }
 0x534   :  { %4122 = vmatpush.bf16.msra.mxu2 %v5136_v39 }
 0x537   :  { %4110 = vmatpush.bf16.msrb.mxu1 %v5127_v54 }
 0x538   :  { %4123 = vmatpush.bf16.msra.mxu2 %v5135_v62 }
 0x53b   :  { %4111 = vmatpush.bf16.msrb.mxu1 %v5126_v5 }
 0x53c   :  { %4124 = vmatpush.bf16.msra.mxu2 %v5134_v51 }
 0x53f   :  { %4112 = vmatpush.bf16.msrb.mxu1 %v5125_v45 }
 0x540   :  { %4125 = vmatpush.bf16.msra.mxu2 %v5133_v25 }
 0x542   :  { %3951 = vmatmul.bf16.vlgmr.msra.gmra.mxu3 %v3473_v53 }
 0x59a   :  { %v3913_v55 = vpop.f32.mrf.mxu0 }
 0x59f   :  { %v3874_v52 = vpop.f32.mrf.mxu1 }
 0x5a0   :  { %v3875_v36 = vadd.f32 %v3874_v52, %v3541_v14 }
 0x5a2   :  { %v3915_v38 = vpop.f32.mrf.mxu0 }
 0x5a5   :  { %v3887_v24 = vpop.f32.mrf.mxu2 }
 0x5a6   :  { %v3888_v9 = vadd.f32 %v3887_v24, %v3875_v36 }
 0x5a7   :  { %v3876_v57 = vpop.f32.mrf.mxu1 }
 0x5aa   :  { %v3965_v28 = vpop.f32.mrf.mxu0 }
 0x5ad   :  { %v3889_v33 = vpop.f32.mrf.mxu2 }
 0x5af   :  { %v3926_v8 = vpop.f32.mrf.mxu1 }
 0x5b0   :  { %v3927_v6 = vadd.f32 %v3926_v8, %v3542_v63 }
 0x5b2   :  { %v3967_v10 = vpop.f32.mrf.mxu0 }
 0x5b5   :  { %v3900_v50 = vpop.f32.mrf.mxu3 }
 0x5b6   :  { %v3901_v15 = vadd.f32 %v3900_v50, %v3888_v9  ;;  %v3939_v29 = vpop.f32.mrf.mxu2 }
 0x5b7   :  { %v3928_v44 = vpop.f32.mrf.mxu1  ;;  %v3940_v26 = vadd.f32 %v3939_v29, %v3927_v6 }
 0x5b8   :  { %v3914_v3 = vadd.f32 %v3913_v55, %v3901_v15 }
 0x5ba   :  { %v3969_v30 = vmax.f32 %v3914_v3, 0.0 }
 0x5bc   :  { %v3971_v4 = vpack.c.bf16 %v3969_v30, %v3969_v30 }
 0x5bd   :  { %v3902_v42 = vpop.f32.mrf.mxu3 }
 0x5be   :  { %v3941_v19 = vpop.f32.mrf.mxu2  ;;  %4113 = vmatmul.bf16.vlgmr.msrb.gmra.mxu1 %v3971_v4 }
 0x5c5   :  { %v3952_v12 = vpop.f32.mrf.mxu3 }
 0x5c6   :  { %v3953_v16 = vadd.f32 %v3952_v12, %v3940_v26 }
 0x5c8   :  { %v3966_v22 = vadd.f32 %v3965_v28, %v3953_v16 }
 0x5ca   :  { %v3970_v0 = vmax.f32 %v3966_v22, 0.0 }
 0x5cc   :  { %v3972_v34 = vpack.c.bf16 %v3970_v0, %v3970_v0 }
 0x5cd   :  { %v3954_v40 = vpop.f32.mrf.mxu3 }
 0x5ce   :  { %4126 = vmatmul.bf16.vlgmr.msra.gmra.mxu2 %v3972_v34 }
 0x63b   :  { %v4114_v41 = vpop.f32.mrf.mxu1 }
 0x63c   :  { %v4115_v32 = vadd.f32 %v5148_v18, %v4114_v41 }
 0x643   :  { %v4116_v61 = vpop.f32.mrf.mxu1 }
 0x651   :  { %v4127_v2 = vpop.f32.mrf.mxu2 }
 0x652   :  { %v4128_v59 = vadd.f32 %v4127_v2, %v4115_v32 }
 0x654   :  { %4131 = vst [vmem:[#allocation6] sm:$0x3] %v4128_v59 }
 0x655   :  { %4142 = dma.vmem_to_hbm [thread:$0]  %s4138_s26, 32, %s4140_s29, [#allocation7]  }
 0x659   :  { %v4129_v31 = vpop.f32.mrf.mxu2 }
 0x65a   :  { %5173 = dma.done.wait [#allocation7], 32  }
 0x65b   :  { %5174 = vsyncadd [#allocation7], 4294967264 }
 0x65c   :  { %4147 = vsyncpa [#allocation7], 1 }

</bundles_post_ra>
